<compile_context>
chip_gen: v6e
topology: v6e:2x2x1
jax: 0.10.0
libtpu: 0.0.40
codegen_flags: <defaults>
</compile_context>

<pallas_src>
import functools

import numpy as np
import jax
import jax.numpy as jnp
from jax import lax
from jax.experimental import pallas as pl
from jax.experimental.pallas import tpu as pltpu


# --------------------------------------------------------------------------- #
# Pallas kernel: conv1 -> (BN1) -> ReLU -> conv2 -> (BN2) -> ReLU -> pool
# One grid step processes one batch element (grid = (N,)).
#
# Input x_ref is the kw-packed, zero-padded image: shape (1, (H+2)*W, 3*Cin)
# with x_packed[(i)*W + j, kw*Cin + c] = x_padded[i, j+kw, c].  Conv tap kh is
# then the contiguous row slice [kh*W, kh*W + H*W).  The conv1 output is
# re-packed the same way (in-kernel) into h1p_ref for conv2.
# --------------------------------------------------------------------------- #
def _conv_block_kernel(x_ref, w1_ref, b1_ref, w2_ref, b2_ref, o_ref,
                       h1p_ref, *pool_scratch,
                       H, W, ph, pw, pool_type):
    HW = H * W
    Cout = w1_ref.shape[-1]
    cdt = h1p_ref.dtype                       # MXU compute dtype (bf16)

    def conv3(tap, w_ref):
        # 3 contiguous taps (kh = 0,1,2), live f32 accumulation in vregs.
        acc = jnp.dot(tap(0), w_ref[0], preferred_element_type=jnp.float32)
        for kh in (1, 2):
            acc = acc + jnp.dot(tap(kh), w_ref[kh],
                                preferred_element_type=jnp.float32)
        return acc

    # ---- conv1 (BN1 scale folded into w1) + bias + ReLU ------------------- #
    y1 = jnp.maximum(
        conv3(lambda kh: x_ref[0, kh * W:kh * W + HW, :], w1_ref)
        + b1_ref[...], 0.0)                                   # (H*W, Cout) f32

    # Masks zeroing the wrap-around rows of the shifted slab stores
    # (flat row r maps to spatial column j = r % W).
    col = lax.broadcasted_iota(jnp.int32, (HW, 1), 0) % W
    not_first = (col != 0).astype(jnp.float32)        # zero where j == 0
    not_last = (col != W - 1).astype(jnp.float32)     # zero where j == W - 1

    # Zero only the top/bottom halo row blocks (cheap, done every iteration
    # so the kernel is correct under any multi-core split of the grid).
    h1p_ref[0:W + 1, :] = jnp.zeros((W + 1, 3 * Cout), cdt)
    h1p_ref[(H + 1) * W - 1:(H + 2) * W, :] = jnp.zeros((W + 1, 3 * Cout), cdt)

    # kw-packed slabs of the padded conv1 output: 3 contiguous stores.
    h1p_ref[W:W + HW, Cout:2 * Cout] = y1.astype(cdt)                   # kw=1
    h1p_ref[W + 1:W + 1 + HW, 0:Cout] = (y1 * not_last).astype(cdt)     # kw=0
    h1p_ref[W - 1:W - 1 + HW, 2 * Cout:3 * Cout] = \
        (y1 * not_first).astype(cdt)                                    # kw=2

    # ---- conv2 (BN2 scale folded into w2) + bias + ReLU ------------------- #
    y2 = jnp.maximum(
        conv3(lambda kh: h1p_ref[kh * W:kh * W + HW, :], w2_ref)
        + b2_ref[...], 0.0)                                   # (H*W, Cout) f32

    if pool_type == 'keep':
        o_ref[0] = y2.reshape(H, W, Cout).astype(o_ref.dtype)
        return

    # ---- (ph x pw) pooling ------------------------------------------------ #
    Ho, Wo = H // ph, W // pw
    pr_ref, = pool_scratch
    yA = y2.reshape(Ho, ph * W, Cout)           # layout-preserving row split

    def ph_reduce(op):
        # reduce over the ph window rows with contiguous live-value slices
        r = yA[:, 0:W, :]
        for di in range(1, ph):
            r = op(r, yA[:, di * W:(di + 1) * W, :])
        return r                                 # (Ho, W, Cout) f32, live

    def pw_reduce(r, op):
        # stage the (already ph-reduced) rows once, then strided ref reads
        # TODO(synk): do this fully on the live value once strided value
        #             slices lower on all generations.
        pr_ref[...] = r
        c = pr_ref[:, pl.ds(0, Wo, stride=pw), :]
        for dj in range(1, pw):
            c = op(c, pr_ref[:, pl.ds(dj, Wo, stride=pw), :])
        return c                                 # (Ho, Wo, Cout)

    add = lambda a, b: a + b
    out = None
    if pool_type in ('avg', 'avg+max'):
        out = pw_reduce(ph_reduce(add), add) * (1.0 / (ph * pw))
    if pool_type in ('max', 'avg+max'):
        m = pw_reduce(ph_reduce(jnp.maximum), jnp.maximum)
        out = m if out is None else out + m

    o_ref[0] = out.astype(o_ref.dtype)


# --------------------------------------------------------------------------- #
# Parameters (matching ConvBlock.init_weight()) and the public wrapper
# --------------------------------------------------------------------------- #
def make_params(key, in_channels, out_channels):
    k1, k2 = jax.random.split(key)

    def xavier_conv(k, cout, cin):
        fan_in, fan_out = cin * 9, cout * 9
        bound = float(np.sqrt(6.0 / (fan_in + fan_out)))
        return jax.random.uniform(k, (cout, cin, 3, 3), jnp.float32,
                                  minval=-bound, maxval=bound)

    def bn_init(c):
        return dict(gamma=jnp.ones((c,), jnp.float32),
                    beta=jnp.zeros((c,), jnp.float32),
                    mean=jnp.zeros((c,), jnp.float32),
                    var=jnp.ones((c,), jnp.float32))

    return {'w1': xavier_conv(k1, out_channels, in_channels),
            'w2': xavier_conv(k2, out_channels, out_channels),
            'bn1': bn_init(out_channels),
            'bn2': bn_init(out_channels)}


def _tiled_bytes(shape, itemsize):
    """Rough VMEM footprint of a block/scratch after (8,128) tiling."""
    lead = int(np.prod(shape[:-2])) if len(shape) > 2 else 1
    sub = -(-int(shape[-2]) // 8) * 8
    lane = -(-int(shape[-1]) // 128) * 128
    return lead * sub * lane * itemsize


def conv_block_forward(x_nchw, params, pool_type='avg', pool_size=(2, 2),
                       eps=1e-5, compute_dtype=jnp.bfloat16):
    if pool_type not in ('avg', 'max', 'avg+max', 'keep'):
        raise Exception('Incorrect argument!')

    N, Cin, H, W = x_nchw.shape
    ph, pw = pool_size
    Cout = params['w1'].shape[0]
    if pool_type == 'keep':
        Ho, Wo = H, W
    else:
        assert H % ph == 0 and W % pw == 0, \
            "pool_size must divide the spatial dims"
        Ho, Wo = H // ph, W // pw

    PADR = (H + 2) * W                       # rows of the kw-packed buffers

    # NCHW -> NHWC, zero-pad, pack the 3 kw shifts into channels, flatten.
    # (The padded interior copy rides on the input DMA, not on store slots.)
    x = jnp.transpose(x_nchw, (0, 2, 3, 1))
    xpad = jnp.pad(x, ((0, 0), (1, 1), (1, 1), (0, 0)))
    xpk = jnp.concatenate([xpad[:, :, kw:kw + W, :] for kw in range(3)],
                          axis=-1)                      # (N, H+2, W, 3*Cin)
    xpk = xpk.reshape(N, PADR, 3 * Cin).astype(compute_dtype)

    def fold(w_oihw, bn):
        # Fold the BN scale into the (bias-free) conv weights; keep the shift
        # as a per-channel f32 bias.  Pack kw into the contraction axis.
        s = bn['gamma'] / jnp.sqrt(bn['var'] + eps)
        b = bn['beta'] - bn['mean'] * s
        w_hwio = jnp.transpose(w_oihw * s[:, None, None, None], (2, 3, 1, 0))
        cin = w_hwio.shape[2]
        w_pk = w_hwio.reshape(3, 3 * cin, Cout).astype(compute_dtype)
        return w_pk, b.reshape(1, -1).astype(jnp.float32)

    w1, b1 = fold(params['w1'], params['bn1'])           # (3, 3*Cin,  Cout)
    w2, b2 = fold(params['w2'], params['bn2'])           # (3, 3*Cout, Cout)

    kernel = functools.partial(_conv_block_kernel, H=H, W=W, ph=ph, pw=pw,
                               pool_type=pool_type)

    scratch_shapes = [pltpu.VMEM((PADR, 3 * Cout), compute_dtype)]  # kw-packed
    if pool_type != 'keep':
        scratch_shapes.append(pltpu.VMEM((Ho, W, Cout), jnp.float32))

    # VMEM budget: 2x only the double-buffered in/out blocks, 1x the
    # single-buffered constants + scratch; capped below physical VMEM.
    cb = jnp.dtype(compute_dtype).itemsize
    dbuf = (_tiled_bytes((1, PADR, 3 * Cin), cb)
            + _tiled_bytes((1, Ho, Wo, Cout), 4))
    consts = (_tiled_bytes((3, 3 * Cin, Cout), cb)
              + _tiled_bytes((3, 3 * Cout, Cout), cb)
              + 2 * _tiled_bytes((1, Cout), 4))
    scratch = _tiled_bytes((PADR, 3 * Cout), cb)
    if pool_type != 'keep':
        scratch += _tiled_bytes((Ho, W, Cout), 4)
    need = 2 * dbuf + consts + scratch + (4 << 20)
    try:
        cap = pltpu.get_tpu_info().vmem_capacity_bytes
    except Exception:
        cap = 64 << 20                                   # conservative (v7x)
    vmem_limit = int(min(max(need, 16 << 20), cap - (12 << 20)))

    def const_spec(shape):
        # grid-invariant blocks: constant index map, single-buffered
        return pl.BlockSpec(shape, lambda n, _d=len(shape): (0,) * _d,
                            pipeline_mode=pl.Buffered(1))

    out_nhwc = pl.pallas_call(
        kernel,
        out_shape=jax.ShapeDtypeStruct((N, Ho, Wo, Cout), jnp.float32),
        grid=(N,),
        in_specs=[
            pl.BlockSpec((1, PADR, 3 * Cin), lambda n: (n, 0, 0)),
            const_spec((3, 3 * Cin, Cout)),
            const_spec((1, Cout)),
            const_spec((3, 3 * Cout, Cout)),
            const_spec((1, Cout)),
        ],
        out_specs=pl.BlockSpec((1, Ho, Wo, Cout), lambda n: (n, 0, 0, 0)),
        scratch_shapes=scratch_shapes,
        compiler_params=pltpu.CompilerParams(
            dimension_semantics=("parallel",),
            vmem_limit_bytes=vmem_limit),
    )(xpk, w1, b1, w2, b2)

    return jnp.transpose(out_nhwc, (0, 3, 1, 2))          # NHWC -> NCHW


# --------------------------------------------------------------------------- #
# Pure-JAX f32 reference (faithful to the PyTorch module, eval-mode BN)
# --------------------------------------------------------------------------- #
def reference_forward(x_nchw, params, pool_type='avg', pool_size=(2, 2),
                      eps=1e-5):
    def conv(x, w):
        return lax.conv_general_dilated(
            x, w, window_strides=(1, 1), padding=((1, 1), (1, 1)),
            dimension_numbers=('NCHW', 'OIHW', 'NCHW'),
            precision=lax.Precision.HIGHEST)

    def bn(x, p):
        s = p['gamma'] / jnp.sqrt(p['var'] + eps)
        b = p['beta'] - p['mean'] * s
        return x * s[None, :, None, None] + b[None, :, None, None]

    y = jax.nn.relu(bn(conv(x_nchw, params['w1']), params['bn1']))
    y = jax.nn.relu(bn(conv(y, params['w2']), params['bn2']))
    if pool_type == 'keep':
        return y
    N, C, H, W = y.shape
    ph, pw = pool_size
    Ho, Wo = H // ph, W // pw
    yr = y[:, :, :Ho * ph, :Wo * pw].reshape(N, C, Ho, ph, Wo, pw)
    avg = yr.mean(axis=(3, 5))
    mx = yr.max(axis=(3, 5))
    if pool_type == 'avg':
        return avg
    if pool_type == 'max':
        return mx
    if pool_type == 'avg+max':
        return avg + mx
    raise Exception('Incorrect argument!')


if __name__ == "__main__":
    key = jax.random.PRNGKey(0)
    kx, kp, kb = jax.random.split(key, 3)

    N, Cin, Cout, H, W = 2, 4, 16, 16, 16
    x = jax.random.normal(kx, (N, Cin, H, W), jnp.float32)
    params = make_params(kp, Cin, Cout)

    # Non-trivial BatchNorm statistics so the scale/shift folding is exercised.
    kb1, kb2 = jax.random.split(kb)
    for name, k in (('bn1', kb1), ('bn2', kb2)):
        kg, kbeta, km, kv = jax.random.split(k, 4)
        params[name] = dict(
            gamma=jax.random.uniform(kg, (Cout,), jnp.float32, 0.8, 1.2),
            beta=0.1 * jax.random.normal(kbeta, (Cout,), jnp.float32),
            mean=0.1 * jax.random.normal(km, (Cout,), jnp.float32),
            var=jax.random.uniform(kv, (Cout,), jnp.float32, 0.7, 1.3))

    for pool_type in ('avg', 'max', 'avg+max', 'keep'):
        out = jax.block_until_ready(
            conv_block_forward(x, params, pool_type=pool_type))
        ref = reference_forward(x, params, pool_type=pool_type)
        assert out.shape == ref.shape, (pool_type, out.shape, ref.shape)
        # bf16 MXU inputs with f32 accumulation vs. a full-f32 reference.
        np.testing.assert_allclose(np.asarray(out), np.asarray(ref),
                                   rtol=3e-2, atol=3e-2,
                                   err_msg=f"pool_type={pool_type}")

    print("KERNEL_OK")
</pallas_src>

<mosaic_0001>
module attributes {stable_mosaic.version = 11 : i64} {
  func.func @_conv_block_kernel(%arg0: i32, %arg1: memref<1x288x12xbf16, #tpu.memory_space<vmem>>, %arg2: memref<3x12x16xbf16, #tpu.memory_space<vmem>>, %arg3: memref<1x16xf32, #tpu.memory_space<vmem>>, %arg4: memref<3x48x16xbf16, #tpu.memory_space<vmem>>, %arg5: memref<1x16xf32, #tpu.memory_space<vmem>>, %arg6: memref<1x8x8x16xf32, #tpu.memory_space<vmem>>, %arg7: memref<288x48xbf16, #tpu.memory_space<vmem>>, %arg8: memref<8x16x16xf32, #tpu.memory_space<vmem>>) attributes {dimension_semantics = [#tpu.dimension_semantics<parallel>], iteration_bounds = array<i64: 2>, scalar_prefetch = 0 : i64, scratch_operands = 2 : i64, tpu.core_type = #tpu.core_type<tc>, window_params = [{transform_indices = @transform_0, window_bounds = array<i64: 1, 288, 12>}, {pipeline_mode = #tpu.pipeline_mode<synchronous>, transform_indices = @transform_1, window_bounds = array<i64: 3, 12, 16>}, {pipeline_mode = #tpu.pipeline_mode<synchronous>, transform_indices = @transform_2, window_bounds = array<i64: 1, 16>}, {pipeline_mode = #tpu.pipeline_mode<synchronous>, transform_indices = @transform_3, window_bounds = array<i64: 3, 48, 16>}, {pipeline_mode = #tpu.pipeline_mode<synchronous>, transform_indices = @transform_4, window_bounds = array<i64: 1, 16>}, {transform_indices = @transform_5, window_bounds = array<i64: 1, 8, 8, 16>}]} {
    %c0 = arith.constant 0 : index
    %c0_0 = arith.constant 0 : index
    %c0_1 = arith.constant 0 : index
    %0 = vector.load %arg1[%c0, %c0_0, %c0_1] : memref<1x288x12xbf16, #tpu.memory_space<vmem>>, vector<1x256x12xbf16>
    %1 = vector.shape_cast %0 : vector<1x256x12xbf16> to vector<256x12xbf16>
    %c0_2 = arith.constant 0 : index
    %c0_3 = arith.constant 0 : index
    %c0_4 = arith.constant 0 : index
    %2 = vector.load %arg2[%c0_2, %c0_3, %c0_4] : memref<3x12x16xbf16, #tpu.memory_space<vmem>>, vector<1x12x16xbf16>
    %3 = vector.shape_cast %2 : vector<1x12x16xbf16> to vector<12x16xbf16>
    %cst = arith.constant dense<0.000000e+00> : vector<256x16xf32>
    %4 = tpu.matmul %1, %3, %cst {dimension_numbers = #tpu.dot_dimension_numbers<[1], [0], [0], [1], [0, 0, 1, 1], [], []>} : vector<256x12xbf16>, vector<12x16xbf16>, vector<256x16xf32> -> vector<256x16xf32>
    %c0_5 = arith.constant 0 : index
    %c16 = arith.constant 16 : index
    %c0_6 = arith.constant 0 : index
    %5 = vector.load %arg1[%c0_5, %c16, %c0_6] : memref<1x288x12xbf16, #tpu.memory_space<vmem>>, vector<1x256x12xbf16>
    %6 = vector.shape_cast %5 : vector<1x256x12xbf16> to vector<256x12xbf16>
    %c1 = arith.constant 1 : index
    %c0_7 = arith.constant 0 : index
    %c0_8 = arith.constant 0 : index
    %7 = vector.load %arg2[%c1, %c0_7, %c0_8] : memref<3x12x16xbf16, #tpu.memory_space<vmem>>, vector<1x12x16xbf16>
    %8 = vector.shape_cast %7 : vector<1x12x16xbf16> to vector<12x16xbf16>
    %cst_9 = arith.constant dense<0.000000e+00> : vector<256x16xf32>
    %9 = tpu.matmul %6, %8, %cst_9 {dimension_numbers = #tpu.dot_dimension_numbers<[1], [0], [0], [1], [0, 0, 1, 1], [], []>} : vector<256x12xbf16>, vector<12x16xbf16>, vector<256x16xf32> -> vector<256x16xf32>
    %10 = arith.addf %4, %9 : vector<256x16xf32>
    %c0_10 = arith.constant 0 : index
    %c32 = arith.constant 32 : index
    %c0_11 = arith.constant 0 : index
    %11 = vector.load %arg1[%c0_10, %c32, %c0_11] : memref<1x288x12xbf16, #tpu.memory_space<vmem>>, vector<1x256x12xbf16>
    %12 = vector.shape_cast %11 : vector<1x256x12xbf16> to vector<256x12xbf16>
    %c2 = arith.constant 2 : index
    %c0_12 = arith.constant 0 : index
    %c0_13 = arith.constant 0 : index
    %13 = vector.load %arg2[%c2, %c0_12, %c0_13] : memref<3x12x16xbf16, #tpu.memory_space<vmem>>, vector<1x12x16xbf16>
    %14 = vector.shape_cast %13 : vector<1x12x16xbf16> to vector<12x16xbf16>
    %cst_14 = arith.constant dense<0.000000e+00> : vector<256x16xf32>
    %15 = tpu.matmul %12, %14, %cst_14 {dimension_numbers = #tpu.dot_dimension_numbers<[1], [0], [0], [1], [0, 0, 1, 1], [], []>} : vector<256x12xbf16>, vector<12x16xbf16>, vector<256x16xf32> -> vector<256x16xf32>
    %16 = arith.addf %10, %15 : vector<256x16xf32>
    %c0_15 = arith.constant 0 : index
    %c0_16 = arith.constant 0 : index
    %17 = vector.load %arg3[%c0_15, %c0_16] : memref<1x16xf32, #tpu.memory_space<vmem>>, vector<1x16xf32>
    %18 = vector.broadcast %17 : vector<1x16xf32> to vector<256x16xf32>
    %19 = arith.addf %16, %18 : vector<256x16xf32>
    %cst_17 = arith.constant 0.000000e+00 : f32
    %20 = vector.broadcast %cst_17 : f32 to vector<256x16xf32>
    %21 = arith.maximumf %19, %20 : vector<256x16xf32>
    %22 = tpu.iota {dimensions = array<i32: 0>} : vector<256x1xi32>
    %c16_i32 = arith.constant 16 : i32
    %c0_i32 = arith.constant 0 : i32
    %23 = arith.cmpi eq, %c16_i32, %c0_i32 : i32
    %c1_i32 = arith.constant 1 : i32
    %24 = arith.select %23, %c1_i32, %c16_i32 : i32
    %25 = vector.broadcast %24 : i32 to vector<256x1xi32>
    %26 = arith.remsi %22, %25 : vector<256x1xi32>
    %c0_i32_18 = arith.constant 0 : i32
    %27 = vector.broadcast %c0_i32_18 : i32 to vector<256x1xi32>
    %28 = arith.cmpi ne, %26, %27 : vector<256x1xi32>
    %c0_i32_19 = arith.constant 0 : i32
    %29 = vector.broadcast %c0_i32_19 : i32 to vector<256x1xi32>
    %30 = arith.cmpi slt, %26, %29 : vector<256x1xi32>
    %c0_i32_20 = arith.constant 0 : i32
    %31 = arith.cmpi slt, %24, %c0_i32_20 : i32
    %32 = vector.broadcast %31 : i1 to vector<256x1xi1>
    %33 = vector.broadcast %32 : vector<256x1xi1> to vector<256x1xi1>
    %34 = arith.xori %30, %33 : vector<256x1xi1>
    %35 = arith.andi %34, %28 : vector<256x1xi1>
    %36 = vector.broadcast %24 : i32 to vector<256x1xi32>
    %37 = arith.addi %26, %36 : vector<256x1xi32>
    %38 = arith.select %35, %37, %26 : vector<256x1xi1>, vector<256x1xi32>
    %c0_i32_21 = arith.constant 0 : i32
    %39 = vector.broadcast %c0_i32_21 : i32 to vector<256x1xi32>
    %40 = arith.cmpi ne, %38, %39 : vector<256x1xi32>
    %41 = arith.extui %40 : vector<256x1xi1> to vector<256x1xi32>
    %42 = arith.sitofp %41 : vector<256x1xi32> to vector<256x1xf32>
    %c15_i32 = arith.constant 15 : i32
    %43 = vector.broadcast %c15_i32 : i32 to vector<256x1xi32>
    %44 = arith.cmpi ne, %38, %43 : vector<256x1xi32>
    %45 = arith.extui %44 : vector<256x1xi1> to vector<256x1xi32>
    %46 = arith.sitofp %45 : vector<256x1xi32> to vector<256x1xf32>
    %cst_22 = arith.constant 0.000000e+00 : bf16
    %47 = vector.broadcast %cst_22 : bf16 to vector<17x48xbf16>
    %c0_23 = arith.constant 0 : index
    %c0_24 = arith.constant 0 : index
    %48 = vector.load %arg7[%c0_23, %c0_24] : memref<288x48xbf16, #tpu.memory_space<vmem>>, vector<17x48xbf16>
    tpu.vector_store %arg7[%c0_23, %c0_24], %47 {strides = array<i32>} : memref<288x48xbf16, #tpu.memory_space<vmem>>, vector<17x48xbf16>,
    %cst_25 = arith.constant 0.000000e+00 : bf16
    %49 = vector.broadcast %cst_25 : bf16 to vector<17x48xbf16>
    %c271 = arith.constant 271 : index
    %c0_26 = arith.constant 0 : index
    %50 = vector.load %arg7[%c271, %c0_26] : memref<288x48xbf16, #tpu.memory_space<vmem>>, vector<17x48xbf16>
    tpu.vector_store %arg7[%c271, %c0_26], %49 {strides = array<i32>} : memref<288x48xbf16, #tpu.memory_space<vmem>>, vector<17x48xbf16>,
    %51 = arith.truncf %21 : vector<256x16xf32> to vector<256x16xbf16>
    %c16_27 = arith.constant 16 : index
    %c16_28 = arith.constant 16 : index
    %52 = vector.load %arg7[%c16_27, %c16_28] : memref<288x48xbf16, #tpu.memory_space<vmem>>, vector<256x16xbf16>
    tpu.vector_store %arg7[%c16_27, %c16_28], %51 {strides = array<i32>} : memref<288x48xbf16, #tpu.memory_space<vmem>>, vector<256x16xbf16>,
    %53 = vector.broadcast %46 : vector<256x1xf32> to vector<256x16xf32>
    %54 = arith.mulf %21, %53 : vector<256x16xf32>
    %55 = arith.truncf %54 : vector<256x16xf32> to vector<256x16xbf16>
    %c17 = arith.constant 17 : index
    %c0_29 = arith.constant 0 : index
    %56 = vector.load %arg7[%c17, %c0_29] : memref<288x48xbf16, #tpu.memory_space<vmem>>, vector<256x16xbf16>
    tpu.vector_store %arg7[%c17, %c0_29], %55 {strides = array<i32>} : memref<288x48xbf16, #tpu.memory_space<vmem>>, vector<256x16xbf16>,
    %57 = vector.broadcast %42 : vector<256x1xf32> to vector<256x16xf32>
    %58 = arith.mulf %21, %57 : vector<256x16xf32>
    %59 = arith.truncf %58 : vector<256x16xf32> to vector<256x16xbf16>
    %c15 = arith.constant 15 : index
    %c32_30 = arith.constant 32 : index
    %60 = vector.load %arg7[%c15, %c32_30] : memref<288x48xbf16, #tpu.memory_space<vmem>>, vector<256x16xbf16>
    tpu.vector_store %arg7[%c15, %c32_30], %59 {strides = array<i32>} : memref<288x48xbf16, #tpu.memory_space<vmem>>, vector<256x16xbf16>,
    %c0_31 = arith.constant 0 : index
    %c0_32 = arith.constant 0 : index
    %61 = vector.load %arg7[%c0_31, %c0_32] : memref<288x48xbf16, #tpu.memory_space<vmem>>, vector<256x48xbf16>
    %c0_33 = arith.constant 0 : index
    %c0_34 = arith.constant 0 : index
    %c0_35 = arith.constant 0 : index
    %62 = vector.load %arg4[%c0_33, %c0_34, %c0_35] : memref<3x48x16xbf16, #tpu.memory_space<vmem>>, vector<1x48x16xbf16>
    %63 = vector.shape_cast %62 : vector<1x48x16xbf16> to vector<48x16xbf16>
    %cst_36 = arith.constant dense<0.000000e+00> : vector<256x16xf32>
    %64 = tpu.matmul %61, %63, %cst_36 {dimension_numbers = #tpu.dot_dimension_numbers<[1], [0], [0], [1], [0, 0, 1, 1], [], []>} : vector<256x48xbf16>, vector<48x16xbf16>, vector<256x16xf32> -> vector<256x16xf32>
    %c16_37 = arith.constant 16 : index
    %c0_38 = arith.constant 0 : index
    %65 = vector.load %arg7[%c16_37, %c0_38] : memref<288x48xbf16, #tpu.memory_space<vmem>>, vector<256x48xbf16>
    %c1_39 = arith.constant 1 : index
    %c0_40 = arith.constant 0 : index
    %c0_41 = arith.constant 0 : index
    %66 = vector.load %arg4[%c1_39, %c0_40, %c0_41] : memref<3x48x16xbf16, #tpu.memory_space<vmem>>, vector<1x48x16xbf16>
    %67 = vector.shape_cast %66 : vector<1x48x16xbf16> to vector<48x16xbf16>
    %cst_42 = arith.constant dense<0.000000e+00> : vector<256x16xf32>
    %68 = tpu.matmul %65, %67, %cst_42 {dimension_numbers = #tpu.dot_dimension_numbers<[1], [0], [0], [1], [0, 0, 1, 1], [], []>} : vector<256x48xbf16>, vector<48x16xbf16>, vector<256x16xf32> -> vector<256x16xf32>
    %69 = arith.addf %64, %68 : vector<256x16xf32>
    %c32_43 = arith.constant 32 : index
    %c0_44 = arith.constant 0 : index
    %70 = vector.load %arg7[%c32_43, %c0_44] : memref<288x48xbf16, #tpu.memory_space<vmem>>, vector<256x48xbf16>
    %c2_45 = arith.constant 2 : index
    %c0_46 = arith.constant 0 : index
    %c0_47 = arith.constant 0 : index
    %71 = vector.load %arg4[%c2_45, %c0_46, %c0_47] : memref<3x48x16xbf16, #tpu.memory_space<vmem>>, vector<1x48x16xbf16>
    %72 = vector.shape_cast %71 : vector<1x48x16xbf16> to vector<48x16xbf16>
    %cst_48 = arith.constant dense<0.000000e+00> : vector<256x16xf32>
    %73 = tpu.matmul %70, %72, %cst_48 {dimension_numbers = #tpu.dot_dimension_numbers<[1], [0], [0], [1], [0, 0, 1, 1], [], []>} : vector<256x48xbf16>, vector<48x16xbf16>, vector<256x16xf32> -> vector<256x16xf32>
    %74 = arith.addf %69, %73 : vector<256x16xf32>
    %c0_49 = arith.constant 0 : index
    %c0_50 = arith.constant 0 : index
    %75 = vector.load %arg5[%c0_49, %c0_50] : memref<1x16xf32, #tpu.memory_space<vmem>>, vector<1x16xf32>
    %76 = vector.broadcast %75 : vector<1x16xf32> to vector<256x16xf32>
    %77 = arith.addf %74, %76 : vector<256x16xf32>
    %cst_51 = arith.constant 0.000000e+00 : f32
    %78 = vector.broadcast %cst_51 : f32 to vector<256x16xf32>
    %79 = arith.maximumf %77, %78 : vector<256x16xf32>
    %80 = vector.shape_cast %79 : vector<256x16xf32> to vector<8x32x16xf32>
    %81 = vector.extract_strided_slice %80 {offsets = [0, 0, 0], sizes = [8, 16, 16], strides = [1, 1, 1]} : vector<8x32x16xf32> to vector<8x16x16xf32>
    %82 = vector.extract_strided_slice %80 {offsets = [0, 16, 0], sizes = [8, 16, 16], strides = [1, 1, 1]} : vector<8x32x16xf32> to vector<8x16x16xf32>
    %83 = arith.addf %81, %82 : vector<8x16x16xf32>
    %c0_52 = arith.constant 0 : index
    %c0_53 = arith.constant 0 : index
    %c0_54 = arith.constant 0 : index
    %84 = vector.load %arg8[%c0_52, %c0_53, %c0_54] : memref<8x16x16xf32, #tpu.memory_space<vmem>>, vector<8x16x16xf32>
    tpu.vector_store %arg8[%c0_52, %c0_53, %c0_54], %83 {strides = array<i32>} : memref<8x16x16xf32, #tpu.memory_space<vmem>>, vector<8x16x16xf32>,
    %c0_55 = arith.constant 0 : index
    %c0_56 = arith.constant 0 : index
    %c0_57 = arith.constant 0 : index
    %85 = tpu.strided_load %arg8[%c0_55, %c0_56, %c0_57] {strides = array<i32: 1, 2, 1>} : memref<8x16x16xf32, #tpu.memory_space<vmem>>, vector<8x8x16xf32>
    %c0_58 = arith.constant 0 : index
    %c1_59 = arith.constant 1 : index
    %c0_60 = arith.constant 0 : index
    %86 = tpu.strided_load %arg8[%c0_58, %c1_59, %c0_60] {strides = array<i32: 1, 2, 1>} : memref<8x16x16xf32, #tpu.memory_space<vmem>>, vector<8x8x16xf32>
    %87 = arith.addf %85, %86 : vector<8x8x16xf32>
    %cst_61 = arith.constant 2.500000e-01 : f32
    %88 = vector.broadcast %cst_61 : f32 to vector<8x8x16xf32>
    %89 = arith.mulf %87, %88 : vector<8x8x16xf32>
    %c0_62 = arith.constant 0 : index
    %c0_63 = arith.constant 0 : index
    %c0_64 = arith.constant 0 : index
    %c0_65 = arith.constant 0 : index
    %90 = vector.load %arg6[%c0_62, %c0_63, %c0_64, %c0_65] : memref<1x8x8x16xf32, #tpu.memory_space<vmem>>, vector<1x8x8x16xf32>
    %91 = vector.shape_cast %90 : vector<1x8x8x16xf32> to vector<8x8x16xf32>
    %92 = vector.shape_cast %89 : vector<8x8x16xf32> to vector<1x8x8x16xf32>
    tpu.vector_store %arg6[%c0_62, %c0_63, %c0_64, %c0_65], %92 {strides = array<i32>} : memref<1x8x8x16xf32, #tpu.memory_space<vmem>>, vector<1x8x8x16xf32>,
    return
  }
  func.func @transform_0(%arg0: i32) -> (i32, i32, i32) {
    %c0_i32 = arith.constant 0 : i32
    %c0_i32_0 = arith.constant 0 : i32
    %c0_i32_1 = arith.constant 0 : i32
    return %arg0, %c0_i32, %c0_i32_0 : i32, i32, i32
  }
  func.func @transform_1(%arg0: i32) -> (i32, i32, i32) {
    %c0_i32 = arith.constant 0 : i32
    %c0_i32_0 = arith.constant 0 : i32
    %c0_i32_1 = arith.constant 0 : i32
    %c0_i32_2 = arith.constant 0 : i32
    return %c0_i32, %c0_i32_0, %c0_i32_1 : i32, i32, i32
  }
  func.func @transform_2(%arg0: i32) -> (i32, i32) {
    %c0_i32 = arith.constant 0 : i32
    %c0_i32_0 = arith.constant 0 : i32
    %c0_i32_1 = arith.constant 0 : i32
    return %c0_i32, %c0_i32_0 : i32, i32
  }
  func.func @transform_3(%arg0: i32) -> (i32, i32, i32) {
    %c0_i32 = arith.constant 0 : i32
    %c0_i32_0 = arith.constant 0 : i32
    %c0_i32_1 = arith.constant 0 : i32
    %c0_i32_2 = arith.constant 0 : i32
    return %c0_i32, %c0_i32_0, %c0_i32_1 : i32, i32, i32
  }
  func.func @transform_4(%arg0: i32) -> (i32, i32) {
    %c0_i32 = arith.constant 0 : i32
    %c0_i32_0 = arith.constant 0 : i32
    %c0_i32_1 = arith.constant 0 : i32
    return %c0_i32, %c0_i32_0 : i32, i32
  }
  func.func @transform_5(%arg0: i32) -> (i32, i32, i32, i32) {
    %c0_i32 = arith.constant 0 : i32
    %c0_i32_0 = arith.constant 0 : i32
    %c0_i32_1 = arith.constant 0 : i32
    %c0_i32_2 = arith.constant 0 : i32
    return %arg0, %c0_i32, %c0_i32_0, %c0_i32_1 : i32, i32, i32, i32
  }
}

</mosaic_0001>

<bundles_post_ra>
// kernel: tpu_custom_call.1
= control target key start
LH: loop header
LB: loop body
LE: loop exit
PB: predicated region body
PF: predicated region fallthrough
CT: control target
= control target key end

     0   :  { %10 = vsyncpa [#allocation5], 0  ;;  %s7522_s0 = inlined_call_operand.vmem [shape: bf16[2,288,12], index: 0, kind: input, shape index: {}]   ;;  %s7523_s1 = inlined_call_operand.vmem [shape: bf16[3,12,16], index: 1, kind: input, shape index: {}]   ;;  %s7524_s2 = inlined_call_operand.vmem [shape: f32[1,16], index: 2, kind: input, shape index: {}]   ;;  %s7525_s3 = inlined_call_operand.vmem [shape: bf16[3,48,16], index: 3, kind: input, shape index: {}]   ;;  %s7526_s4 = inlined_call_operand.vmem [shape: f32[1,16], index: 4, kind: input, shape index: {}]   ;;  %s7527_s5 = inlined_call_operand.hbm [shape: f32[2,8,8,16], index: 5, kind: output, shape index: {}]  }
   0x1   :  { %12 = vsyncpa [#allocation5 + $0x1], 0  ;;  %s5242_s18 = smov 0   ;;  %s5244_s19 = smov 0  }
   0x2   :  { %s5246_s20 = smov 0   ;;  %s5248_s21 = smov 0  }
   0x3 LB: > { %s5263_s22 = sadd.s32 4294967295, %s5203_s21   ;;  %s4264_s23 = sadd.s32 4294967294, %s5203_s21   ;;  %s5203_s21 = sphi %s5248_s21, %s7857_s21   ;;  %s5199_s20 = sphi %s5246_s20, %s7856_s20   ;;  %s5195_s19 = sphi %s5244_s19, %s7855_s19   ;;  %s5191_s18 = sphi %s5242_s18, %s7854_s18  }
   0x4   : > { %s5267_s24 = sadd.s32 1, %s5203_s21   ;;  %s135_s25 = sadd.s32 1, %s5199_s20 }
   0x5   : > { %s132_s26 = ssub.s32 %s5203_s21, %s5267_s24  ;;  %p145_p0 = scmp.ne.s32.totalorder %s5199_s20, %s5195_s19 }
   0x6   : > { %p133_p1 = scmp.eq.s32.totalorder %s132_s26, 0  ;;  %p146_p2 = scmp.eq.s32.totalorder %s5263_s22, 1 }
   0x7   : > { %p151_p3 = scmp.ne.s32.totalorder %s5195_s19, %s5191_s18  ;;  %p152_p4 = scmp.eq.s32.totalorder %s4264_s23, 1 }
   0x8   : > { %s5278_s27 = scalar_select %p133_p1, %s5199_s20, %s135_s25  }
   0x9   : > { %p5280_p5 = por %p146_p2, %p145_p0  ;;  %p5284_p6 = por %p152_p4, %p151_p3 }
   0xa   : > { %p4267_p7 = scmp.ge.s32.totalorder %s5203_s21, 1  ;;  %p190_p8 = scmp.lt.s32.totalorder %s5203_s21, 3 }
   0xc   : > { %p191_p9 = pnand %p4267_p7, %p190_p8 }
   0xe   : > { %194 = sbr.rel (%p191_p9) target bundleno = 880 (0x370), region = 40 }
  0x13   : > { %v5065_v0 = vld [vmem:[%s7523_s1 + $0x8] sm:$0x3f]   ;;  %vm397_vm0 = vcmask 1045504   ;;  %p218_p10 = scmp.lt.s32.totalorder %s5263_s22, 1  ;;  %v5066_v2 = vld [vmem:[%s7523_s1] sm:$0x3f]   ;;  %v1174_v57 = vlaneseq }
  0x14   : > { %5016 = vmatprep.subr.msk.bf16.mxu0 %vm397_vm0, %v5065_v0  ;;  %v399_v1 = vsel %vm397_vm0, %v5065_v0, 0  ;;  %v5069_v3 = vld [vmem:[%s7523_s1 + $0x10] sm:$0x3f]   ;;  %5017 = vmatprep.subr.msk.bf16.mxu1 %vm397_vm0, %v5066_v2  ;;  %v576_v4 = vsel %vm397_vm0, %v5066_v2, 0  ;;  %vm348_vm1 = vcmask 97280   ;;  %s5206_s23 = smov 16  }
  0x15   : > { %4801 = vmatpush3.bf16.msra.mxu0 %v399_v1  ;;  %s219_s9 = scalar_select %p218_p10, %s5263_s22, 1  ;;  %4835 = vmatpush3.bf16.msra.mxu1 %v576_v4  ;;  %v908_v8 = vsel %vm397_vm0, %v5069_v3, 0  ;;  %v5437_v62 = vshrl.u32 %v1174_v57, 7 }
  0x16   : > { %5018 = vmatprep.subr.msk.bf16.mxu0 %vm397_vm0, %v5069_v3  ;;  %s5207_s25 = smov 32   ;;  %s215_s8 = sand.u32 1, %s5195_s19  }
  0x17   : > { %s5019_s12 = smul.u32 144, %s219_s9  ;;  %v1177_v3 = vadd.s32 16, %v5437_v62  ;;  %v1178_v4 = vadd.s32 24, %v5437_v62  ;;  %v1184_v57 = vadd.s32 72, %v5437_v62  ;;  %s4268_s9 = sshll.u32 %s215_s8, 6 }
  0x18   : > { %s7405_s10 = scalar_lea.vmem [#allocation4], %s4268_s9  ;;  %s4691_s11 = sshll.u32 %s5263_s22, 10 }
  0x19   : > { %s5309_s15 = scalar_lea.vmem %s7522_s0, %s5019_s12  ;;  %s4202_s12 = sshll.u32 %s7405_s10, 4  ;;  %s7476_s12 = int_to_ptr.vmem [resolvable:$true] %s4202_s12 }
  0x1a   : > { %v5067_v5 = vld [vmem:[%s5309_s15 + $0x8] sm:$0xff]   ;;  %v5068_v6 = vld [vmem:[%s5309_s15] sm:$0xff]   ;;  %v5070_v7 = vld [vmem:[%s5309_s15 + $0x10] sm:$0xff]   ;;  %s7482_s16 = scalar_lea.sflag [#allocation5], %s215_s8  ;;  %s5143_s22 = scalar_lea.vmem %s7476_s12, 1024 }
  0x1b   : > { %4802 = vmatprep.mubr.msk.bf16.mxu0 %vm348_vm1, %v5067_v5  ;;  %4836 = vmatprep.mubr.msk.bf16.mxu1 %vm348_vm1, %v5068_v6  ;;  %v5071_v9 = vld [vmem:[%s5309_s15 + $0x18] sm:$0xff]   ;;  %v5072_v10 = vld [vmem:[%s5309_s15 + $0x20] sm:$0xff]   ;;  %v5073_v11 = vld [vmem:[%s5309_s15 + $0x28] sm:$0xff]   ;;  %p5144_p11 = scmp.ne.s32.totalorder %s7476_s12, %s5143_s22  ;;  %s5209_s17 = smov [#allocation4]  }
  0x1c   : > { %4803 = vmatmul.mubr.msk.bf16.vlgmr.msra.gmra.mxu0 %vm348_vm1, %v5070_v7  ;;  %4837 = vmatmul.mubr.msk.bf16.vlgmr.msra.gmra.mxu1 %vm348_vm1, %v5067_v5  ;;  %v5074_v12 = vld [vmem:[%s5309_s15 + $0x30] sm:$0xff]   ;;  %v5075_v13 = vld [vmem:[%s5309_s15 + $0x38] sm:$0xff]   ;;  %v5076_v14 = vld [vmem:[%s5309_s15 + $0x40] sm:$0xff]  }
  0x1d   : > { %4869 = vmatpush3.bf16.msra.mxu0 %v908_v8  ;;  %4806 = vmatprep.mubr.msk.bf16.mxu0 %vm348_vm1, %v5071_v9  ;;  %v5077_v15 = vld [vmem:[%s5309_s15 + $0x48] sm:$0xff]   ;;  %v5078_v16 = vld [vmem:[%s5309_s15 + $0x50] sm:$0xff]   ;;  %v5079_v17 = vld [vmem:[%s5309_s15 + $0x58] sm:$0xff]   ;;  %p5145_p12 = pnand %p5144_p11, %p5280_p5 }
  0x1e   : > { %4840 = vmatprep.mubr.msk.bf16.mxu1 %vm348_vm1, %v5070_v7  ;;  %v5080_v18 = vld [vmem:[%s5309_s15 + $0x60] sm:$0xff]   ;;  %v5081_v19 = vld [vmem:[%s5309_s15 + $0x68] sm:$0xff]   ;;  %v5082_v20 = vld [vmem:[%s5309_s15 + $0x70] sm:$0xff]  }
  0x1f   : > { %v5083_v21 = vld [vmem:[%s5309_s15 + $0x78] sm:$0xff]   ;;  %v5084_v22 = vld [vmem:[%s5309_s15 + $0x80] sm:$0xff]   ;;  %v5085_v23 = vld [vmem:[%s5309_s15 + $0x10] sm:$0xff]   ;;  %p5146_p13 = pneg %p5145_p12 }
  0x20   : > { %v5086_v24 = vld [vmem:[%s5309_s15 + $0x18] sm:$0xff]   ;;  %v5087_v25 = vld [vmem:[%s5309_s15 + $0x20] sm:$0xff]   ;;  %v5088_v26 = vld [vmem:[%s5309_s15 + $0x28] sm:$0xff]  }
  0x21   : > { %v5089_v27 = vld [vmem:[%s5309_s15 + $0x30] sm:$0xff]   ;;  %v5090_v28 = vld [vmem:[%s5309_s15 + $0x38] sm:$0xff]   ;;  %v5091_v29 = vld [vmem:[%s5309_s15 + $0x40] sm:$0xff]  }
  0x22   : > { %v5092_v30 = vld [vmem:[%s5309_s15 + $0x48] sm:$0xff]   ;;  %v5093_v31 = vld [vmem:[%s5309_s15 + $0x50] sm:$0xff]   ;;  %v5094_v32 = vld [vmem:[%s5309_s15 + $0x58] sm:$0xff]  }
  0x23   : > { %v5095_v33 = vld [vmem:[%s5309_s15 + $0x60] sm:$0xff]   ;;  %v5096_v34 = vld [vmem:[%s5309_s15 + $0x68] sm:$0xff]   ;;  %v5097_v35 = vld [vmem:[%s5309_s15 + $0x70] sm:$0xff]  }
  0x24   : > { %4807 = vmatmul.mubr.msk.bf16.gmra.mxu0 %vm348_vm1, %v5072_v10  ;;  %4841 = vmatmul.mubr.msk.bf16.gmra.mxu1 %vm348_vm1, %v5071_v9  ;;  %v5098_v36 = vld [vmem:[%s5309_s15 + $0x78] sm:$0xff]   ;;  %v5099_v37 = vld [vmem:[%s5309_s15 + $0x80] sm:$0xff]   ;;  %v5100_v38 = vld [vmem:[%s5309_s15 + $0x88] sm:$0xff]   ;;  %v1225_v9 = vand.u32 15, %v1177_v3  ;;  %s7474_s15 = scalar_lea.hbm %s7527_s5, %s4691_s11 }
  0x25   : > { %4810 = vmatprep.mubr.msk.bf16.mxu0 %vm348_vm1, %v5073_v11  ;;  %4844 = vmatprep.mubr.msk.bf16.mxu1 %vm348_vm1, %v5072_v10  ;;  %v1211_v10 = vand.u32 15, %v5437_v62 }
  0x26   : > { %vm5470_vm2 = vcmp.ne.s32.totalorder %v1225_v9, 0 }
  0x27   : > { %vm5474_vm3 = vcmp.ne.s32.totalorder %v1211_v10, 0 }
  0x2c   : > { %4811 = vmatmul.mubr.msk.bf16.gmra.mxu0 %vm348_vm1, %v5074_v12  ;;  %4845 = vmatmul.mubr.msk.bf16.gmra.mxu1 %vm348_vm1, %v5073_v11  ;;  %v1232_v11 = vand.u32 15, %v1178_v4 }
  0x2d   : > { %4814 = vmatprep.mubr.msk.bf16.mxu0 %vm348_vm1, %v5075_v13  ;;  %4848 = vmatprep.mubr.msk.bf16.mxu1 %vm348_vm1, %v5074_v12 }
  0x2e   : > { %vm5478_vm4 = vcmp.ne.s32.totalorder %v1232_v11, 15 }
  0x34   : > { %4815 = vmatmul.mubr.msk.bf16.gmra.mxu0 %vm348_vm1, %v5076_v14  ;;  %4849 = vmatmul.mubr.msk.bf16.gmra.mxu1 %vm348_vm1, %v5075_v13 }
  0x35   : > { %4818 = vmatprep.mubr.msk.bf16.mxu0 %vm348_vm1, %v5077_v15  ;;  %4852 = vmatprep.mubr.msk.bf16.mxu1 %vm348_vm1, %v5076_v14  ;;  %v1176_v14 = vadd.s32 8, %v5437_v62 }
  0x3c   : > { %4819 = vmatmul.mubr.msk.bf16.gmra.mxu0 %vm348_vm1, %v5078_v16  ;;  %4853 = vmatmul.mubr.msk.bf16.gmra.mxu1 %vm348_vm1, %v5077_v15  ;;  %v1181_v15 = vadd.s32 48, %v5437_v62 }
  0x3d   : > { %4822 = vmatprep.mubr.msk.bf16.mxu0 %vm348_vm1, %v5079_v17  ;;  %4856 = vmatprep.mubr.msk.bf16.mxu1 %vm348_vm1, %v5078_v16  ;;  %v1179_v16 = vadd.s32 32, %v5437_v62 }
  0x44   : > { %4823 = vmatmul.mubr.msk.bf16.gmra.mxu0 %vm348_vm1, %v5080_v18  ;;  %4857 = vmatmul.mubr.msk.bf16.gmra.mxu1 %vm348_vm1, %v5079_v17  ;;  %v1182_v17 = vadd.s32 56, %v5437_v62 }
  0x45   : > { %4826 = vmatprep.mubr.msk.bf16.mxu0 %vm348_vm1, %v5081_v19  ;;  %4860 = vmatprep.mubr.msk.bf16.mxu1 %vm348_vm1, %v5080_v18 }
  0x4c   : > { %4827 = vmatmul.mubr.msk.bf16.gmra.mxu0 %vm348_vm1, %v5082_v20  ;;  %4861 = vmatmul.mubr.msk.bf16.gmra.mxu1 %vm348_vm1, %v5081_v19 }
  0x4d   : > { %4830 = vmatprep.mubr.msk.bf16.mxu0 %vm348_vm1, %v5083_v21  ;;  %4864 = vmatprep.mubr.msk.bf16.mxu1 %vm348_vm1, %v5082_v20 }
  0x54   : > { %4831 = vmatmul.mubr.msk.bf16.gmra.mxu0 %vm348_vm1, %v5084_v22  ;;  %4865 = vmatmul.mubr.msk.bf16.gmra.mxu1 %vm348_vm1, %v5083_v21 }
  0x55   : > { %4870 = vmatprep.mubr.msk.bf16.mxu0 %vm348_vm1, %v5085_v23 }
  0x5c   : > { %4871 = vmatmul.mubr.msk.bf16.vlgmr.msra.gmra.mxu0 %vm348_vm1, %v5086_v24 }
  0x5d   : > { %4874 = vmatprep.mubr.msk.bf16.mxu0 %vm348_vm1, %v5087_v25  ;;  %v1218_v25 = vand.u32 15, %v1176_v14 }
  0x5f   : > { %vm1688_vm5 = vcmp.ne.s32.totalorder %v1218_v25, 15  ;;  %v1187_v25 = vadd.s32 96, %v5437_v62 }
  0x64   : > { %4875 = vmatmul.mubr.msk.bf16.gmra.mxu0 %vm348_vm1, %v5088_v26  ;;  %v1253_v26 = vand.u32 15, %v1181_v15 }
  0x65   : > { %4878 = vmatprep.mubr.msk.bf16.mxu0 %vm348_vm1, %v5089_v27  ;;  %v1239_v27 = vand.u32 15, %v1179_v16 }
  0x66   : > { %vm5514_vm6 = vcmp.ne.s32.totalorder %v1253_v26, 0  ;;  %v1190_v26 = vadd.s32 120, %v5437_v62 }
  0x67   : > { %vm5518_vm7 = vcmp.ne.s32.totalorder %v1239_v27, 0  ;;  %v1188_v27 = vadd.s32 104, %v5437_v62 }
  0x6c   : > { %4879 = vmatmul.mubr.msk.bf16.gmra.mxu0 %vm348_vm1, %v5090_v28  ;;  %v1260_v28 = vand.u32 15, %v1182_v17  ;;  %v1189_v17 = vadd.s32 112, %v5437_v62 }
  0x6d   : > { %4882 = vmatprep.mubr.msk.bf16.mxu0 %vm348_vm1, %v5091_v29  ;;  %v1180_v29 = vadd.s32 40, %v5437_v62 }
  0x6e   : > { %vm5522_vm8 = vcmp.ne.s32.totalorder %v1260_v28, 15  ;;  %v1309_v10 = vand.u32 15, %v1189_v17  ;;  %v7612_v17 = vmov 0.0  }
  0x6f   : > { %v1246_v14 = vand.u32 15, %v1180_v29  ;;  %v1193_v29 = vadd.s32 144, %v5437_v62 }
  0x70   : > { %vm1605_vm14 = vcmp.ne.s32.totalorder %v1309_v10, 0 }
  0x71   : > { %vm5559_vm9 = vcmp.ne.s32.totalorder %v1246_v14, 15  ;;  %v1302_v14 = vand.u32 15, %v1188_v27 }
  0x74   : > { %4883 = vmatmul.mubr.msk.bf16.gmra.mxu0 %vm348_vm1, %v5092_v30  ;;  %v1185_v30 = vadd.s32 80, %v5437_v62 }
  0x75   : > { %4886 = vmatprep.mubr.msk.bf16.mxu0 %vm348_vm1, %v5093_v31  ;;  %v1183_v31 = vadd.s32 64, %v5437_v62 }
  0x76   : > { %v1281_v15 = vand.u32 15, %v1185_v30  ;;  %v1191_v30 = vadd.s32 128, %v5437_v62 }
  0x77   : > { %v1267_v16 = vand.u32 15, %v1183_v31 }
  0x78   : > { %vm5563_vm10 = vcmp.ne.s32.totalorder %v1281_v15, 0  ;;  %v1337_v15 = vand.u32 15, %v1193_v29  ;;  %v1195_v29 = vadd.s32 160, %v5437_v62 }
  0x79   : > { %vm5567_vm11 = vcmp.ne.s32.totalorder %v1267_v16, 0  ;;  %v1192_v16 = vadd.s32 136, %v5437_v62 }
  0x7c   : > { %4887 = vmatmul.mubr.msk.bf16.gmra.mxu0 %vm348_vm1, %v5094_v32 }
  0x7d   : > { %4890 = vmatprep.mubr.msk.bf16.mxu0 %vm348_vm1, %v5095_v33 }
  0x84   : > { %4891 = vmatmul.mubr.msk.bf16.gmra.mxu0 %vm348_vm1, %v5096_v34  ;;  %v1186_v34 = vadd.s32 88, %v5437_v62 }
  0x85   : > { %4894 = vmatprep.mubr.msk.bf16.mxu0 %vm348_vm1, %v5097_v35  ;;  %v7528_v35 = vmov 0.0  }
  0x86   : > { %v1288_v22 = vand.u32 15, %v1186_v34  ;;  %v5535_v28 = vsel %vm1688_vm5, 1.0, %v7528_v35  ;;  %v5546_v34 = vsel %vm5514_vm6, 1.0, %v7528_v35 }
  0x87   : > { %7597 = vst [vmem:[#allocation13_spill] sm:$0xff] %v5535_v28  ;;  %7600 = vst [vmem:[#allocation16_spill] sm:$0xff] %v5546_v34  ;;  %v1194_v28 = vadd.s32 152, %v5437_v62 }
  0x88   : > { %vm1698_vm12 = vcmp.ne.s32.totalorder %v1288_v22, 15 }
  0x89   : > { %v1344_v22 = vand.u32 15, %v1194_v28  ;;  %v5601_v27 = vsel %vm1698_vm12, 1.0, %v7612_v17 }
  0x8a   : > { %7616 = vst [vmem:[#allocation23_spill] sm:$0xff] %v5601_v27  ;;  %v1330_v27 = vand.u32 15, %v1192_v16  ;;  %v1201_v16 = vadd.s32 208, %v5437_v62 }
  0x8c   : > { %4895 = vmatmul.mubr.msk.bf16.gmra.mxu0 %vm348_vm1, %v5098_v36  ;;  %v5497_v36 = vsel %vm5470_vm2, 1.0, %v7528_v35  ;;  %vm5617_vm2 = vcmp.ne.s32.totalorder %v1337_v15, 0  ;;  %vm5665_vm5 = vcmp.ne.s32.totalorder %v1330_v27, 15  ;;  %v1393_v27 = vand.u32 15, %v1201_v16 }
  0x8d   : > { %4898 = vmatprep.mubr.msk.bf16.mxu0 %vm348_vm1, %v5099_v37  ;;  %7585 = vst [vmem:[#allocation7_spill] sm:$0xff] %v5497_v36  ;;  %v5502_v37 = vsel %vm5474_vm3, 1.0, %v7528_v35  ;;  %v5551_v36 = vsel %vm5518_vm7, 1.0, %v7528_v35 }
  0x8e   : > { %7586 = vst [vmem:[#allocation8_spill] sm:$0xff] %v5502_v37  ;;  %7601 = vst [vmem:[#allocation17_spill] sm:$0xff] %v5551_v36 }
  0x94   : > { %4899 = vmatmul.mubr.msk.bf16.gmra.mxu0 %vm348_vm1, %v5100_v38  ;;  %v5507_v38 = vsel %vm5478_vm4, 1.0, %v7528_v35  ;;  %vm5613_vm1 = vcmp.ne.s32.totalorder %v1302_v14, 15  ;;  %vm1706_vm4 = vcmp.ne.s32.totalorder %v1344_v22, 15  ;;  %v1196_v14 = vadd.s32 168, %v5437_v62 }
  0x95   : > { %7587 = vst [vmem:[#allocation9_spill] sm:$0xff] %v5507_v38  ;;  %v1274_v38 = vand.u32 15, %v1184_v57  ;;  %v5556_v57 = vsel %vm5522_vm8, 1.0, %v7528_v35  ;;  %v1295_v35 = vand.u32 15, %v1187_v25  ;;  %v1197_v25 = vadd.s32 176, %v5437_v62 }
  0x96   : > { %7602 = vst [vmem:[#allocation18_spill] sm:$0xff] %v5556_v57  ;;  %v1316_v57 = vand.u32 15, %v1190_v26  ;;  %v5598_v26 = vsel %vm5567_vm11, 1.0, %v7612_v17  ;;  %v5650_v22 = vsel %vm5613_vm1, 1.0, %v7612_v17  ;;  %v1358_v10 = vand.u32 15, %v1196_v14 }
  0x97   : > { %vm5575_vm13 = vcmp.ne.s32.totalorder %v1274_v38, 15  ;;  %v5592_v38 = vsel %vm5563_vm10, 1.0, %v7612_v17  ;;  %7615 = vst [vmem:[#allocation22_spill] sm:$0xff] %v5598_v26  ;;  %vm1603_vm15 = vcmp.ne.s32.totalorder %v1295_v35, 0  ;;  %v1198_v26 = vadd.s32 184, %v5437_v62  ;;  %7627 = vst [vmem:[#allocation28_spill] sm:$0xff] %v5650_v22 }
  0x98   : > { %7614 = vst [vmem:[#allocation21_spill] sm:$0xff] %v5592_v38  ;;  %v5611_v28 = vsel %vm5575_vm13, 1.0, %v7612_v17  ;;  %vm1702_vm0 = vcmp.ne.s32.totalorder %v1316_v57, 15  ;;  %v5629_v35 = vsel %vm1605_vm14, 1.0, %v7612_v17  ;;  %v1365_v57 = vand.u32 15, %v1197_v25 }
  0x99   : > { %7617 = vst [vmem:[#allocation24_spill] sm:$0xff] %v5611_v28  ;;  %7624 = vst [vmem:[#allocation25_spill] sm:$0xff] %v5629_v35  ;;  %v5633_v15 = vsel %vm1603_vm15, 1.0, %v7612_v17  ;;  %v1351_v28 = vand.u32 15, %v1195_v29  ;;  %v5655_v25 = vsel %vm5617_vm2, 1.0, %v7612_v17  ;;  %v1372_v34 = vand.u32 15, %v1198_v26 }
  0x9a   : > { %7625 = vst [vmem:[#allocation26_spill] sm:$0xff] %v5633_v15  ;;  %7628 = vst [vmem:[#allocation29_spill] sm:$0xff] %v5655_v25  ;;  %v1199_v22 = vadd.s32 192, %v5437_v62  ;;  %vm1613_vm6 = vcmp.ne.s32.totalorder %v1365_v57, 0  ;;  %v1205_v26 = vadd.s32 240, %v5437_v62  ;;  %v1203_v14 = vadd.s32 224, %v5437_v62 }
  0x9b   : > { %vm5677_vm7 = vcmp.ne.s32.totalorder %v1351_v28, 0  ;;  %v5698_v28 = vsel %vm5665_vm5, 1.0, %v7612_v17  ;;  %v5702_v16 = vsel %vm1613_vm6, 1.0, %v7612_v17  ;;  %vm5704_vm8 = vcmp.ne.s32.totalorder %v1372_v34, 15 }
  0x9c   : > { %7637 = vst [vmem:[#allocation34_spill] sm:$0xff] %v5698_v28  ;;  %7638 = vst [vmem:[#allocation35_spill] sm:$0xff] %v5702_v16  ;;  %vm5720_vm10 = vcmp.ne.s32.totalorder %v1393_v27, 0  ;;  %v1421_v28 = vand.u32 15, %v1205_v26  ;;  %vm2646_vm2 = vsmask.f32 3328 }
  0x9d   : > { %vm1787_vm5 = vsmask.f32 256  ;;  %vm2153_vm6 = vsmask.f32 4368 }
  0x9e   : > { %vm5776_vm14 = vcmp.ne.s32.totalorder %v1421_v28, 0 }
  0xdc   : > { %v5393_v39 = vpop.f32.mrf.mxu0  ;;  %v5395_v40 = vpop.f32.mrf.mxu1 }
  0xdd   : > { %v5641_v38 = vadd.f32 %v5395_v40, %v5393_v39  ;;  %v5663_v39 = vsel %vm1706_vm4, 1.0, %v7612_v17  ;;  %v5718_v40 = vsel %vm5677_vm7, 1.0, %v7612_v17  ;;  %vm1992_vm7 = vcmask 257152  }
  0xde   : > { %v5397_v41 = vpop.f32.mrf.mxu0  ;;  %v5399_v42 = vpop.f32.mrf.mxu1  ;;  %7630 = vst [vmem:[#allocation31_spill] sm:$0xff] %v5663_v39  ;;  %v1200_v39 = vadd.s32 200, %v5437_v62 }
  0xdf   : > { %v5672_v9 = vadd.f32 %v5399_v42, %v5397_v41 }
  0xe0   : > { %v5401_v43 = vpop.f32.mrf.mxu0  ;;  %v5403_v44 = vpop.f32.mrf.mxu1 }
  0xe1   : > { %v5685_v15 = vadd.f32 %v5403_v44, %v5401_v43  ;;  %v1379_v44 = vand.u32 15, %v1199_v22  ;;  %v1386_v22 = vand.u32 15, %v1200_v39  ;;  %v1407_v39 = vand.u32 15, %v1203_v14 }
  0xe2   : > { %v5405_v45 = vpop.f32.mrf.mxu0  ;;  %v5407_v46 = vpop.f32.mrf.mxu1 }
  0xe3   : > { %v5689_v41 = vadd.f32 %v5407_v46, %v5405_v45  ;;  %v1206_v45 = vadd.s32 248, %v5437_v62  ;;  %vm5749_vm11 = vcmp.ne.s32.totalorder %v1379_v44, 0  ;;  %vm5772_vm13 = vcmp.ne.s32.totalorder %v1386_v22, 15 }
  0xe4   : > { %v5409_v47 = vpop.f32.mrf.mxu0  ;;  %v5411_v48 = vpop.f32.mrf.mxu1  ;;  %v5796_v28 = vsel %vm5749_vm11, 1.0, %v7612_v17  ;;  %vm1619_vm15 = vcmp.ne.s32.totalorder %v1407_v39, 0 }
  0xe5   : > { %v5711_v46 = vadd.f32 %v5411_v48, %v5409_v47 }
  0xe6   : > { %v5413_v49 = vpop.f32.mrf.mxu0  ;;  %v5415_v50 = vpop.f32.mrf.mxu1 }
  0xe7   : > { %v5727_v47 = vadd.f32 %v5415_v50, %v5413_v49 }
  0xe8   : > { %v5417_v51 = vpop.f32.mrf.mxu0  ;;  %v5419_v52 = vpop.f32.mrf.mxu1 }
  0xe9   : > { %v5731_v48 = vadd.f32 %v5419_v52, %v5417_v51  ;;  %v1428_v51 = vand.u32 15, %v1206_v45 }
  0xea   : > { %v5421_v53 = vpop.f32.mrf.mxu0  ;;  %v5423_v54 = vpop.f32.mrf.mxu1 }
  0xec   : > { %v5425_v55 = vpop.f32.mrf.mxu0  ;;  %v5427_v56 = vpop.f32.mrf.mxu1 }
  0xed   : > { %v5755_v52 = vadd.f32 %v5427_v56, %v5425_v55 }
  0xee   : > { %v5429_v58 = vpop.f32.mrf.mxu0  ;;  %v5431_v59 = vpop.f32.mrf.mxu1 }
  0xef   : > { %v5759_v27 = vadd.f32 %v5431_v59, %v5429_v58 }
  0xf0   : > { %v5433_v60 = vpop.f32.mrf.mxu0  ;;  %v5435_v61 = vpop.f32.mrf.mxu1 }
  0xf2   : > { %v5439_v63 = vpop.f32.mrf.mxu0  ;;  %v5441_v0 = vpop.f32.mrf.mxu1 }
  0xf3   : > { %v5782_v58 = vadd.f32 %v5441_v0, %v5439_v63 }
  0xf4   : > { %v5443_v1 = vpop.f32.mrf.mxu0  ;;  %v5445_v2 = vpop.f32.mrf.mxu1 }
  0xf5   : > { %v5786_v59 = vadd.f32 %v5445_v2, %v5443_v1 }
  0xf6   : > { %v5449_v5 = vpop.f32.mrf.mxu0  ;;  %v5451_v6 = vpop.f32.mrf.mxu1 }
  0xf7   : > { %v5800_v63 = vadd.f32 %v5451_v6, %v5449_v5  ;;  %v5817_v5 = vsel %vm5772_vm13, 1.0, %v7612_v17  ;;  %v5822_v6 = vsel %vm5776_vm14, 1.0, %v7612_v17  ;;  %vm3072_vm14 = vcmask 388352  }
  0xf8   : > { %v5453_v7 = vpop.f32.mrf.mxu0  ;;  %v5455_v8 = vpop.f32.mrf.mxu1  ;;  %7650 = vst [vmem:[#allocation37_spill] sm:$0xff] %v5817_v5  ;;  %7651 = vst [vmem:[#allocation38_spill] sm:$0xff] %v5822_v6  ;;  %v7689_v5 = vld [vmem:[#allocation23_spill] sm:$0xff] }
  0xf9   : > { %v5808_v2 = vadd.f32 %v5455_v8, %v5453_v7  ;;  %v5827_v8 = vsel %vm1619_vm15, 1.0, %v7612_v17  ;;  %vm1792_vm15 = vcmask 388099  }
  0xfa   : > { %v5458_v12 = vpop.f32.mrf.mxu0  ;;  %v5460_v13 = vpop.f32.mrf.mxu1  ;;  %7652 = vst [vmem:[#allocation39_spill] sm:$0xff] %v5827_v8 }
  0xfc   : > { %v5466_v18 = vpop.f32.mrf.mxu0  ;;  %v5468_v19 = vpop.f32.mrf.mxu1 }
  0xfe   : > { %v5482_v23 = vpop.f32.mrf.mxu0  ;;  %v5484_v24 = vpop.f32.mrf.mxu1 }
 0x100   : > { %v5489_v32 = vpop.f32.mrf.mxu0  ;;  %v5491_v33 = vpop.f32.mrf.mxu1 }
 0x101   : > { %v5839_v44 = vadd.f32 %v5491_v33, %v5489_v32 }
 0x102   : > { %v5510_v3 = vpop.f32.mrf.mxu0  ;;  %v5512_v4 = vpop.f32.mrf.mxu1 }
 0x103   : > { %7588 = vst [vmem:[#allocation10_spill] sm:$0xff] %v5512_v4 }
 0x104   : > { %v5527_v20 = vpop.f32.mrf.mxu0  ;;  %v5529_v21 = vpop.f32.mrf.mxu1 }
 0x105   : > { %7595 = vst [vmem:[#allocation11_spill] sm:$0xff] %v5527_v20  ;;  %7596 = vst [vmem:[#allocation12_spill] sm:$0xff] %v5529_v21  ;;  %v1323_v21 = vand.u32 15, %v1191_v30 }
 0x106   : > { %v5539_v31 = vpop.f32.mrf.mxu0  ;;  %v5541_v37 = vpop.f32.mrf.mxu1 }
 0x107   : > { %7598 = vst [vmem:[#allocation14_spill] sm:$0xff] %v5539_v31  ;;  %7599 = vst [vmem:[#allocation15_spill] sm:$0xff] %v5541_v37  ;;  %vm5621_vm3 = vcmp.ne.s32.totalorder %v1323_v21, 0  ;;  %v5636_v21 = vsel %vm1702_vm0, 1.0, %v7612_v17  ;;  %vm1718_vm0 = vcmp.ne.s32.totalorder %v1428_v51, 15 }
 0x108   : > { %v5571_v36 = vpop.f32.mrf.mxu0  ;;  %v5573_v11 = vpop.f32.mrf.mxu1  ;;  %7626 = vst [vmem:[#allocation27_spill] sm:$0xff] %v5636_v21  ;;  %v5660_v29 = vsel %vm5621_vm3, 1.0, %v7612_v17  ;;  %vm2647_vm3 = vsmask.f32 7440 }
 0x109   : > { %7609 = vst [vmem:[#allocation19_spill] sm:$0xff] %v5573_v11  ;;  %v5587_v11 = vsel %vm5559_vm9, 1.0, %v7612_v17  ;;  %7629 = vst [vmem:[#allocation30_spill] sm:$0xff] %v5660_v29  ;;  %v1202_v29 = vadd.s32 216, %v5437_v62  ;;  %vm1708_vm9 = vcmp.ne.s32.totalorder %v1358_v10, 15 }
 0x10a   : > { %v5580_v20 = vpop.f32.mrf.mxu0  ;;  %v5582_v4 = vpop.f32.mrf.mxu1  ;;  %7613 = vst [vmem:[#allocation20_spill] sm:$0xff] %v5587_v11  ;;  %v5747_v49 = vsel %vm1708_vm9, 1.0, %v7612_v17  ;;  %v7654_v22 = vld [vmem:[#allocation10_spill] sm:$0xff]  ;;  %vm6064_vm4 = vmor %vm2646_vm2, %vm2647_vm3  ;;  %vm1783_vm3 = vcmask 388096  }
 0x10b   : > { %v1400_v16 = vand.u32 15, %v1202_v29  ;;  %v5740_v29 = vsel %vm5704_vm8, 1.0, %v7612_v17  ;;  %v5846_v39 = vadd.f32 %v7654_v22, %v5510_v3  ;;  %vm2475_vm8 = vcmask 125952   ;;  %vm6665_vm9 = vmor %vm1787_vm5, %vm2153_vm6 }
 0x10c   : > { %v5604_v30 = vpop.f32.mrf.mxu0  ;;  %v5606_v31 = vpop.f32.mrf.mxu1  ;;  %vm2513_vm6 = vcmask 122880  }
 0x10d   : > { %vm1714_vm12 = vcmp.ne.s32.totalorder %v1400_v16, 15  ;;  %v5874_v22 = vadd.f32 %v5606_v31, %v5604_v30 }
 0x10e   : > { %v5626_v37 = vpop.f32.mrf.mxu0  ;;  %v5643_v11 = vpop.f32.mrf.mxu1  ;;  %v5804_v1 = vsel %vm1714_vm12, 1.0, %v7612_v17  ;;  %v7657_v32 = vld [vmem:[#allocation14_spill] sm:$0xff]  ;;  %v7658_v33 = vld [vmem:[#allocation15_spill] sm:$0xff]  ;;  %vm2476_vm12 = vsmask.f32 7938 }
 0x10f   : > { %7649 = vst [vmem:[#allocation36_spill] sm:$0xff] %v5804_v1  ;;  %v5856_v14 = vadd.f32 %v7658_v33, %v7657_v32  ;;  %vm6755_vm13 = vmand %vm2475_vm8, %vm2476_vm12 }
 0x110   : > { %v5645_v35 = vpop.f32.mrf.mxu0  ;;  %v5691_v42 = vpop.f32.mrf.mxu1  ;;  %v7659_v55 = vld [vmem:[#allocation19_spill] sm:$0xff] }
 0x112   : > { %v5674_v25 = vpop.f32.mrf.mxu0  ;;  %v5733_v21 = vpop.f32.mrf.mxu1 }
 0x113   : > { %7633 = vst [vmem:[#allocation32_spill] sm:$0xff] %v5674_v25  ;;  %v1204_v25 = vadd.s32 232, %v5437_v62  ;;  %v5744_v62 = vadd.f32 %v5423_v54, %v5421_v53  ;;  %v5766_v53 = vsel %vm5720_vm10, 1.0, %v7612_v17  ;;  %v5770_v54 = vadd.f32 %v5435_v61, %v5433_v60  ;;  %v5791_v61 = vld [vmem:[%s7524_s2] ss:$0 sm:$0xff] }
 0x114   : > { %v5693_v57 = vpop.f32.mrf.mxu0  ;;  %v4866_v16 = vpop.f32.mrf.mxu1  ;;  %vm1786_vm10 = vcmask 385024  }
 0x115   : > { %7636 = vst [vmem:[#allocation33_spill] sm:$0xff] %v5693_v57  ;;  %v1414_v56 = vand.u32 15, %v1204_v25  ;;  %v5812_v25 = vadd.f32 %v5460_v13, %v5458_v12  ;;  %v5831_v12 = vadd.f32 %v5468_v19, %v5466_v18  ;;  %v5835_v13 = vadd.f32 %v5484_v24, %v5482_v23  ;;  %v7655_v23 = vld [vmem:[#allocation11_spill] sm:$0xff]  ;;  %v7656_v24 = vld [vmem:[#allocation12_spill] sm:$0xff]  ;;  %vm1788_vm11 = vmand %vm1786_vm10, %vm1787_vm5 }
 0x116   : > { %v5713_v57 = vpop.f32.mrf.mxu0  ;;  %v724_v45 = vpop.f32.mrf.mxu1  ;;  %v5852_v51 = vadd.f32 %v7656_v24, %v7655_v23  ;;  %vm3067_vm10 = vcmask 388355  }
 0x117   : > { %vm1716_vm1 = vcmp.ne.s32.totalorder %v1414_v56, 15  ;;  %v5860_v56 = vadd.f32 %v7659_v55, %v5571_v36  ;;  %v5878_v36 = vadd.f32 %v5643_v11, %v5626_v37 }
 0x118   : > { %v5735_v10 = vpop.f32.mrf.mxu0  ;;  %v5863_v3 = vsel %vm1716_vm1, 1.0, %v7612_v17 }
 0x119   : > { %7660 = vst [vmem:[#allocation10_spill] sm:$0xff] %v5863_v3 }
 0x11a   : > { %v5761_v26 = vpop.f32.mrf.mxu0 }
 0x11c   : > { %v4872_v60 = vpop.f32.mrf.mxu0 }
 0x11d   : > { %v1073_v0 = vadd.f32 %v4872_v60, %v5641_v38 }
 0x11e   : > { %v944_v43 = vpop.f32.mrf.mxu0 }
 0x11f   : > { %v1112_v38 = vadd.f32 %v5791_v61, %v1073_v0  ;;  %v1071_v7 = vadd.f32 %v944_v43, %v5672_v9  ;;  %v5842_v9 = vsel %vm1718_vm0, 1.0, %v7612_v17  ;;  %v7661_v0 = vld [vmem:[#allocation7_spill] sm:$0xff]  ;;  %v4867_v17 = vpop.f32.mrf.mxu1  ;;  %vm1793_vm0 = vsmask.f32 7950 }
 0x120   : > { %v4873_v34 = vpop.f32.mrf.mxu0  ;;  %7653 = vst [vmem:[#allocation40_spill] sm:$0xff] %v5842_v9  ;;  %vm1794_vm1 = vmand %vm1792_vm15, %vm1793_vm0 }
 0x121   : > { %v1144_v50 = vmax.f32 %v1112_v38, 0.0  ;;  %v1110_v18 = vadd.f32 %v5791_v61, %v1071_v7  ;;  %v1074_v19 = vadd.f32 %v4873_v34, %v5685_v15  ;;  %v5870_v34 = vadd.f32 %v5582_v4, %v5580_v20  ;;  %v7664_v20 = vld [vmem:[#allocation32_spill] sm:$0xff] }
 0x122   : > { %v947_v60 = vpop.f32.mrf.mxu0  ;;  %v5886_v4 = vadd.f32 %v5691_v42, %v5645_v35  ;;  %v5890_v30 = vadd.f32 %v5733_v21, %v7664_v20  ;;  %v7668_v42 = vld [vmem:[#allocation9_spill] sm:$0xff] }
 0x123   : > { %v2520_v43 = vmul.f32 %v7661_v0, %v1144_v50  ;;  %v1142_v38 = vmax.f32 %v1110_v18, 0.0  ;;  %v1113_v15 = vadd.f32 %v5791_v61, %v1074_v19  ;;  %v1072_v7 = vadd.f32 %v947_v60, %v5689_v41  ;;  %v7663_v19 = vld [vmem:[#allocation8_spill] sm:$0xff] }
 0x124   : > { %v4876_v23 = vpop.f32.mrf.mxu0  ;;  %v5880_v24 = vpack.c.bf16 %v1144_v50, %v1144_v50  ;;  %v7665_v50 = vld [vmem:[#allocation33_spill] sm:$0xff]  ;;  %v5899_v60 = vadd.f32 %v724_v45, %v5713_v57 }
 0x125   : > { %v4661_v18 = vpack.c.bf16 %v2520_v43, %v2520_v43  ;;  %v2518_v32 = vmul.f32 %v7663_v19, %v1142_v38  ;;  %v1145_v41 = vmax.f32 %v1113_v15, 0.0  ;;  %v1111_v33 = vadd.f32 %v5791_v61, %v1072_v7  ;;  %v727_v43 = vpop.f32.mrf.mxu1  ;;  %v7670_v45 = vld [vmem:[#allocation13_spill] sm:$0xff] }
 0x126   : > { %7662 = vst [vmem:[#allocation11_spill] sm:$0xff] %v5880_v24  ;;  %v1077_v11 = vadd.f32 %v4876_v23, %v5711_v46  ;;  %1900 = vrot.lane.b32.xlu1 %v5880_v24, %s5206_s23  ;;  %v960_v31 = vpop.f32.mrf.mxu0  ;;  %v4595_v37 = vpack.c.bf16 %v1142_v38, %v1142_v38  ;;  %v5896_v55 = vadd.f32 %v4866_v16, %v7665_v50  ;;  %7667 = vst [vmem:[#allocation14_spill] sm:$0xff] %v5899_v60 }
 0x127   : > { %v4659_v35 = vpack.c.bf16 %v2518_v32, %v2518_v32  ;;  %v2028_v0 = vmul.f32 %v7668_v42, %v1145_v41  ;;  %v1143_v21 = vmax.f32 %v1111_v33, 0.0  ;;  %v2173_v46 = vshrl.u32 %v5880_v24, 16  ;;  %v7678_v24 = vld [vmem:[#allocation17_spill] sm:$0xff] }
 0x128   : > { %7666 = vst [vmem:[#allocation12_spill] sm:$0xff] %v5896_v55  ;;  %v1116_v15 = vadd.f32 %v5791_v61, %v1077_v11  ;;  %v1075_v7 = vadd.f32 %v960_v31, %v5727_v47  ;;  %1896 = vrot.lane.b32.xlu0 %v4595_v37, %s5206_s23  ;;  %v4877_v38 = vpop.f32.mrf.mxu0  ;;  %v2669_v23 = vshll.u32 %v4661_v18, 16  ;;  %v2673_v16 = vshrl.u32 %v4661_v18, 16 }
 0x129   : > { %v2650_v19 = vshll.u32 %v4659_v35, 16  ;;  %v2653_v20 = vshrl.u32 %v4659_v35, 16  ;;  %v5906_v57 = vpack.c.bf16 %v2028_v0, %v2028_v0  ;;  %v2026_v32 = vmul.f32 %v7670_v45, %v1143_v21  ;;  %v7674_v0 = vld [vmem:[#allocation16_spill] sm:$0xff] }
 0x12a   : > { %v1148_v50 = vmax.f32 %v1116_v15, 0.0  ;;  %v1114_v33 = vadd.f32 %v5791_v61, %v1075_v7  ;;  %v963_v42 = vpop.f32.mrf.mxu0  ;;  %v5911_v11 = vadd.f32 %v4867_v17, %v5735_v10  ;;  %v5914_v47 = vadd.f32 %v727_v43, %v5761_v26 }
 0x12b   : > { %7669 = vst [vmem:[#allocation15_spill] sm:$0xff] %v5906_v57  ;;  %v2156_v3 = vshrl.u32 %v4595_v37, 16  ;;  %v2182_v18 = vshrl.u32 %v5906_v57, 16  ;;  %v5918_v35 = vpack.c.bf16 %v2026_v32, %v2026_v32  ;;  %v5921_v45 = vrot.slane %v2173_v46, 7 }
 0x12c   : > { %7671 = vst [vmem:[#allocation19_spill] sm:$0xff] %v5911_v11  ;;  %7672 = vst [vmem:[#allocation7_spill] sm:$0xff] %v5914_v47  ;;  %v2524_v9 = vmul.f32 %v7674_v0, %v1148_v50  ;;  %v4880_v15 = vpop.f32.mrf.mxu0  ;;  %v5923_v7 = vrot.slane %v2669_v23, 5  ;;  %v5925_v8 = vmax.f32 %v1114_v33, 0.0  ;;  %v1078_v10 = vadd.f32 %v4877_v38, %v5731_v48 }
 0x12d   : > { %7673 = vst [vmem:[#allocation8_spill] sm:$0xff] %v5918_v35  ;;  %7675 = vst [vmem:[#allocation32_spill] sm:$0xff] %v5921_v45  ;;  %v5928_v26 = vpack.c.bf16 %v1145_v41, %v1145_v41  ;;  %v5930_v17 = vrot.slane %v2673_v16, 4  ;;  %v5932_v43 = vrot.slane %v2650_v19, 5  ;;  %v5934_v31 = vrot.slane %v2653_v20, 4 }
 0x12e   : > { %v5936_v32 = vrot.slane %v2156_v3, 7  ;;  %v976_v0 = vpop.f32.mrf.mxu0  ;;  %v4665_v46 = vpack.c.bf16 %v2524_v9, %v2524_v9  ;;  %v2522_v23 = vmul.f32 %v7678_v24, %v5925_v8  ;;  %v2159_v45 = vshll.u32 %v4595_v37, 16  ;;  %v7685_v9 = vld [vmem:[#allocation20_spill] sm:$0xff] }
 0x12f   : > { %7676 = vst [vmem:[#allocation33_spill] sm:$0xff] %v5932_v43  ;;  %v1117_v33 = vadd.f32 %v5791_v61, %v1078_v10  ;;  %1902 = vrot.lane.b32.xlu1 %v5928_v26, %s5206_s23  ;;  %v5943_v48 = vrot.slane %v2182_v18, 7  ;;  %v2164_v38 = vshrl.u32 %v5918_v35, 16  ;;  %v1076_v3 = vadd.f32 %v963_v42, %v5744_v62  ;;  %v7681_v42 = vld [vmem:[#allocation18_spill] sm:$0xff] }
 0x130   : > { %7677 = vst [vmem:[#allocation9_spill] sm:$0xff] %v5936_v32  ;;  %v4881_v16 = vpop.f32.mrf.mxu0  ;;  %v5949_v20 = vpack.c.bf16 %v1143_v21, %v1143_v21  ;;  %v1081_v24 = vadd.f32 %v4880_v15, %v5755_v52  ;;  %v5952_v37 = vpack.c.bf16 %v2522_v23, %v2522_v23  ;;  %v5955_v10 = vor.u32 %v2159_v45, %v5936_v32 }
 0x131   : > { %7679 = vst [vmem:[#allocation13_spill] sm:$0xff] %v5943_v48  ;;  %v1149_v19 = vmax.f32 %v1117_v33, 0.0  ;;  %v1115_v18 = vadd.f32 %v5791_v61, %v1076_v3  ;;  %v1079_v41 = vadd.f32 %v976_v0, %v5759_v27  ;;  %v2709_v48 = vshll.u32 %v4665_v46, 16 }
 0x132   : > { %7680 = vst [vmem:[#allocation16_spill] sm:$0xff] %v5955_v10  ;;  %v979_v57 = vpop.f32.mrf.mxu0  ;;  %v2713_v62 = vshrl.u32 %v4665_v46, 16  ;;  %1898 = vrot.lane.b32.xlu0 %v5949_v20, %s5206_s23  ;;  %v1120_v21 = vadd.f32 %v5791_v61, %v1081_v24  ;;  %v5965_v15 = vpack.c.bf16 %v1148_v50, %v1148_v50  ;;  %v5967_v3 = vrot.slane %v2164_v38, 7 }
 0x133   : > { %v2032_v47 = vmul.f32 %v7681_v42, %v1149_v19  ;;  %v1147_v52 = vmax.f32 %v1115_v18, 0.0  ;;  %v1118_v45 = vadd.f32 %v5791_v61, %v1079_v41  ;;  %v1082_v0 = vadd.f32 %v4881_v16, %v5770_v54 }
 0x134   : > { %7682 = vst [vmem:[#allocation17_spill] sm:$0xff] %v5965_v15  ;;  %v4884_v23 = vpop.f32.mrf.mxu0  ;;  %7683 = vst [vmem:[#allocation18_spill] sm:$0xff] %v5967_v3  ;;  %v5972_v46 = vpack.c.bf16 %v1149_v19, %v1149_v19  ;;  %v2693_v42 = vshrl.u32 %v5952_v37, 16  ;;  %v5976_v18 = vmax.f32 %v1120_v21, 0.0  ;;  %v5980_v50 = vrot.slane %v2709_v48, 5  ;;  %v7687_v48 = vld [vmem:[#allocation21_spill] sm:$0xff] }
 0x135   : > { %v5969_v27 = vpack.c.bf16 %v2032_v47, %v2032_v47  ;;  %v2030_v33 = vmul.f32 %v7685_v9, %v1147_v52  ;;  %v5978_v24 = vmax.f32 %v1118_v45, 0.0  ;;  %v5982_v10 = vrot.slane %v2713_v62, 4  ;;  %v7688_v19 = vld [vmem:[#allocation22_spill] sm:$0xff] }
 0x136   : > { %v992_v41 = vpop.f32.mrf.mxu0  ;;  %v2209_v47 = vshrl.u32 %v5965_v15, 16  ;;  %1908 = vrot.lane.b32.xlu0 %v5965_v15, %s5206_s23  ;;  %v1121_v54 = vadd.f32 %v5791_v61, %v1082_v0  ;;  %1910 = vrot.lane.b32.xlu1 %v5972_v46, %s5206_s23  ;;  %v2528_v9 = vmul.f32 %v7687_v48, %v5976_v18  ;;  %v2659_v45 = vshll.u32 %v5949_v20, 16 }
 0x137   : > { %7684 = vst [vmem:[#allocation41_spill] sm:$0xff] %v5969_v27  ;;  %v2218_v38 = vshrl.u32 %v5969_v27, 16  ;;  %v5991_v16 = vpack.c.bf16 %v2030_v33, %v2030_v33  ;;  %v2526_v62 = vmul.f32 %v7688_v19, %v5978_v24  ;;  %v2663_v0 = vshrl.u32 %v5949_v20, 16 }
 0x138   : > { %v4885_v21 = vpop.f32.mrf.mxu0  ;;  %v5999_v32 = vmax.f32 %v1121_v54, 0.0  ;;  %v1080_v35 = vadd.f32 %v979_v57, %v5782_v58  ;;  %v6002_v3 = vrot.slane %v2693_v42, 4  ;;  %v4669_v11 = vpack.c.bf16 %v2528_v9, %v2528_v9 }
 0x139   : > { %7686 = vst [vmem:[#allocation20_spill] sm:$0xff] %v5991_v16  ;;  %v2200_v33 = vshrl.u32 %v5991_v16, 16  ;;  %v6005_v6 = vpack.c.bf16 %v2526_v62, %v2526_v62  ;;  %v6012_v20 = vpack.c.bf16 %v5925_v8, %v5925_v8  ;;  %v1085_v54 = vadd.f32 %v4884_v23, %v5786_v59 }
 0x13a   : > { %v995_v48 = vpop.f32.mrf.mxu0  ;;  %v2036_v19 = vmul.f32 %v7689_v5, %v5999_v32  ;;  %v1119_v60 = vadd.f32 %v5791_v61, %v1080_v35  ;;  %v6015_v58 = vrot.slane %v2218_v38, 7  ;;  %v6018_v42 = vrot.slane %v2209_v47, 7 }
 0x13b   : > { %7690 = vst [vmem:[#allocation21_spill] sm:$0xff] %v6012_v20  ;;  %v2749_v1 = vshll.u32 %v4669_v11, 16  ;;  %1904 = vrot.lane.b32.xlu0 %v6012_v20, %s5206_s23  ;;  %v2753_v8 = vshrl.u32 %v4669_v11, 16  ;;  %v2733_v23 = vshrl.u32 %v6005_v6, 16  ;;  %v1124_v47 = vadd.f32 %v5791_v61, %v1085_v54 }
 0x13c   : > { %7691 = vst [vmem:[#allocation22_spill] sm:$0xff] %v6015_v58  ;;  %7692 = vst [vmem:[#allocation23_spill] sm:$0xff] %v6018_v42  ;;  %v4888_v62 = vpop.f32.mrf.mxu0  ;;  %v6021_v55 = vpack.c.bf16 %v2036_v19, %v2036_v19  ;;  %v6024_v35 = vmax.f32 %v1119_v60, 0.0  ;;  %v6033_v57 = vrot.slane %v2200_v33, 7  ;;  %v7695_v19 = vld [vmem:[#allocation24_spill] sm:$0xff]  ;;  %v2191_v60 = vshrl.u32 %v6012_v20, 16 }
 0x13d   : > { %v6039_v27 = vmax.f32 %v1124_v47, 0.0  ;;  %v6041_v58 = vpack.c.bf16 %v1147_v52, %v1147_v52  ;;  %v1083_v11 = vadd.f32 %v992_v41, %v5800_v63  ;;  %v2676_v54 = vor.u32 %v5930_v17, %v5923_v7  ;;  %v7699_v52 = vld [vmem:[#allocation25_spill] sm:$0xff] }
 0x13e   : > { %7693 = vst [vmem:[#allocation42_spill] sm:$0xff] %v6021_v55  ;;  %v6031_v38 = vpop.f32.mrf.mxu0  ;;  %7694 = vst [vmem:[#allocation43_spill] sm:$0xff] %v6033_v57  ;;  %v2034_v9 = vmul.f32 %v7695_v19, %v6024_v35  ;;  %v6048_v33 = vrot.slane %v2749_v1, 5  ;;  %v2254_v16 = vshrl.u32 %v6021_v55, 16  ;;  %v2679_v19 = vshll.u32 %v5928_v26, 16  ;;  %v5117_v1 = vld [vmem:[%s7525_s3 + $0x38] sm:$0xff]  }
 0x13f   : > { %v1086_v15 = vadd.f32 %v4885_v21, %v5808_v2  ;;  %v6053_v5 = vrot.slane %v2753_v8, 4  ;;  %v6055_v47 = vrot.slane %v2733_v23, 4  ;;  %v2532_v63 = vmul.f32 %v7699_v52, %v6039_v27  ;;  %1906 = vrot.lane.b32.xlu1 %v6041_v58, %s5206_s23 }
 0x140   : > { %v6046_v59 = vpop.f32.mrf.mxu0  ;;  %7696 = vst [vmem:[#allocation24_spill] sm:$0xff] %v6048_v33  ;;  %v1122_v17 = vadd.f32 %v5791_v61, %v1083_v11  ;;  %v6071_v21 = vrot.slane %v2191_v60, 7  ;;  %v2677_v8 = vrot.slane %v2676_v54, 4  ;;  %v2681_v23 = vrot.slane %v2679_v19, 5  ;;  %v7704_v54 = vld [vmem:[#allocation26_spill] sm:$0xff] }
 0x141   : > { %7697 = vst [vmem:[#allocation44_spill] sm:$0xff] %v6053_v5  ;;  %7698 = vst [vmem:[#allocation45_spill] sm:$0xff] %v6055_v47  ;;  %v6073_v52 = vpack.c.bf16 %v2034_v9, %v2034_v9  ;;  %v1125_v11 = vadd.f32 %v5791_v61, %v1086_v15  ;;  %v2661_v42 = vrot.slane %v2659_v45, 5  ;;  %v6078_v57 = vrot.slane %v2254_v16, 7 }
 0x142   : > { %v6068_v41 = vpop.f32.mrf.mxu0  ;;  %v6075_v20 = vmax.f32 %v1122_v17, 0.0  ;;  %v2682_v47 = vsel %vm6064_vm4, %v2677_v8, %v2681_v23  ;;  %v2665_v5 = vrot.slane %v2663_v0, 4  ;;  %v1084_v33 = vadd.f32 %v995_v48, %v5812_v25  ;;  %v5101_v48 = vld [vmem:[%s7525_s3 + $0x28] sm:$0xff]  }
 0x143   : > { %7702 = vst [vmem:[#allocation25_spill] sm:$0xff] %v6073_v52  ;;  %7703 = vst [vmem:[#allocation46_spill] sm:$0xff] %v6078_v57  ;;  %v4673_v2 = vpack.c.bf16 %v2532_v63, %v2532_v63  ;;  %2974 = vrot.lane.b32.xlu0 %v2682_v47, %s5207_s25  ;;  %v6087_v19 = vmax.f32 %v1125_v11, 0.0  ;;  %v2656_v0 = vor.u32 %v5934_v31, %v5932_v43  ;;  %v5102_v47 = vld [vmem:[%s7525_s3 + $0x20] sm:$0xff]   ;;  %v2236_v63 = vshrl.u32 %v6073_v52, 16 }
 0x144   : > { %v2530_v9 = vmul.f32 %v7704_v54, %v6075_v20  ;;  %v6089_v15 = vpop.f32.mrf.mxu0  ;;  %v2666_v16 = vor.u32 %v2665_v5, %v2661_v42  ;;  %v1123_v45 = vadd.f32 %v5791_v61, %v1084_v33  ;;  %v1089_v25 = vadd.f32 %v4888_v62, %v5831_v12  ;;  %v7705_v33 = vld [vmem:[#allocation27_spill] sm:$0xff]  ;;  %4902 = vmatprep.subr.bf16.mxu1 %v5101_v48 }
 0x145   : > { %v2040_v8 = vmul.f32 %v7705_v33, %v6087_v19  ;;  %v2657_v12 = vrot.slane %v2656_v0, 4  ;;  %v2789_v54 = vshll.u32 %v4673_v2, 16  ;;  %v7707_v43 = vshrl.u32 %v5928_v26, 16  ;;  %4903 = vmatpush3.bf16.msra.mxu1 %v5101_v48  ;;  %v5103_v26 = vld [vmem:[%s7525_s3 + $0x18] sm:$0xff]  }
 0x146   : > { %v6103_v5 = vpack.c.bf16 %v2530_v9, %v2530_v9  ;;  %v2667_v31 = vrot.slane %v2666_v16, 4  ;;  %v6107_v11 = vmax.f32 %v1123_v45, 0.0  ;;  %v1128_v62 = vadd.f32 %v5791_v61, %v1089_v25  ;;  %v1024_v9 = vpop.f32.mrf.mxu0  ;;  %v7708_v45 = vld [vmem:[#allocation28_spill] sm:$0xff]  ;;  %4904 = vmatprep.subr.bf16.mxu1 %v5102_v47 }
 0x147   : > { %v6110_v60 = vpack.c.bf16 %v2040_v8, %v2040_v8  ;;  %v2685_v55 = vrot.slane %v7707_v43, 4  ;;  %v2689_v17 = vshll.u32 %v5952_v37, 16  ;;  %v2662_v25 = vsel %vm6064_vm4, %v2657_v12, %v2661_v42  ;;  %v7710_v42 = vld [vmem:[#allocation29_spill] sm:$0xff] }
 0x148   : > { %v2672_v16 = vsel %vm6064_vm4, %v2667_v31, %v5923_v7  ;;  %v2038_v0 = vmul.f32 %v7708_v45, %v6107_v11  ;;  %v6122_v33 = vmax.f32 %v1128_v62, 0.0  ;;  %v2793_v43 = vshrl.u32 %v4673_v2, 16  ;;  %2970 = vrot.lane.b32.xlu0 %v2662_v25, %s5207_s25 }
 0x149   : > { %7706 = vst [vmem:[#allocation26_spill] sm:$0xff] %v6110_v60  ;;  %v2773_v37 = vshrl.u32 %v6103_v5, 16  ;;  %v2290_v48 = vshrl.u32 %v6110_v60, 16  ;;  %2972 = vrot.lane.b32.xlu1 %v2672_v16, %s5207_s25  ;;  %v2686_v7 = vor.u32 %v2685_v55, %v2681_v23  ;;  %v6135_v12 = vrot.slane %v2689_v17, 5  ;;  %v4893_v23 = vpop.f32.mrf.mxu0  ;;  %4905 = vmatpush3.bf16.msra.mxu1 %v5102_v47 }
 0x14a   : > { %v6131_v8 = vpack.c.bf16 %v2038_v0, %v2038_v0  ;;  %v2536_v31 = vmul.f32 %v7710_v42, %v6122_v33  ;;  %v1087_v62 = vadd.f32 %v6031_v38, %v5835_v13  ;;  %v6142_v57 = vpack.c.bf16 %v5976_v18, %v5976_v18  ;;  %4906 = vmatprep.subr.bf16.mxu1 %v5103_v26 }
 0x14b   : > { %v2687_v45 = vrot.slane %v2686_v7, 4  ;;  %v1090_v55 = vadd.f32 %v6046_v59, %v5839_v44  ;;  %v6146_v16 = vrot.slane %v2236_v63, 7  ;;  %v6148_v0 = vrot.slane %v2789_v54, 5 }
 0x14c   : > { %7709 = vst [vmem:[#allocation27_spill] sm:$0xff] %v6131_v8  ;;  %7711 = vst [vmem:[#allocation28_spill] sm:$0xff] %v6142_v57  ;;  %v4677_v17 = vpack.c.bf16 %v2536_v31, %v2536_v31  ;;  %v1126_v25 = vadd.f32 %v5791_v61, %v1087_v62  ;;  %v6151_v13 = vrot.slane %v2793_v43, 4  ;;  %v6153_v38 = vrot.slane %v2773_v37, 4  ;;  %1916 = vrot.lane.b32.xlu0 %v6142_v57, %s5206_s23  ;;  %v1027_v31 = vpop.f32.mrf.mxu0  ;;  %v7713_v62 = vld [vmem:[#allocation30_spill] sm:$0xff] }
 0x14d   : > { %v2692_v18 = vsel %vm6064_vm4, %v2687_v45, %v6135_v12  ;;  %v1129_v44 = vadd.f32 %v5791_v61, %v1090_v55  ;;  %v6161_v59 = vrot.slane %v2290_v48, 7  ;;  %v2272_v63 = vshrl.u32 %v6131_v8, 16  ;;  %4907 = vmatpush3.bf16.msra.mxu1 %v5103_v26 }
 0x14e   : > { %2976 = vrot.lane.b32.xlu1 %v2692_v18, %s5207_s25  ;;  %v6166_v54 = vmax.f32 %v1126_v25, 0.0  ;;  %v2829_v43 = vshll.u32 %v4677_v17, 16  ;;  %v2245_v37 = vshrl.u32 %v6142_v57, 16  ;;  %v1088_v42 = vadd.f32 %v6068_v41, %v5846_v39 }
 0x14f   : > { %7712 = vst [vmem:[#allocation29_spill] sm:$0xff] %v6161_v59  ;;  %v6169_v7 = vmax.f32 %v1129_v44, 0.0  ;;  %v2833_v48 = vshrl.u32 %v4677_v17, 16  ;;  %v6177_v55 = vpack.c.bf16 %v5999_v32, %v5999_v32  ;;  %v6181_v25 = vpack.c.bf16 %v5978_v24, %v5978_v24  ;;  %v7715_v44 = vld [vmem:[#allocation31_spill] sm:$0xff] }
 0x150   : > { %v2534_v45 = vmul.f32 %v7713_v62, %v6166_v54  ;;  %v1127_v39 = vadd.f32 %v5791_v61, %v1088_v42  ;;  %v1093_v41 = vadd.f32 %v6089_v15, %v5852_v51  ;;  %v6189_v26 = vrot.slane %v2272_v63, 7  ;;  %v4896_v63 = vpop.f32.mrf.mxu0 }
 0x151   : > { %7714 = vst [vmem:[#allocation30_spill] sm:$0xff] %v6181_v25  ;;  %v2044_v47 = vmul.f32 %v7715_v44, %v6169_v7  ;;  %v2227_v24 = vshrl.u32 %v6181_v25, 16  ;;  %1912 = vrot.lane.b32.xlu0 %v6181_v25, %s5206_s23  ;;  %v1091_v15 = vadd.f32 %v1024_v9, %v5856_v14  ;;  %v6207_v44 = vrot.slane %v2833_v48, 4 }
 0x152   : > { %7716 = vst [vmem:[#allocation31_spill] sm:$0xff] %v6189_v26  ;;  %v6191_v17 = vpack.c.bf16 %v2534_v45, %v2534_v45  ;;  %1918 = vrot.lane.b32.xlu1 %v6177_v55, %s5206_s23  ;;  %v6201_v42 = vmax.f32 %v1127_v39, 0.0  ;;  %v1132_v51 = vadd.f32 %v5791_v61, %v1093_v41  ;;  %v6205_v45 = vrot.slane %v2829_v43, 5  ;;  %v7718_v39 = vld [vmem:[#allocation34_spill] sm:$0xff] }
 0x153   : > { %v6199_v62 = vpack.c.bf16 %v2044_v47, %v2044_v47  ;;  %v6209_v18 = vrot.slane %v2245_v37, 7  ;;  %v6213_v2 = vpack.c.bf16 %v6024_v35, %v6024_v35  ;;  %v1130_v9 = vadd.f32 %v5791_v61, %v1091_v15  ;;  %v1040_v47 = vpop.f32.mrf.mxu0 }
 0x154   : > { %v2042_v32 = vmul.f32 %v7718_v39, %v6201_v42  ;;  %v6219_v8 = vmax.f32 %v1132_v51, 0.0  ;;  %v2813_v14 = vshrl.u32 %v6191_v17, 16  ;;  %v2716_v35 = vor.u32 %v5982_v10, %v5980_v50  ;;  %v7720_v39 = vld [vmem:[#allocation35_spill] sm:$0xff] }
 0x155   : > { %7717 = vst [vmem:[#allocation47_spill] sm:$0xff] %v6199_v62  ;;  %v2719_v43 = vshll.u32 %v5972_v46, 16  ;;  %v2326_v37 = vshrl.u32 %v6199_v62, 16  ;;  %v6229_v48 = vrot.slane %v2227_v24, 7  ;;  %v1094_v41 = vadd.f32 %v4893_v23, %v5860_v56 }
 0x156   : > { %1914 = vrot.lane.b32.xlu1 %v6213_v2, %s5206_s23  ;;  %v2540_v51 = vmul.f32 %v7720_v39, %v6219_v8  ;;  %v6234_v60 = vmax.f32 %v1130_v9, 0.0  ;;  %v2717_v59 = vrot.slane %v2716_v35, 4  ;;  %v7721_v15 = vshll.u32 %v6041_v58, 16 }
 0x157   : > { %7719 = vst [vmem:[#allocation34_spill] sm:$0xff] %v6229_v48  ;;  %v2721_v26 = vrot.slane %v2719_v43, 5  ;;  %v6238_v10 = vpack.c.bf16 %v2042_v32, %v2042_v32  ;;  %v1133_v24 = vadd.f32 %v5791_v61, %v1094_v41  ;;  %v7723_v23 = vshrl.u32 %v6041_v58, 16 }
 0x158   : > { %v2701_v52 = vrot.slane %v7721_v15, 5  ;;  %v4681_v25 = vpack.c.bf16 %v2540_v51, %v2540_v51  ;;  %v2538_v39 = vmul.f32 %v5718_v40, %v6234_v60  ;;  %v1092_v35 = vadd.f32 %v1027_v31, %v5870_v34  ;;  %v4897_v15 = vpop.f32.mrf.mxu0 }
 0x159   : > { %7722 = vst [vmem:[#allocation35_spill] sm:$0xff] %v6238_v10  ;;  %v2722_v56 = vsel %vm6064_vm4, %v2717_v59, %v2721_v26  ;;  %v2705_v9 = vrot.slane %v7723_v23, 4  ;;  %v6249_v43 = vrot.slane %v2813_v14, 4  ;;  %v6254_v41 = vmax.f32 %v1133_v24, 0.0 }
 0x15a   : > { %2982 = vrot.lane.b32.xlu0 %v2722_v56, %s5207_s25  ;;  %v6256_v40 = vrot.slane %v2326_v37, 7  ;;  %v1131_v59 = vadd.f32 %v5791_v61, %v1092_v35  ;;  %v2696_v58 = vor.u32 %v6002_v3, %v6135_v12  ;;  %v2308_v34 = vshrl.u32 %v6238_v10, 16  ;;  %v1043_v51 = vpop.f32.mrf.mxu0 }
 0x15b   : > { %v2706_v57 = vor.u32 %v2705_v9, %v2701_v52  ;;  %v6262_v31 = vpack.c.bf16 %v2538_v39, %v2538_v39  ;;  %v2048_v14 = vmul.f32 %v5740_v29, %v6254_v41  ;;  %v1097_v56 = vadd.f32 %v4896_v63, %v5874_v22  ;;  %v7738_v63 = vld [vmem:[#allocation44_spill] sm:$0xff] }
 0x15c   : > { %7724 = vst [vmem:[#allocation48_spill] sm:$0xff] %v6256_v40  ;;  %v2869_v24 = vshll.u32 %v4681_v25, 16  ;;  %v6267_v32 = vmax.f32 %v1131_v59, 0.0  ;;  %v2697_v37 = vrot.slane %v2696_v58, 4  ;;  %v7726_v3 = vshrl.u32 %v5972_v46, 16 }
 0x15d   : > { %v2707_v23 = vrot.slane %v2706_v57, 4  ;;  %v6269_v9 = vpack.c.bf16 %v2048_v14, %v2048_v14  ;;  %v1136_v35 = vadd.f32 %v5791_v61, %v1097_v56  ;;  %v2729_v39 = vshll.u32 %v6005_v6, 16 }
 0x15e   : > { %v2725_v12 = vrot.slane %v7726_v3, 4  ;;  %v2873_v62 = vshrl.u32 %v4681_v25, 16  ;;  %v2046_v22 = vmul.f32 %v5747_v49, %v6267_v32  ;;  %v2702_v57 = vsel %vm6064_vm4, %v2697_v37, %v2701_v52  ;;  %v4900_v37 = vpop.f32.mrf.mxu0 }
 0x15f   : > { %7725 = vst [vmem:[#allocation49_spill] sm:$0xff] %v6269_v9  ;;  %v2712_v29 = vsel %vm6064_vm4, %v2707_v23, %v5980_v50  ;;  %v2853_v59 = vshrl.u32 %v6262_v31, 16  ;;  %2978 = vrot.lane.b32.xlu0 %v2702_v57, %s5207_s25  ;;  %v6286_v6 = vmax.f32 %v1136_v35, 0.0  ;;  %v2362_v25 = vshrl.u32 %v6269_v9, 16 }
 0x160   : > { %2980 = vrot.lane.b32.xlu1 %v2712_v29, %s5207_s25  ;;  %v2726_v46 = vor.u32 %v2725_v12, %v2721_v26  ;;  %v6289_v50 = vpack.c.bf16 %v2046_v22, %v2046_v22  ;;  %v6291_v58 = vrot.slane %v2729_v39, 5  ;;  %v1095_v49 = vadd.f32 %v1040_v47, %v5878_v36  ;;  %v1056_v57 = vpop.f32.mrf.mxu0 }
 0x161   : > { %v2544_v52 = vmul.f32 %v5766_v53, %v6286_v6  ;;  %v6298_v56 = vpack.c.bf16 %v6039_v27, %v6039_v27  ;;  %v1098_v23 = vadd.f32 %v4897_v15, %v5886_v4  ;;  %v6301_v26 = vrot.slane %v2308_v34, 7  ;;  %v7737_v15 = vld [vmem:[#allocation24_spill] sm:$0xff] }
 0x162   : > { %7727 = vst [vmem:[#allocation50_spill] sm:$0xff] %v6289_v50  ;;  %v2727_v14 = vrot.slane %v2726_v46, 4  ;;  %v6303_v35 = vrot.slane %v2869_v24, 5  ;;  %v6305_v3 = vrot.slane %v2873_v62, 4  ;;  %v1134_v12 = vadd.f32 %v5791_v61, %v1095_v49  ;;  %v7732_v49 = vld [vmem:[#allocation12_spill] sm:$0xff] }
 0x163   : > { %7728 = vst [vmem:[#allocation51_spill] sm:$0xff] %v6298_v56  ;;  %7729 = vst [vmem:[#allocation52_spill] sm:$0xff] %v6301_v26  ;;  %v6308_v36 = vrot.slane %v2853_v59, 4  ;;  %v4685_v47 = vpack.c.bf16 %v2544_v52, %v2544_v52  ;;  %1924 = vrot.lane.b32.xlu0 %v6298_v56, %s5206_s23  ;;  %v1137_v4 = vadd.f32 %v5791_v61, %v1098_v23  ;;  %v6316_v27 = vrot.slane %v2362_v25, 7 }
 0x164   : > { %v2732_v53 = vsel %vm6064_vm4, %v2727_v14, %v6291_v58  ;;  %v2344_v62 = vshrl.u32 %v6289_v50, 16  ;;  %v6321_v34 = vmax.f32 %v1134_v12, 0.0  ;;  %v2281_v39 = vshrl.u32 %v6298_v56, 16  ;;  %v7733_v12 = vld [vmem:[#allocation36_spill] sm:$0xff]  ;;  %v7741_v50 = vld [vmem:[#allocation38_spill] sm:$0xff]  ;;  %v7748_v56 = vld [vmem:[#allocation7_spill] sm:$0xff] }
 0x165   : > { %7730 = vst [vmem:[#allocation53_spill] sm:$0xff] %v6316_v27  ;;  %2984 = vrot.lane.b32.xlu1 %v2732_v53, %s5207_s25  ;;  %v6325_v29 = vmax.f32 %v1137_v4, 0.0  ;;  %v1096_v22 = vadd.f32 %v1043_v51, %v5890_v30  ;;  %v6332_v46 = vpack.c.bf16 %v6087_v19, %v6087_v19  ;;  %v6336_v25 = vpack.c.bf16 %v6075_v20, %v6075_v20 }
 0x166   : > { %v2542_v59 = vmul.f32 %v5796_v28, %v6321_v34  ;;  %v1101_v52 = vadd.f32 %v4900_v37, %v7732_v49  ;;  %v2909_v14 = vshll.u32 %v4685_v47, 16  ;;  %v2913_v23 = vshrl.u32 %v4685_v47, 16 }
 0x167   : > { %7731 = vst [vmem:[#allocation54_spill] sm:$0xff] %v6336_v25  ;;  %v2052_v53 = vmul.f32 %v7733_v12, %v6325_v29  ;;  %v1135_v30 = vadd.f32 %v5791_v61, %v1096_v22  ;;  %v6342_v51 = vrot.slane %v2344_v62, 7  ;;  %1920 = vrot.lane.b32.xlu0 %v6336_v25, %s5206_s23  ;;  %v6352_v37 = vrot.slane %v2281_v39, 7  ;;  %v7736_v62 = vld [vmem:[#allocation14_spill] sm:$0xff] }
 0x168   : > { %v6344_v28 = vpack.c.bf16 %v2542_v59, %v2542_v59  ;;  %v1140_v20 = vadd.f32 %v5791_v61, %v1101_v52  ;;  %v2263_v4 = vshrl.u32 %v6336_v25, 16  ;;  %v1099_v22 = vadd.f32 %v1056_v57, %v7736_v62  ;;  %v4901_v59 = vpop.f32.mrf.mxu0  ;;  %v7740_v57 = vld [vmem:[#allocation37_spill] sm:$0xff] }
 0x169   : > { %7734 = vst [vmem:[#allocation12_spill] sm:$0xff] %v6342_v51  ;;  %1926 = vrot.lane.b32.xlu1 %v6332_v46, %s5206_s23  ;;  %7735 = vst [vmem:[#allocation36_spill] sm:$0xff] %v6352_v37  ;;  %v6354_v47 = vmax.f32 %v1135_v30, 0.0  ;;  %v6363_v24 = vpack.c.bf16 %v6107_v11, %v6107_v11  ;;  %v2756_v52 = vor.u32 %v7738_v63, %v7737_v15  ;;  %v6367_v39 = vrot.slane %v2909_v14, 5 }
 0x16a   : > { %v6359_v12 = vmax.f32 %v1140_v20, 0.0  ;;  %v6369_v30 = vrot.slane %v2913_v23, 4  ;;  %v6371_v19 = vpack.c.bf16 %v2052_v53, %v2052_v53  ;;  %v2893_v49 = vshrl.u32 %v6344_v28, 16  ;;  %v7744_v20 = vld [vmem:[#allocation19_spill] sm:$0xff] }
 0x16b   : > { %v2050_v62 = vmul.f32 %v7740_v57, %v6354_v47  ;;  %v1138_v63 = vadd.f32 %v5791_v61, %v1099_v22  ;;  %v6384_v23 = vrot.slane %v2263_v4, 7  ;;  %v2757_v53 = vrot.slane %v2756_v52, 4  ;;  %v1059_v57 = vpop.f32.mrf.mxu0 }
 0x16c   : > { %7739 = vst [vmem:[#allocation14_spill] sm:$0xff] %v6371_v19  ;;  %v2548_v11 = vmul.f32 %v7741_v50, %v6359_v12  ;;  %v2759_v9 = vshll.u32 %v6177_v55, 16  ;;  %v1102_v10 = vadd.f32 %v4901_v59, %v7744_v20  ;;  %v7745_v50 = vshll.u32 %v6213_v2, 16 }
 0x16d   : > { %1922 = vrot.lane.b32.xlu1 %v6363_v24, %s5206_s23  ;;  %v6382_v14 = vpack.c.bf16 %v2050_v62, %v2050_v62  ;;  %7743 = vst [vmem:[#allocation44_spill] sm:$0xff] %v6384_v23  ;;  %v6389_v51 = vmax.f32 %v1138_v63, 0.0  ;;  %v2398_v26 = vshrl.u32 %v6371_v19, 16  ;;  %v7746_v4 = vshrl.u32 %v6213_v2, 16 }
 0x16e   : > { %v6387_v27 = vpack.c.bf16 %v2548_v11, %v2548_v11  ;;  %v2741_v40 = vrot.slane %v7745_v50, 5  ;;  %v2761_v62 = vrot.slane %v2759_v9, 5  ;;  %v2779_v25 = vshll.u32 %v6363_v24, 16  ;;  %v7747_v11 = vld [vmem:[#allocation39_spill] sm:$0xff]  ;;  %v7749_v9 = vld [vmem:[#allocation45_spill] sm:$0xff] }
 0x16f   : > { %7742 = vst [vmem:[#allocation24_spill] sm:$0xff] %v6382_v14  ;;  %v2745_v52 = vrot.slane %v7746_v4, 4  ;;  %v2546_v23 = vmul.f32 %v7747_v11, %v6389_v51  ;;  %v1141_v63 = vadd.f32 %v5791_v61, %v1102_v10  ;;  %v1100_v59 = vadd.f32 %v1059_v57, %v7748_v56 }
 0x170   : > { %v2380_v20 = vshrl.u32 %v6382_v14, 16  ;;  %v2762_v50 = vsel %vm6064_vm4, %v2757_v53, %v2761_v62  ;;  %v2736_v22 = vor.u32 %v7749_v9, %v6291_v58  ;;  %v2953_v2 = vshrl.u32 %v6387_v27, 16  ;;  %v7751_v58 = vld [vmem:[#allocation40_spill] sm:$0xff] }
 0x171   : > { %v2746_v37 = vor.u32 %v2745_v52, %v2741_v40  ;;  %v6409_v4 = vpack.c.bf16 %v2546_v23, %v2546_v23  ;;  %2990 = vrot.lane.b32.xlu0 %v2762_v50, %s5207_s25  ;;  %v6412_v11 = vmax.f32 %v1141_v63, 0.0  ;;  %v1139_v10 = vadd.f32 %v5791_v61, %v1100_v59  ;;  %v7752_v59 = vld [vmem:[#allocation10_spill] sm:$0xff] }
 0x172   : > { %v2737_v57 = vrot.slane %v2736_v22, 4  ;;  %v7750_v19 = vshrl.u32 %v6177_v55, 16  ;;  %v2769_v53 = vshll.u32 %v6103_v5, 16  ;;  %v6425_v63 = vpack.c.bf16 %v6122_v33, %v6122_v33 }
 0x173   : > { %v2747_v56 = vrot.slane %v2746_v37, 4  ;;  %v2933_v52 = vshrl.u32 %v6409_v4, 16  ;;  %v2056_v9 = vmul.f32 %v7751_v58, %v6412_v11  ;;  %v6421_v23 = vmax.f32 %v1139_v10, 0.0 }
 0x174   : > { %v2765_v48 = vrot.slane %v7750_v19, 4  ;;  %v2742_v55 = vsel %vm6064_vm4, %v2737_v57, %v2741_v40  ;;  %v2771_v5 = vrot.slane %v2769_v53, 5  ;;  %v6432_v37 = vrot.slane %v2893_v49, 4 }
 0x175   : > { %v2752_v61 = vsel %vm6064_vm4, %v2747_v56, %v7737_v15  ;;  %v4658_v22 = vpack.c.bf16 %v2056_v9, %v2056_v9  ;;  %v2054_v50 = vmul.f32 %v7752_v59, %v6421_v23  ;;  %2986 = vrot.lane.b32.xlu0 %v2742_v55, %s5207_s25  ;;  %v2317_v33 = vshrl.u32 %v6425_v63, 16 }
 0x176   : > { %v2766_v19 = vor.u32 %v2765_v48, %v2761_v62  ;;  %2988 = vrot.lane.b32.xlu1 %v2752_v61, %s5207_s25  ;;  %v6439_v10 = vrot.slane %v2398_v26, 7  ;;  %v2783_v40 = vshrl.u32 %v6363_v24, 16  ;;  %v6443_v62 = vrot.slane %v2380_v20, 7 }
 0x177   : > { %v2434_v49 = vshrl.u32 %v4658_v22, 16  ;;  %v6447_v56 = vpack.c.bf16 %v6169_v7, %v6169_v7  ;;  %v6451_v57 = vpack.c.bf16 %v6166_v54, %v6166_v54  ;;  %v6453_v53 = vrot.slane %v2953_v2, 4 }
 0x178   : > { %v2767_v48 = vrot.slane %v2766_v19, 4  ;;  %v6455_v26 = vrot.slane %v2933_v52, 4  ;;  %v6457_v58 = vpack.c.bf16 %v2054_v50, %v2054_v50  ;;  %v2437_v9 = vshll.u32 %v4658_v22, 16 }
 0x179   : > { %v6461_v20 = vrot.slane %v2434_v49, 7  ;;  %v6464_v7 = vrot.slane %v2317_v33, 7  ;;  %1932 = vrot.lane.b32.xlu0 %v6425_v63, %s5206_s23  ;;  %v4612_v54 = vpack.c.bf16 %v6201_v42, %v6201_v42  ;;  %v2796_v2 = vor.u32 %v6151_v13, %v6148_v0 }
 0x17a   : > { %7753 = vst [vmem:[#allocation37_spill] sm:$0xff] %v6457_v58  ;;  %v2772_v24 = vsel %vm6064_vm4, %v2767_v48, %v2771_v5  ;;  %v2799_v52 = vshll.u32 %v6332_v46, 16  ;;  %v2781_v55 = vrot.slane %v2779_v25, 5  ;;  %v2843_v22 = vshrl.u32 %v6447_v56, 16 }
 0x17b   : > { %7754 = vst [vmem:[#allocation38_spill] sm:$0xff] %v6461_v20  ;;  %2992 = vrot.lane.b32.xlu1 %v2772_v24, %s5207_s25  ;;  %v6475_v19 = vor.u32 %v2437_v9, %v6461_v20  ;;  %v2299_v59 = vshrl.u32 %v6451_v57, 16  ;;  %v2416_v33 = vshrl.u32 %v6457_v58, 16  ;;  %v2797_v48 = vrot.slane %v2796_v2, 4 }
 0x17c   : > { %v2801_v49 = vrot.slane %v2799_v52, 5  ;;  %v2785_v42 = vrot.slane %v2783_v40, 4  ;;  %v2776_v13 = vor.u32 %v6153_v38, %v2771_v5  ;;  %v7756_v25 = vshrl.u32 %v6332_v46, 16 }
 0x17d   : > { %7755 = vst [vmem:[#allocation19_spill] sm:$0xff] %v6475_v19  ;;  %1928 = vrot.lane.b32.xlu0 %v6451_v57, %s5206_s23  ;;  %v2809_v9 = vshll.u32 %v6191_v17, 16  ;;  %v6491_v15 = vpack.c.bf16 %v6219_v8, %v6219_v8  ;;  %v2819_v40 = vshll.u32 %v4612_v54, 16  ;;  %v2823_v61 = vshrl.u32 %v4612_v54, 16 }
 0x17e   : > { %v2805_v24 = vrot.slane %v7756_v25, 4  ;;  %v2802_v52 = vsel %vm6064_vm4, %v2797_v48, %v2801_v49  ;;  %v2786_v50 = vor.u32 %v2785_v42, %v2781_v55  ;;  %v2777_v20 = vrot.slane %v2776_v13, 4 }
 0x17f   : > { %1934 = vrot.lane.b32.xlu1 %v6447_v56, %s5206_s23  ;;  %v2811_v38 = vrot.slane %v2809_v9, 5  ;;  %v6496_v5 = vrot.slane %v2416_v33, 7  ;;  %v6498_v46 = vrot.slane %v2299_v59, 7  ;;  %v6502_v8 = vpack.c.bf16 %v6234_v60, %v6234_v60  ;;  %v5110_v59 = vld [vmem:[%s7525_s3 + $0x10] sm:$0xff]  }
 0x180   : > { %v2806_v19 = vor.u32 %v2805_v24, %v2801_v49  ;;  %v2787_v17 = vrot.slane %v2786_v50, 4  ;;  %v2782_v48 = vsel %vm6064_vm4, %v2777_v20, %v2781_v55  ;;  %v2353_v49 = vshrl.u32 %v6491_v15, 16  ;;  %4940 = vmatprep.subr.bf16.mxu0 %v5110_v59 }
 0x181   : > { %7757 = vst [vmem:[#allocation39_spill] sm:$0xff] %v6496_v5  ;;  %2998 = vrot.lane.b32.xlu0 %v2802_v52, %s5207_s25  ;;  %v4618_v33 = vpack.c.bf16 %v6254_v41, %v6254_v41  ;;  %v6520_v50 = vpack.c.bf16 %v6267_v32, %v6267_v32  ;;  %v2836_v20 = vor.u32 %v6207_v44, %v6205_v45  ;;  %v2839_v55 = vshll.u32 %v6447_v56, 16 }
 0x182   : > { %v2807_v42 = vrot.slane %v2806_v19, 4  ;;  %v2792_v60 = vsel %vm6064_vm4, %v2787_v17, %v6148_v0  ;;  %v6527_v19 = vrot.slane %v2819_v40, 5  ;;  %v2825_v13 = vrot.slane %v2823_v61, 4  ;;  %4941 = vmatpush3.bf16.msra.mxu0 %v5110_v59  ;;  %v6539_v61 = vld [vmem:[%s7525_s3 + $0x40] sm:$0xff]  }
 0x183   : > { %1930 = vrot.lane.b32.xlu1 %v4612_v54, %s5206_s23  ;;  %v2335_v0 = vshrl.u32 %v6502_v8, 16  ;;  %v2859_v25 = vshll.u32 %v6520_v50, 16  ;;  %v2837_v24 = vrot.slane %v2836_v20, 4  ;;  %v2816_v32 = vor.u32 %v6249_v43, %v2811_v38  ;;  %7758 = vst [vmem:[#allocation7_spill] sm:$0xff] %v6539_v61  ;;  %4978 = vmatprep.subr.bf16.mxu1 %v6539_v61  ;;  %v7762_v54 = vld [vmem:[#allocation11_spill] sm:$0xff] }
 0x184   : > { %v2812_v41 = vsel %vm6064_vm4, %v2807_v42, %v2811_v38  ;;  %v2841_v44 = vrot.slane %v2839_v55, 5  ;;  %v2826_v9 = vor.u32 %v2825_v13, %v6527_v19  ;;  %v2845_v56 = vrot.slane %v2843_v22, 4  ;;  %v7769_v61 = vld [vmem:[#allocation15_spill] sm:$0xff] }
 0x185   : > { %2994 = vrot.lane.b32.xlu0 %v2782_v48, %s5207_s25  ;;  %v2849_v40 = vshll.u32 %v6262_v31, 16  ;;  %v2863_v52 = vshrl.u32 %v6520_v50, 16  ;;  %v6542_v17 = vrot.slane %v2816_v32, 4  ;;  %v6546_v43 = vpack.c.bf16 %v6286_v6, %v6286_v6 }
 0x186   : > { %v6550_v38 = vpack.c.bf16 %v6321_v34, %v6321_v34  ;;  %v2842_v31 = vsel %vm6064_vm4, %v2837_v24, %v2841_v44  ;;  %v6554_v22 = vrot.slane %v2826_v9, 4  ;;  %v2846_v48 = vor.u32 %v2845_v56, %v2841_v44  ;;  %v7768_v24 = vld [vmem:[#allocation13_spill] sm:$0xff] }
 0x187   : > { %2996 = vrot.lane.b32.xlu1 %v2792_v60, %s5207_s25  ;;  %v6556_v42 = vrot.slane %v2849_v40, 5  ;;  %v6559_v59 = vrot.slane %v2353_v49, 7  ;;  %v2883_v60 = vshrl.u32 %v4618_v33, 16  ;;  %v2822_v6 = vsel %vm6064_vm4, %v6542_v17, %v6527_v19  ;;  %v7761_v49 = vld [vmem:[#allocation32_spill] sm:$0xff] }
 0x188   : > { %7759 = vst [vmem:[#allocation45_spill] sm:$0xff] %v6550_v38  ;;  %v6567_v34 = vpack.c.bf16 %v6325_v29, %v6325_v29  ;;  %v6572_v20 = vrot.slane %v2335_v0, 7  ;;  %v2832_v55 = vsel %vm6064_vm4, %v6554_v22, %v6205_v45  ;;  %v6579_v13 = vrot.slane %v2846_v48, 4 }
 0x189   : > { %1940 = vrot.lane.b32.xlu0 %v6491_v15, %s5206_s23  ;;  %v2389_v29 = vshrl.u32 %v6546_v43, 16  ;;  %v2876_v19 = vor.u32 %v6305_v3, %v6303_v35  ;;  %v2879_v0 = vshll.u32 %v4618_v33, 16  ;;  %v6590_v45 = vrot.slane %v2859_v25, 5 }
 0x18a   : > { %v2865_v44 = vrot.slane %v2863_v52, 4  ;;  %v2923_v9 = vshrl.u32 %v6567_v34, 16  ;;  %v6595_v56 = vpack.c.bf16 %v6354_v47, %v6354_v47  ;;  %v2856_v25 = vor.u32 %v6308_v36, %v6556_v42 }
 0x18b   : > { %3000 = vrot.lane.b32.xlu1 %v2812_v41, %s5207_s25  ;;  %v2371_v41 = vshrl.u32 %v6550_v38, 16  ;;  %v6597_v40 = vrot.slane %v2876_v19, 4  ;;  %v6599_v3 = vrot.slane %v2879_v0, 5  ;;  %v2885_v52 = vrot.slane %v2883_v60, 4 }
 0x18c   : > { %v2866_v17 = vor.u32 %v2865_v44, %v6590_v45  ;;  %v2889_v22 = vshll.u32 %v6344_v28, 16  ;;  %v6608_v48 = vrot.slane %v2389_v29, 7  ;;  %v6619_v44 = vrot.slane %v2856_v25, 4 }
 0x18d   : > { %1936 = vrot.lane.b32.xlu0 %v6502_v8, %s5206_s23  ;;  %v6610_v47 = vrot.slane %v2371_v41, 7  ;;  %v2886_v36 = vor.u32 %v2885_v52, %v6599_v3  ;;  %v2899_v28 = vshll.u32 %v6595_v56, 16  ;;  %v2903_v29 = vshrl.u32 %v6595_v56, 16 }
 0x18e   : > { %v6617_v0 = vrot.slane %v2866_v17, 4  ;;  %v6622_v60 = vrot.slane %v2889_v22, 5  ;;  %v6628_v41 = vpack.c.bf16 %v6421_v23, %v6421_v23  ;;  %v2916_v2 = vor.u32 %v6369_v30, %v6367_v39  ;;  %v7849_v17 = vld [vmem:[#allocation38_spill] sm:$0xff] }
 0x18f   : > { %1942 = vrot.lane.b32.xlu1 %v4618_v33, %s5206_s23  ;;  %v6643_v23 = vrot.slane %v2886_v36, 4  ;;  %v2919_v52 = vshll.u32 %v6567_v34, 16  ;;  %v6648_v30 = vpack.c.bf16 %v6412_v11, %v6412_v11  ;;  %v7760_v36 = vld [vmem:[#allocation18_spill] sm:$0xff]  ;;  %v7763_v11 = vshll.u32 %v7762_v54, 16 }
 0x190   : > { %v2171_v32 = vrot.slane %v7760_v36, 4  ;;  %v6669_v33 = vrot.slane %v2899_v28, 5  ;;  %v2905_v22 = vrot.slane %v2903_v29, 4  ;;  %v6677_v54 = vpack.c.bf16 %v6389_v51, %v6389_v51 }
 0x191   : > { %3006 = vrot.lane.b32.xlu0 %v2842_v31, %s5207_s25  ;;  %v6656_v19 = vrot.slane %v2919_v52, 5  ;;  %v2178_v25 = vor.u32 %v7763_v11, %v7761_v49  ;;  %v2896_v52 = vor.u32 %v6432_v37, %v6622_v60  ;;  %v2180_v11 = vrot.slane %v7761_v49, 4  ;;  %v7771_v49 = vld [vmem:[#allocation8_spill] sm:$0xff] }
 0x192   : > { %7766 = vst [vmem:[#allocation40_spill] sm:$0xff] %v6669_v33  ;;  %v7770_v58 = vshll.u32 %v7769_v61, 16  ;;  %v2925_v5 = vrot.slane %v2923_v9, 4  ;;  %v7772_v61 = vshll.u32 %v7771_v49, 16  ;;  %v7773_v9 = vld [vmem:[#allocation9_spill] sm:$0xff] }
 0x193   : > { %1938 = vrot.lane.b32.xlu1 %v6520_v50, %s5206_s23  ;;  %v6650_v50 = vrot.slane %v2916_v2, 4  ;;  %v1789_v2 = vld [vmem:[#allocation2 + $0x8] sm:$0x1]  ;;  %v2179_v29 = vsel %vm6665_vm9, %v2171_v32, %v2178_v25  ;;  %v2929_v32 = vshll.u32 %v6409_v4, 16  ;;  %v6698_v25 = vpack.c.bf16 %v6359_v12, %v6359_v12 }
 0x194   : > { %v1790_v51 = vsel %vm1788_vm11, 0, %v1789_v2  ;;  %v2187_v28 = vor.u32 %v7770_v58, %v7768_v24  ;;  %v2169_v58 = vor.u32 %v7772_v61, %v7760_v36  ;;  %v2162_v2 = vrot.slane %v7773_v9, 4  ;;  %v5116_v12 = vld [vmem:[%s7525_s3 + $0x8] sm:$0xff]  }
 0x195   : > { %3002 = vrot.lane.b32.xlu0 %v2822_v6, %s5207_s25  ;;  %v2906_v6 = vor.u32 %v2905_v22, %v6669_v33  ;;  %1791 = vst [vmem:[#allocation2 + $0x8] sm:$0x1] %v1790_v51  ;;  %v7774_v4 = vsel %vm6064_vm4, %v6579_v13, %v6556_v42  ;;  %v2939_v13 = vshll.u32 %v6628_v41, 16  ;;  %4942 = vmatprep.subr.bf16.mxu0 %v5116_v12  ;;  %v2949_v9 = vshll.u32 %v6387_v27, 16  ;;  %v7777_v22 = vld [vmem:[#allocation17_spill] sm:$0xff] }
 0x196   : > { %v2188_v36 = vsel %vm6665_vm9, %v2180_v11, %v2187_v28  ;;  %v2170_v42 = vsel %vm6665_vm9, %v2162_v2, %v2169_v58  ;;  %v2425_v28 = vshrl.u32 %v6698_v25, 16  ;;  %4943 = vmatpush3.bf16.msra.mxu0 %v5116_v12  ;;  %v7775_v58 = vld [vmem:[#allocation43_spill] sm:$0xff]  ;;  %v7778_v51 = vshll.u32 %v7777_v22, 16 }
 0x197   : > { %3004 = vrot.lane.b32.xlu1 %v2832_v55, %s5207_s25  ;;  %v6689_v55 = vrot.slane %v2896_v52, 4  ;;  %v2407_v52 = vshrl.u32 %v6677_v54, 16  ;;  %v2207_v2 = vrot.slane %v7775_v58, 4 }
 0x198   : > { %v1901_v31 = vpop.permute.xlu1 %1900 }
 0x199   : > { %1995 = vst.msk [vmem:[#allocation2 + $0x10] sm:$0xf] %vm1992_vm7, %v1901_v31  ;;  %v2943_v31 = vshrl.u32 %v6628_v41, 16  ;;  %7767 = vst [vmem:[#allocation10_spill] sm:$0xff] %v6689_v55  ;;  %1948 = vrot.lane.b32.xlu0 %v6546_v43, %s5206_s23  ;;  %v6775_v55 = vrot.slane %v2407_v52, 7 }
 0x19a   : > { %v1897_v37 = vpop.permute.xlu0 %1896  ;;  %2483 = vst.msk [vmem:[#allocation2 + $0x10] sm:$0xf] %vm2475_vm8, %v2179_v29  ;;  %v6700_v29 = vrot.slane %v2906_v6, 4  ;;  %v6726_v6 = vrot.slane %v2929_v32, 5  ;;  %v6741_v32 = vrot.slane %v2939_v13, 5 }
 0x19b   : > { %1993 = vst.msk [vmem:[#allocation2 + $0x8] sm:$0xf] %vm1992_vm7, %v1897_v37  ;;  %3008 = vrot.lane.b32.xlu1 %v7774_v4, %s5207_s25  ;;  %v2926_v37 = vor.u32 %v2925_v5, %v6656_v19  ;;  %v2945_v11 = vrot.slane %v2943_v31, 4  ;;  %v7776_v4 = vld [vmem:[#allocation23_spill] sm:$0xff]  ;;  %v7786_v31 = vld [vmem:[#allocation21_spill] sm:$0xff] }
 0x19c   : > { %v2936_v5 = vor.u32 %v6455_v26, %v6726_v6  ;;  %v7782_v26 = vld [vmem:[#allocation41_spill] sm:$0xff] }
 0x19d   : > { %v6735_v61 = vrot.slane %v2926_v37, 4  ;;  %v2214_v37 = vor.u32 %v7778_v51, %v7776_v4  ;;  %1944 = vrot.lane.b32.xlu0 %v6550_v38, %s5206_s23  ;;  %v2946_v12 = vor.u32 %v2945_v11, %v6741_v32  ;;  %v6768_v51 = vrot.slane %v2949_v9, 5 }
 0x19e   : > { %v6764_v22 = vrot.slane %v2936_v5, 4  ;;  %v7783_v33 = vshll.u32 %v7782_v26, 16  ;;  %v6777_v38 = vrot.slane %v2425_v28, 7  ;;  %v2959_v9 = vshll.u32 %v6648_v30, 16 }
 0x19f   : > { %1950 = vrot.lane.b32.xlu1 %v6567_v34, %s5206_s23  ;;  %v2932_v27 = vsel %vm6064_vm4, %v6735_v61, %v6726_v6  ;;  %v2216_v34 = vrot.slane %v7776_v4, 4  ;;  %v2215_v13 = vsel %vm6665_vm9, %v2207_v2, %v2214_v37  ;;  %v7784_v4 = vld [vmem:[#allocation16_spill] sm:$0xff]  ;;  %v2956_v28 = vor.u32 %v6453_v53, %v6768_v51 }
 0x1a0   : > { %v7785_v37 = vsel %vm6064_vm4, %v6597_v40, %v6599_v3  ;;  %v2189_v26 = vrot.slane %v7768_v24, 4  ;;  %v7787_v53 = vshll.u32 %v7786_v31, 16  ;;  %v6815_v3 = vrot.slane %v2959_v9, 5  ;;  %v7790_v31 = vld [vmem:[#allocation28_spill] sm:$0xff] }
 0x1a1   : > { %v1903_v49 = vpop.permute.xlu1 %1902  ;;  %3014 = vrot.lane.b32.xlu0 %v7785_v37, %s5207_s25  ;;  %v2428_v24 = vshll.u32 %v6698_v25, 16 }
 0x1a2   : > { %1996 = vst.msk [vmem:[#allocation2 + $0x14] sm:$0xf] %vm1992_vm7, %v1903_v49  ;;  %v7781_v49 = vld [vmem:[#allocation22_spill] sm:$0xff] }
 0x1a3   : > { %2484 = vst.msk [vmem:[#allocation2 + $0x14] sm:$0xf] %vm2475_vm8, %v2188_v36  ;;  %v2223_v36 = vor.u32 %v7783_v33, %v7781_v49  ;;  %v2478_v14 = vld [vmem:[#allocation2 + $0x8] sm:$0xf]  ;;  %v6788_v33 = vrot.slane %v2946_v12, 4  ;;  %1946 = vrot.lane.b32.xlu1 %v6595_v56, %s5206_s23  ;;  %v7788_v56 = vld [vmem:[#allocation20_spill] sm:$0xff] }
 0x1a4   : > { %v1899_v5 = vpop.permute.xlu0 %1898  ;;  %v2479_v2 = vsel %vm6755_vm13, %v7784_v4, %v2478_v14  ;;  %v2963_v14 = vshrl.u32 %v6648_v30, 16  ;;  %v7789_v12 = vshll.u32 %v7788_v56, 16 }
 0x1a5   : > { %1994 = vst.msk [vmem:[#allocation2 + $0xc] sm:$0xf] %vm1992_vm7, %v1899_v5  ;;  %v2224_v52 = vsel %vm6665_vm9, %v2216_v34, %v2223_v36  ;;  %2480 = vst [vmem:[#allocation2 + $0x8] sm:$0xf] %v2479_v2  ;;  %v2196_v34 = vor.u32 %v7787_v53, %v6071_v21  ;;  %v2198_v5 = vrot.slane %v6071_v21, 4  ;;  %v7791_v53 = vshll.u32 %v7790_v31, 16 }
 0x1a6   : > { %2482 = vst.msk [vmem:[#allocation2 + $0xc] sm:$0xf] %vm2475_vm8, %v2170_v42  ;;  %v2205_v36 = vor.u32 %v7789_v12, %v7775_v58  ;;  %v6817_v42 = vrot.slane %v2956_v28, 4  ;;  %v2243_v58 = vrot.slane %v6146_v16, 4  ;;  %v2252_v28 = vrot.slane %v6209_v18, 4 }
 0x1a7   : > { %v2197_v37 = vsel %vm6665_vm9, %v2189_v26, %v2196_v34  ;;  %v2250_v56 = vor.u32 %v7791_v53, %v6209_v18  ;;  %v7792_v26 = vld [vmem:[#allocation46_spill] sm:$0xff]  ;;  %v2432_v18 = vrot.slane %v6777_v38, 4 }
 0x1a8   : > { %v1909_v4 = vpop.permute.xlu0 %1908  ;;  %v1911_v2 = vpop.permute.xlu1 %1910  ;;  %v6835_v9 = vsel %vm6665_vm9, %v2198_v5, %v2205_v36  ;;  %v7793_v34 = vld [vmem:[#allocation42_spill] sm:$0xff]  ;;  %v7796_v36 = vsel %vm6064_vm4, %v6619_v44, %v6590_v45 }
 0x1a9   : > { %1999 = vst.msk [vmem:[#allocation2 + $0x20] sm:$0xf] %vm1992_vm7, %v1909_v4  ;;  %2000 = vst.msk [vmem:[#allocation2 + $0x24] sm:$0xf] %vm1992_vm7, %v1911_v2  ;;  %v7794_v12 = vshll.u32 %v7793_v34, 16  ;;  %v7795_v4 = vsel %vm6064_vm4, %v6617_v0, %v6303_v35  ;;  %3010 = vrot.lane.b32.xlu0 %v7796_v36, %s5207_s25  ;;  %v6858_v5 = vsel %vm6665_vm9, %v2243_v58, %v2250_v56  ;;  %v2225_v35 = vrot.slane %v7781_v49, 4 }
 0x1aa   : > { %3012 = vrot.lane.b32.xlu1 %v7795_v4, %s5207_s25  ;;  %2487 = vst.msk [vmem:[#allocation2 + $0x20] sm:$0xf] %vm2475_vm8, %v2215_v13  ;;  %2488 = vst.msk [vmem:[#allocation2 + $0x24] sm:$0xf] %vm2475_vm8, %v2224_v52  ;;  %v7797_v0 = vld [vmem:[#allocation34_spill] sm:$0xff]  ;;  %v7800_v13 = vld [vmem:[#allocation25_spill] sm:$0xff] }
 0x1ab   : > { %v2259_v31 = vor.u32 %v7794_v12, %v7792_v26  ;;  %v7798_v2 = vld [vmem:[#allocation30_spill] sm:$0xff]  ;;  %v6864_v12 = vrot.slane %v2963_v14, 4  ;;  %v2234_v44 = vrot.slane %v7797_v0, 4  ;;  %v7801_v52 = vshll.u32 %v7800_v13, 16  ;;  %v7802_v49 = vld [vmem:[#allocation31_spill] sm:$0xff]  ;;  %v7803_v36 = vld [vmem:[#allocation36_spill] sm:$0xff] }
 0x1ac   : > { %v7799_v53 = vshll.u32 %v7798_v2, 16  ;;  %v2279_v56 = vrot.slane %v7802_v49, 4  ;;  %v7804_v2 = vld [vmem:[#allocation51_spill] sm:$0xff]  ;;  %v2288_v21 = vrot.slane %v7803_v36, 4 }
 0x1ad   : > { %v6868_v45 = vsel %vm6665_vm9, %v2252_v28, %v2259_v31  ;;  %v2241_v4 = vor.u32 %v7801_v52, %v6146_v16  ;;  %v7805_v14 = vshll.u32 %v7804_v2, 16  ;;  %v7806_v31 = vld [vmem:[#allocation29_spill] sm:$0xff]  ;;  %v7810_v52 = vld [vmem:[#allocation54_spill] sm:$0xff]  ;;  %1958 = vrot.lane.b32.xlu0 %v6648_v30, %s5206_s23  ;;  %v7813_v2 = vld [vmem:[#allocation27_spill] sm:$0xff]  ;;  %v7816_v30 = vshll.u32 %v6425_v63, 16 }
 0x1ae   : > { %v2232_v34 = vor.u32 %v7799_v53, %v7797_v0  ;;  %v7807_v0 = vld [vmem:[#allocation26_spill] sm:$0xff]  ;;  %v7811_v40 = vshll.u32 %v7810_v52, 16  ;;  %v7818_v52 = vld [vmem:[#allocation47_spill] sm:$0xff]  ;;  %v2966_v6 = vor.u32 %v6864_v12, %v6815_v3  ;;  %v7848_v12 = vsel %vm6064_vm4, %v6764_v22, %v6741_v32 }
 0x1af   : > { %v2286_v53 = vor.u32 %v7805_v14, %v7803_v36  ;;  %v6885_v28 = vsel %vm6665_vm9, %v2234_v44, %v2241_v4  ;;  %v7808_v16 = vshll.u32 %v7807_v0, 16  ;;  %v7812_v36 = vsel %vm6064_vm4, %v6643_v23, %v6622_v60  ;;  %v1905_v44 = vpop.permute.xlu0 %1904  ;;  %v7815_v0 = vld [vmem:[#allocation52_spill] sm:$0xff] }
 0x1b0   : > { %v6876_v58 = vsel %vm6665_vm9, %v2225_v35, %v2232_v34  ;;  %v2261_v35 = vrot.slane %v7792_v26, 4  ;;  %v7809_v34 = vld [vmem:[#allocation44_spill] sm:$0xff]  ;;  %3016 = vrot.lane.b32.xlu1 %v7812_v36, %s5207_s25  ;;  %1997 = vst.msk [vmem:[#allocation2 + $0x18] sm:$0xf] %vm1992_vm7, %v1905_v44  ;;  %v2297_v36 = vrot.slane %v7806_v31, 4 }
 0x1b1   : > { %v2295_v13 = vor.u32 %v7808_v16, %v7806_v31  ;;  %v2268_v11 = vor.u32 %v7811_v40, %v7809_v34  ;;  %v6904_v4 = vsel %vm6665_vm9, %v2279_v56, %v2286_v53  ;;  %v2270_v26 = vrot.slane %v7809_v34, 4  ;;  %2485 = vst.msk [vmem:[#allocation2 + $0x18] sm:$0xf] %vm2475_vm8, %v2197_v37  ;;  %v7817_v34 = vld [vmem:[#allocation48_spill] sm:$0xff]  ;;  %v7821_v37 = vld [vmem:[#allocation35_spill] sm:$0xff]  ;;  %1954 = vrot.lane.b32.xlu0 %v6628_v41, %s5206_s23 }
 0x1b2   : > { %v7814_v40 = vshll.u32 %v7813_v2, 16  ;;  %v2315_v16 = vrot.slane %v7815_v0, 4  ;;  %v2322_v56 = vor.u32 %v7816_v30, %v6464_v7  ;;  %v2324_v53 = vrot.slane %v6464_v7, 4  ;;  %v7823_v2 = vld [vmem:[#allocation12_spill] sm:$0xff]  ;;  %v1907_v30 = vpop.permute.xlu1 %1906 }
 0x1b3   : > { %v6914_v60 = vsel %vm6665_vm9, %v2288_v21, %v2295_v13  ;;  %v6918_v23 = vsel %vm6665_vm9, %v2261_v35, %v2268_v11  ;;  %v7819_v21 = vshll.u32 %v7818_v52, 16  ;;  %v7820_v11 = vshll.u32 %v6451_v57, 16  ;;  %1998 = vst.msk [vmem:[#allocation2 + $0x1c] sm:$0xf] %vm1992_vm7, %v1907_v30 }
 0x1b4   : > { %v2277_v14 = vor.u32 %v7814_v40, %v7802_v49  ;;  %v6938_v63 = vsel %vm6665_vm9, %v2315_v16, %v2322_v56  ;;  %v2306_v7 = vrot.slane %v6498_v46, 4  ;;  %v7822_v44 = vshll.u32 %v7821_v37, 16  ;;  %1952 = vrot.lane.b32.xlu1 %v6677_v54, %s5206_s23  ;;  %v5120_v16 = vld [vmem:[%s7525_s3] sm:$0xff]   ;;  %2486 = vst.msk [vmem:[#allocation2 + $0x1c] sm:$0xf] %vm2475_vm8, %v6835_v9 }
 0x1b5   : > { %v2331_v13 = vor.u32 %v7819_v21, %v7817_v34  ;;  %v2304_v35 = vor.u32 %v7820_v11, %v6498_v46  ;;  %v2351_v40 = vrot.slane %v7823_v2, 4  ;;  %v7824_v46 = vshll.u32 %v6491_v15, 16  ;;  %v7825_v56 = vld [vmem:[#allocation53_spill] sm:$0xff]  ;;  %4944 = vmatprep.subr.bf16.mxu0 %v5120_v16  ;;  %v2975_v30 = vpop.permute.xlu0 %2974 }
 0x1b6   : > { %v6927_v49 = vsel %vm6665_vm9, %v2270_v26, %v2277_v14  ;;  %v2313_v26 = vor.u32 %v7822_v44, %v7815_v0  ;;  %v2360_v0 = vrot.slane %v6559_v59, 4  ;;  %v7828_v15 = vshll.u32 %v6502_v8, 16  ;;  %4945 = vmatpush3.bf16.msra.mxu0 %v5120_v16  ;;  %3075 = vst.msk [vmem:[#allocation2 + $0x10] sm:$0xf] %vm3072_vm14, %v2975_v30 }
 0x1b7   : > { %v6951_v57 = vsel %vm6665_vm9, %v2324_v53, %v2331_v13  ;;  %v6955_v31 = vsel %vm6665_vm9, %v2297_v36, %v2304_v35  ;;  %v2358_v14 = vor.u32 %v7824_v46, %v6559_v59  ;;  %v7826_v53 = vld [vmem:[#allocation49_spill] sm:$0xff]  ;;  %v2333_v13 = vrot.slane %v7817_v34, 4  ;;  %v7829_v35 = vld [vmem:[#allocation50_spill] sm:$0xff] }
 0x1b8   : > { %v6966_v41 = vsel %vm6665_vm9, %v2306_v7, %v2313_v26  ;;  %v7827_v52 = vshll.u32 %v7826_v53, 16  ;;  %v2340_v36 = vor.u32 %v7828_v15, %v6572_v20  ;;  %v2342_v11 = vrot.slane %v6572_v20, 4 }
 0x1b9   : > { %v6978_v59 = vsel %vm6665_vm9, %v2351_v40, %v2358_v14  ;;  %v7830_v7 = vshll.u32 %v7829_v35, 16  ;;  %v2387_v44 = vrot.slane %v6443_v62, 4  ;;  %v7831_v20 = vshll.u32 %v6546_v43, 16 }
 0x1ba   : > { %v2367_v21 = vor.u32 %v7827_v52, %v7825_v56  ;;  %v6993_v34 = vsel %vm6665_vm9, %v2333_v13, %v2340_v36  ;;  %v7832_v9 = vsel %vm6064_vm4, %v6650_v50, %v6656_v19  ;;  %v7833_v40 = vsel %vm6064_vm4, %v6700_v29, %v6367_v39  ;;  %v7836_v19 = vld [vmem:[#allocation45_spill] sm:$0xff]  ;;  %v7838_v29 = vld [vmem:[#allocation24_spill] sm:$0xff]  ;;  %v7840_v36 = vld [vmem:[#allocation19_spill] sm:$0xff] }
 0x1bb   : > { %v2349_v37 = vor.u32 %v7830_v7, %v7823_v2  ;;  %v2394_v26 = vor.u32 %v7831_v20, %v6608_v48  ;;  %v2396_v2 = vrot.slane %v6608_v48, 4  ;;  %3022 = vrot.lane.b32.xlu1 %v7832_v9, %s5207_s25  ;;  %3020 = vrot.lane.b32.xlu0 %v7833_v40, %s5207_s25  ;;  %v7834_v48 = vld [vmem:[#allocation14_spill] sm:$0xff]  ;;  %v7837_v50 = vshll.u32 %v7836_v19, 16  ;;  %v1795_v13 = vld [vmem:[#allocation2 + $0x84] sm:$0x8] }
 0x1bc   : > { %v6989_v8 = vsel %vm6665_vm9, %v2360_v0, %v2367_v21  ;;  %v7835_v46 = vshll.u32 %v7834_v48, 16  ;;  %v2369_v0 = vrot.slane %v7825_v56, 4  ;;  %v2378_v39 = vrot.slane %v6610_v47, 4 }
 0x1bd   : > { %v7013_v43 = vsel %vm6665_vm9, %v2342_v11, %v2349_v37  ;;  %v2376_v16 = vor.u32 %v7837_v50, %v6610_v47  ;;  %v7024_v53 = vsel %vm6665_vm9, %v2387_v44, %v2394_v26  ;;  %v7839_v52 = vshll.u32 %v7838_v29, 16  ;;  %v7842_v44 = vld [vmem:[#allocation10_spill] sm:$0xff]  ;;  %v7845_v26 = vld [vmem:[#allocation39_spill] sm:$0xff] }
 0x1be   : > { %v2403_v14 = vor.u32 %v7835_v46, %v6439_v10  ;;  %v7044_v47 = vsel %vm6665_vm9, %v2432_v18, %v7840_v36  ;;  %v2405_v11 = vrot.slane %v6439_v10, 4  ;;  %v7841_v35 = vshll.u32 %v6677_v54, 16  ;;  %v7843_v18 = vld [vmem:[#allocation40_spill] sm:$0xff]  ;;  %v7846_v54 = vld [vmem:[#allocation37_spill] sm:$0xff] }
 0x1bf   : > { %v2385_v21 = vor.u32 %v7839_v52, %v6443_v62  ;;  %v7037_v15 = vsel %vm6665_vm9, %v2369_v0, %v2376_v16  ;;  %v2414_v37 = vrot.slane %v6775_v55, 4  ;;  %v7844_v20 = vsel %vm6064_vm4, %v7842_v44, %v7843_v18  ;;  %3024 = vrot.lane.b32.xlu0 %v2932_v27, %s5207_s25 }
 0x1c0   : > { %v7033_v56 = vsel %vm6665_vm9, %v2396_v2, %v2403_v14  ;;  %v2412_v7 = vor.u32 %v7841_v35, %v6775_v55  ;;  %3018 = vrot.lane.b32.xlu1 %v7844_v20, %s5207_s25  ;;  %v1796_v10 = vsel %vm1794_vm1, 0, %v1795_v13  ;;  %v7847_v2 = vshll.u32 %v7846_v54, 16 }
 0x1c1   : > { %v7048_v62 = vsel %vm6665_vm9, %v2378_v39, %v2385_v21  ;;  %v2423_v55 = vrot.slane %v7845_v26, 4  ;;  %v2430_v40 = vor.u32 %v2428_v24, %v6777_v38  ;;  %1797 = vst [vmem:[#allocation2 + $0x84] sm:$0x8] %v1796_v10  ;;  %v5208_v46 = vmov 0   ;;  %v2973_v38 = vpop.permute.xlu1 %2972  ;;  %v2971_v24 = vpop.permute.xlu0 %2970 }
 0x1c2   : > { %v2421_v9 = vor.u32 %v7847_v2, %v7845_v26  ;;  %v7077_v48 = vsel %vm6665_vm9, %v2405_v11, %v2412_v7  ;;  %1784 = vst.msk [vmem:[#allocation2] sm:$0xf] %vm1783_vm3, %v5208_v46  ;;  %1785 = vst.msk [vmem:[#allocation2 + $0x4] sm:$0xf] %vm1783_vm3, %v5208_v46  ;;  %v2441_v14 = vrot.slane %v7849_v17, 4  ;;  %v2967_v0 = vrot.slane %v2966_v6, 4 }
 0x1c3   : > { %v7087_v27 = vsel %vm6665_vm9, %v2423_v55, %v2430_v40  ;;  %1798 = vst.msk [vmem:[#allocation2 + $0x88] sm:$0xf] %vm1783_vm3, %v5208_v46  ;;  %1799 = vst.msk [vmem:[#allocation2 + $0x8c] sm:$0xf] %vm1783_vm3, %v5208_v46  ;;  %3026 = vrot.lane.b32.xlu0 %v7848_v12, %s5207_s25 }
 0x1c4   : > { %v7083_v61 = vsel %vm6665_vm9, %v2414_v37, %v2421_v9  ;;  %1956 = vrot.lane.b32.xlu1 %v6698_v25, %s5206_s23  ;;  %3074 = vst.msk [vmem:[#allocation2 + $0xc] sm:$0xf] %vm3072_vm14, %v2973_v38  ;;  %3073 = vst.msk [vmem:[#allocation2 + $0x8] sm:$0xf] %vm3072_vm14, %v2971_v24  ;;  %v7850_v25 = vsel %vm6064_vm4, %v6788_v33, %v6768_v51  ;;  %v7851_v51 = vsel %vm6064_vm4, %v6817_v42, %v6815_v3  ;;  %v7852_v33 = vld [vmem:[#allocation33_spill] sm:$0xff]  ;;  %s5147_s23 = sshll.u32 %s5209_s17, 4  ;;  %s5148_s23 = int_to_ptr.vmem [resolvable:$false] %s5147_s23 }
 0x1c5   : > { %vm2514_vm9 = vmand %vm2513_vm6, %vm1787_vm5  ;;  %v1917_v19 = vpop.permute.xlu0 %1916  ;;  %v2977_v32 = vpop.permute.xlu1 %2976  ;;  %vm3254_vm5 = vcmask 392192   ;;  %s5149_s26 = scalar_lea.vmem %s5148_s23, 2048  ;;  %p5150_p0 = scmp.lt.s32.totalorder %s7476_s12, %s5148_s23 }
 0x1c6   : > { %2003 = vst.msk [vmem:[#allocation2 + $0x30] sm:$0xf] %vm1992_vm7, %v1917_v19  ;;  %vm3105_vm4 = vmand %vm3072_vm14, %vm2646_vm2  ;;  %vm4116_vm2 = vcmask 130048   ;;  %p5151_p1 = scmp.lt.s32.totalorder %s5149_s26, %s5143_s22 }
 0x1c7   : > { %3032 = vrot.lane.b32.xlu0 %v2967_v0, %s5207_s25  ;;  %3076 = vst.msk [vmem:[#allocation2 + $0x14] sm:$0xf] %vm3072_vm14, %v2977_v32 }
 0x1c8   : > { %3028 = vrot.lane.b32.xlu1 %v7850_v25, %s5207_s25  ;;  %2491 = vst.msk [vmem:[#allocation2 + $0x30] sm:$0xf] %vm2475_vm8, %v6858_v5  ;;  %v7853_v5 = vld [vmem:[#allocation7_spill] sm:$0xff]  ;;  %p5152_p2 = por %p5151_p1, %p5150_p0 }
 0x1c9   : > { %v1919_v30 = vpop.permute.xlu1 %1918  ;;  %v1913_v39 = vpop.permute.xlu0 %1912 }
 0x1ca   : > { %v2515_v22 = vld [vmem:[#allocation2 + $0x88] sm:$0x1]  ;;  %2004 = vst.msk [vmem:[#allocation2 + $0x34] sm:$0xf] %vm1992_vm7, %v1919_v30  ;;  %2001 = vst.msk [vmem:[#allocation2 + $0x28] sm:$0xf] %vm1992_vm7, %v1913_v39  ;;  %p5153_p3 = pnand %p5152_p2, %p5146_p13 }
 0x1cb   : > { %v2516_v50 = vsel %vm2514_vm9, %v2441_v14, %v2515_v22  ;;  %v7112_v16 = vld [vmem:[#allocation2 + $0x8] sm:$0xff]   ;;  %2968 = vrot.lane.b32.xlu0 %v7852_v33, %s5207_s25  ;;  %2492 = vst.msk [vmem:[#allocation2 + $0x34] sm:$0xf] %vm2475_vm8, %v6868_v45  ;;  %2489 = vst.msk [vmem:[#allocation2 + $0x28] sm:$0xf] %vm2475_vm8, %v6876_v58  ;;  %v5121_v45 = vld [vmem:[%s7525_s3 + $0x30] sm:$0xff]  }
 0x1cc   : > { %2517 = vst [vmem:[#allocation2 + $0x88] sm:$0x1] %v2516_v50  ;;  %3030 = vrot.lane.b32.xlu1 %v7851_v51, %s5207_s25  ;;  %4908 = vmatprep.mubr.msk.bf16.mxu1 %vm3254_vm5, %v7112_v16 }
 0x1cd   : > { %v1915_v3 = vpop.permute.xlu1 %1914  ;;  %v2983_v58 = vpop.permute.xlu0 %2982 }
 0x1ce   : > { %v7133_v42 = vld [vmem:[#allocation2 + $0x10] sm:$0xff]   ;;  %2002 = vst.msk [vmem:[#allocation2 + $0x2c] sm:$0xf] %vm1992_vm7, %v1915_v3 }
 0x1cf   : > { %2490 = vst.msk [vmem:[#allocation2 + $0x2c] sm:$0xf] %vm2475_vm8, %v6885_v28  ;;  %4909 = vmatmul.mubr.msk.bf16.vlgmr.msra.gmra.mxu1 %vm3254_vm5, %v7133_v42 }
 0x1d0   : > { %4979 = vmatpush3.bf16.msra.mxu1 %v7853_v5  ;;  %3079 = vst.msk [vmem:[#allocation2 + $0x20] sm:$0xf] %vm3072_vm14, %v2983_v58  ;;  %v3069_v58 = vld [vmem:[#allocation2 + $0x4] sm:$0x8] }
 0x1d1   : > { %4980 = vmatprep.subr.bf16.mxu1 %v5117_v1  ;;  %v2979_v52 = vpop.permute.xlu0 %2978 }
 0x1d2   : > { %v2981_v29 = vpop.permute.xlu1 %2980  ;;  %3077 = vst.msk [vmem:[#allocation2 + $0x18] sm:$0xf] %vm3072_vm14, %v2979_v52 }
 0x1d3   : > { %3078 = vst.msk [vmem:[#allocation2 + $0x1c] sm:$0xf] %vm3072_vm14, %v2981_v29 }
 0x1d4   : > { %4981 = vmatpush3.bf16.msra.mxu1 %v5117_v1 }
 0x1d5   : > { %4982 = vmatprep.subr.bf16.mxu1 %v5121_v45  ;;  %v1925_v28 = vpop.permute.xlu0 %1924 }
 0x1d6   : > { %2007 = vst.msk [vmem:[#allocation2 + $0x40] sm:$0xf] %vm1992_vm7, %v1925_v28 }
 0x1d7   : > { %v2985_v21 = vpop.permute.xlu1 %2984  ;;  %2495 = vst.msk [vmem:[#allocation2 + $0x40] sm:$0xf] %vm2475_vm8, %v6904_v4 }
 0x1d8   : > { %4983 = vmatpush3.bf16.msra.mxu1 %v5121_v45  ;;  %3080 = vst.msk [vmem:[#allocation2 + $0x24] sm:$0xf] %vm3072_vm14, %v2985_v21 }
 0x1d9   : > { %v1921_v11 = vpop.permute.xlu0 %1920 }
 0x1da   : > { %v7151_v13 = vld [vmem:[#allocation2 + $0x18] sm:$0xff]   ;;  %2005 = vst.msk [vmem:[#allocation2 + $0x38] sm:$0xf] %vm1992_vm7, %v1921_v11 }
 0x1db   : > { %v1927_v36 = vpop.permute.xlu1 %1926  ;;  %4912 = vmatprep.mubr.msk.bf16.mxu1 %vm3254_vm5, %v7151_v13  ;;  %2493 = vst.msk [vmem:[#allocation2 + $0x38] sm:$0xf] %vm2475_vm8, %v6918_v23 }
 0x1dc   : > { %2008 = vst.msk [vmem:[#allocation2 + $0x44] sm:$0xf] %vm1992_vm7, %v1927_v36  ;;  %v5126_v36 = vld [vmem:[#allocation2 + $0x10] sm:$0xff]  }
 0x1dd   : > { %2496 = vst.msk [vmem:[#allocation2 + $0x44] sm:$0xf] %vm2475_vm8, %v6914_v60 }
 0x1df   : > { %v1923_v35 = vpop.permute.xlu1 %1922  ;;  %v7161_v7 = vld [vmem:[#allocation2 + $0x20] sm:$0xff]  }
 0x1e0   : > { %2006 = vst.msk [vmem:[#allocation2 + $0x3c] sm:$0xf] %vm1992_vm7, %v1923_v35  ;;  %4913 = vmatmul.mubr.msk.bf16.gmra.mxu1 %vm3254_vm5, %v7161_v7  ;;  %v5128_v35 = vld [vmem:[#allocation2 + $0x18] sm:$0xff]  }
 0x1e1   : > { %2494 = vst.msk [vmem:[#allocation2 + $0x3c] sm:$0xf] %vm2475_vm8, %v6927_v49 }
 0x1e3   : > { %v2991_v4 = vpop.permute.xlu0 %2990 }
 0x1e4   : > { %3083 = vst.msk [vmem:[#allocation2 + $0x30] sm:$0xf] %vm3072_vm14, %v2991_v4  ;;  %v5129_v4 = vld [vmem:[#allocation2 + $0x20] sm:$0xff]  }
 0x1e7   : > { %v2987_v44 = vpop.permute.xlu0 %2986 }
 0x1e8   : > { %v2989_v37 = vpop.permute.xlu1 %2988  ;;  %3081 = vst.msk [vmem:[#allocation2 + $0x28] sm:$0xf] %vm3072_vm14, %v2987_v44 }
 0x1e9   : > { %3082 = vst.msk [vmem:[#allocation2 + $0x2c] sm:$0xf] %vm3072_vm14, %v2989_v37 }
 0x1eb   : > { %v1933_v23 = vpop.permute.xlu0 %1932 }
 0x1ec   : > { %2011 = vst.msk [vmem:[#allocation2 + $0x50] sm:$0xf] %vm1992_vm7, %v1933_v23 }
 0x1ed   : > { %v2993_v60 = vpop.permute.xlu1 %2992  ;;  %2499 = vst.msk [vmem:[#allocation2 + $0x50] sm:$0xf] %vm2475_vm8, %v6938_v63 }
 0x1ee   : > { %3084 = vst.msk [vmem:[#allocation2 + $0x34] sm:$0xf] %vm3072_vm14, %v2993_v60 }
 0x1ef   : > { %v1929_v18 = vpop.permute.xlu0 %1928 }
 0x1f0   : > { %v7175_v20 = vld [vmem:[#allocation2 + $0x28] sm:$0xff]   ;;  %2009 = vst.msk [vmem:[#allocation2 + $0x48] sm:$0xf] %vm1992_vm7, %v1929_v18 }
 0x1f1   : > { %v1935_v49 = vpop.permute.xlu1 %1934  ;;  %2497 = vst.msk [vmem:[#allocation2 + $0x48] sm:$0xf] %vm2475_vm8, %v6955_v31  ;;  %4916 = vmatprep.mubr.msk.bf16.mxu1 %vm3254_vm5, %v7175_v20  ;;  %v5130_v37 = vld [vmem:[#allocation2 + $0x28] sm:$0xff]  }
 0x1f2   : > { %2012 = vst.msk [vmem:[#allocation2 + $0x54] sm:$0xf] %vm1992_vm7, %v1935_v49 }
 0x1f3   : > { %2500 = vst.msk [vmem:[#allocation2 + $0x54] sm:$0xf] %vm2475_vm8, %v6951_v57  ;;  %v2999_v26 = vpop.permute.xlu0 %2998 }
 0x1f4   : > { %3087 = vst.msk [vmem:[#allocation2 + $0x40] sm:$0xf] %vm3072_vm14, %v2999_v26  ;;  %v5142_v26 = vld [vmem:[#allocation2 + $0x88] sm:$0xff]  }
 0x1f5   : > { %v1931_v10 = vpop.permute.xlu1 %1930  ;;  %v7185_v63 = vld [vmem:[#allocation2 + $0x30] sm:$0xff]  }
 0x1f6   : > { %2010 = vst.msk [vmem:[#allocation2 + $0x4c] sm:$0xf] %vm1992_vm7, %v1931_v10  ;;  %4917 = vmatmul.mubr.msk.bf16.gmra.mxu1 %vm3254_vm5, %v7185_v63  ;;  %v5131_v44 = vld [vmem:[#allocation2 + $0x30] sm:$0xff]  }
 0x1f7   : > { %2498 = vst.msk [vmem:[#allocation2 + $0x4c] sm:$0xf] %vm2475_vm8, %v6966_v41  ;;  %v2995_v54 = vpop.permute.xlu0 %2994 }
 0x1f8   : > { %3085 = vst.msk [vmem:[#allocation2 + $0x38] sm:$0xf] %vm3072_vm14, %v2995_v54 }
 0x1f9   : > { %v2997_v57 = vpop.permute.xlu1 %2996 }
 0x1fa   : > { %3086 = vst.msk [vmem:[#allocation2 + $0x3c] sm:$0xf] %vm3072_vm14, %v2997_v57 }
 0x1fb   : > { %v1941_v2 = vpop.permute.xlu0 %1940 }
 0x1fc   : > { %2015 = vst.msk [vmem:[#allocation2 + $0x60] sm:$0xf] %vm1992_vm7, %v1941_v2 }
 0x1fd   : > { %v3001_v31 = vpop.permute.xlu1 %3000  ;;  %2503 = vst.msk [vmem:[#allocation2 + $0x60] sm:$0xf] %vm2475_vm8, %v6978_v59 }
 0x1fe   : > { %3088 = vst.msk [vmem:[#allocation2 + $0x44] sm:$0xf] %vm3072_vm14, %v3001_v31 }
 0x1ff   : > { %v1937_v41 = vpop.permute.xlu0 %1936 }
 0x200   : > { %2013 = vst.msk [vmem:[#allocation2 + $0x58] sm:$0xf] %vm1992_vm7, %v1937_v41 }
 0x201   : > { %v1943_v9 = vpop.permute.xlu1 %1942  ;;  %v7199_v55 = vld [vmem:[#allocation2 + $0x38] sm:$0xff]   ;;  %2501 = vst.msk [vmem:[#allocation2 + $0x58] sm:$0xf] %vm2475_vm8, %v6993_v34 }
 0x202   : > { %2016 = vst.msk [vmem:[#allocation2 + $0x64] sm:$0xf] %vm1992_vm7, %v1943_v9  ;;  %4920 = vmatprep.mubr.msk.bf16.mxu1 %vm3254_vm5, %v7199_v55 }
 0x203   : > { %2504 = vst.msk [vmem:[#allocation2 + $0x64] sm:$0xf] %vm2475_vm8, %v6989_v8  ;;  %v3007_v6 = vpop.permute.xlu0 %3006 }
 0x204   : > { %3091 = vst.msk [vmem:[#allocation2 + $0x50] sm:$0xf] %vm3072_vm14, %v3007_v6 }
 0x205   : > { %v1939_v40 = vpop.permute.xlu1 %1938  ;;  %v7209_v59 = vld [vmem:[#allocation2 + $0x40] sm:$0xff]  }
 0x206   : > { %2014 = vst.msk [vmem:[#allocation2 + $0x5c] sm:$0xf] %vm1992_vm7, %v1939_v40  ;;  %4921 = vmatmul.mubr.msk.bf16.gmra.mxu1 %vm3254_vm5, %v7209_v59 }
 0x207   : > { %2502 = vst.msk [vmem:[#allocation2 + $0x5c] sm:$0xf] %vm2475_vm8, %v7013_v43  ;;  %v3003_v46 = vpop.permute.xlu0 %3002 }
 0x208   : > { %3089 = vst.msk [vmem:[#allocation2 + $0x48] sm:$0xf] %vm3072_vm14, %v3003_v46 }
 0x209   : > { %v3005_v8 = vpop.permute.xlu1 %3004 }
 0x20a   : > { %3090 = vst.msk [vmem:[#allocation2 + $0x4c] sm:$0xf] %vm3072_vm14, %v3005_v8 }
 0x20b   : > { %v1949_v38 = vpop.permute.xlu0 %1948 }
 0x20c   : > { %2019 = vst.msk [vmem:[#allocation2 + $0x70] sm:$0xf] %vm1992_vm7, %v1949_v38 }
 0x20d   : > { %v3009_v34 = vpop.permute.xlu1 %3008  ;;  %2507 = vst.msk [vmem:[#allocation2 + $0x70] sm:$0xf] %vm2475_vm8, %v7024_v53 }
 0x20e   : > { %3092 = vst.msk [vmem:[#allocation2 + $0x54] sm:$0xf] %vm3072_vm14, %v3009_v34 }
 0x20f   : > { %v1945_v43 = vpop.permute.xlu0 %1944 }
 0x210   : > { %2017 = vst.msk [vmem:[#allocation2 + $0x68] sm:$0xf] %vm1992_vm7, %v1945_v43 }
 0x211   : > { %v1951_v24 = vpop.permute.xlu1 %1950  ;;  %v7223_v12 = vld [vmem:[#allocation2 + $0x48] sm:$0xff]   ;;  %2505 = vst.msk [vmem:[#allocation2 + $0x68] sm:$0xf] %vm2475_vm8, %v7037_v15 }
 0x212   : > { %2020 = vst.msk [vmem:[#allocation2 + $0x74] sm:$0xf] %vm1992_vm7, %v1951_v24  ;;  %4924 = vmatprep.mubr.msk.bf16.mxu1 %vm3254_vm5, %v7223_v12 }
 0x213   : > { %2508 = vst.msk [vmem:[#allocation2 + $0x74] sm:$0xf] %vm2475_vm8, %v7033_v56  ;;  %v3015_v14 = vpop.permute.xlu0 %3014 }
 0x214   : > { %3095 = vst.msk [vmem:[#allocation2 + $0x60] sm:$0xf] %vm3072_vm14, %v3015_v14 }
 0x215   : > { %v1947_v17 = vpop.permute.xlu1 %1946  ;;  %v7233_v53 = vld [vmem:[#allocation2 + $0x50] sm:$0xff]  }
 0x216   : > { %2018 = vst.msk [vmem:[#allocation2 + $0x6c] sm:$0xf] %vm1992_vm7, %v1947_v17  ;;  %4925 = vmatmul.mubr.msk.bf16.gmra.mxu1 %vm3254_vm5, %v7233_v53 }
 0x217   : > { %2506 = vst.msk [vmem:[#allocation2 + $0x6c] sm:$0xf] %vm2475_vm8, %v7048_v62 }
 0x21b   : > { %v3011_v0 = vpop.permute.xlu0 %3010 }
 0x21c   : > { %v3013_v56 = vpop.permute.xlu1 %3012  ;;  %3093 = vst.msk [vmem:[#allocation2 + $0x58] sm:$0xf] %vm3072_vm14, %v3011_v0 }
 0x21d   : > { %3094 = vst.msk [vmem:[#allocation2 + $0x5c] sm:$0xf] %vm3072_vm14, %v3013_v56 }
 0x21f   : > { %v1959_v19 = vpop.permute.xlu0 %1958 }
 0x220   : > { %2024 = vst.msk [vmem:[#allocation2 + $0x84] sm:$0xf] %vm1992_vm7, %v1959_v19 }
 0x221   : > { %2512 = vst.msk [vmem:[#allocation2 + $0x84] sm:$0xf] %vm2475_vm8, %v7044_v47 }
 0x222   : > { %v3017_v15 = vpop.permute.xlu1 %3016 }
 0x223   : > { %3096 = vst.msk [vmem:[#allocation2 + $0x64] sm:$0xf] %vm3072_vm14, %v3017_v15  ;;  %v1955_v62 = vpop.permute.xlu0 %1954 }
 0x224   : > { %v7247_v32 = vld [vmem:[#allocation2 + $0x58] sm:$0xff]   ;;  %2022 = vst.msk [vmem:[#allocation2 + $0x7c] sm:$0xf] %vm1992_vm7, %v1955_v62 }
 0x225   : > { %2510 = vst.msk [vmem:[#allocation2 + $0x7c] sm:$0xf] %vm2475_vm8, %v7083_v61  ;;  %4928 = vmatprep.mubr.msk.bf16.mxu1 %vm3254_vm5, %v7247_v32  ;;  %v5136_v60 = vld [vmem:[#allocation2 + $0x58] sm:$0xff]  }
 0x226   : > { %v1953_v25 = vpop.permute.xlu1 %1952 }
 0x227   : > { %2021 = vst.msk [vmem:[#allocation2 + $0x78] sm:$0xf] %vm1992_vm7, %v1953_v25 }
 0x228   : > { %2509 = vst.msk [vmem:[#allocation2 + $0x78] sm:$0xf] %vm2475_vm8, %v7077_v48  ;;  %v3106_v30 = vld [vmem:[#allocation2 + $0x84] sm:$0xf] }
 0x22a   : > { %v7257_v47 = vld [vmem:[#allocation2 + $0x60] sm:$0xff]  }
 0x22b   : > { %4929 = vmatmul.mubr.msk.bf16.gmra.mxu1 %vm3254_vm5, %v7257_v47  ;;  %v5137_v23 = vld [vmem:[#allocation2 + $0x60] sm:$0xff]  }
 0x22d   : > { %v3023_v22 = vpop.permute.xlu1 %3022  ;;  %v3021_v50 = vpop.permute.xlu0 %3020 }
 0x22e   : > { %3099 = vst.msk [vmem:[#allocation2 + $0x70] sm:$0xf] %vm3072_vm14, %v3023_v22  ;;  %3098 = vst.msk [vmem:[#allocation2 + $0x6c] sm:$0xf] %vm3072_vm14, %v3021_v50 }
 0x231   : > { %v3025_v33 = vpop.permute.xlu0 %3024 }
 0x232   : > { %v3019_v51 = vpop.permute.xlu1 %3018  ;;  %3100 = vst.msk [vmem:[#allocation2 + $0x74] sm:$0xf] %vm3072_vm14, %v3025_v33 }
 0x233   : > { %3097 = vst.msk [vmem:[#allocation2 + $0x68] sm:$0xf] %vm3072_vm14, %v3019_v51 }
 0x235   : > { %v3027_v61 = vpop.permute.xlu0 %3026 }
 0x236   : > { %v1957_v48 = vpop.permute.xlu1 %1956  ;;  %3101 = vst.msk [vmem:[#allocation2 + $0x78] sm:$0xf] %vm3072_vm14, %v3027_v61 }
 0x237   : > { %2023 = vst.msk [vmem:[#allocation2 + $0x80] sm:$0xf] %vm1992_vm7, %v1957_v48  ;;  %vm3068_vm7 = vmand %vm3067_vm10, %vm1793_vm0 }
 0x238   : > { %2511 = vst.msk [vmem:[#allocation2 + $0x80] sm:$0xf] %vm2475_vm8, %v7087_v27 }
 0x239   : > { %v3033_v1 = vpop.permute.xlu0 %3032  ;;  %v5123_v45 = vld [vmem:[#allocation2 + $0x70] sm:$0xff]  }
 0x23a   : > { %v3029_v39 = vpop.permute.xlu1 %3028  ;;  %v5122_v3 = vld [vmem:[#allocation2 + $0x68] sm:$0xff]   ;;  %v3107_v5 = vsel %vm3105_vm4, %v3033_v1, %v3106_v30  ;;  %v5139_v18 = vld [vmem:[#allocation2 + $0x70] sm:$0xff]   ;;  %v7375_v1 = vld [vmem:[%s7526_s4] ss:$0 sm:$0xff] }
 0x23b   : > { %3102 = vst.msk [vmem:[#allocation2 + $0x7c] sm:$0xf] %vm3072_vm14, %v3029_v39  ;;  %3108 = vst [vmem:[#allocation2 + $0x84] sm:$0xf] %v3107_v5  ;;  %4932 = vmatprep.mubr.msk.bf16.mxu1 %vm3254_vm5, %v5122_v3  ;;  %v5138_v49 = vld [vmem:[#allocation2 + $0x68] sm:$0xff]  }
 0x23c   : > { %4933 = vmatmul.mubr.msk.bf16.gmra.mxu1 %vm3254_vm5, %v5123_v45 }
 0x23d   : > { %v2969_v29 = vpop.permute.xlu0 %2968 }
 0x23e   : > { %v3031_v27 = vpop.permute.xlu1 %3030  ;;  %v3070_v52 = vsel %vm3068_vm7, %v2969_v29, %v3069_v58 }
 0x23f   : > { %3103 = vst.msk [vmem:[#allocation2 + $0x80] sm:$0xf] %vm3072_vm14, %v3031_v27  ;;  %3071 = vst [vmem:[#allocation2 + $0x4] sm:$0x8] %v3070_v52 }
 0x242   : > { %v5124_v28 = vld [vmem:[#allocation2 + $0x78] sm:$0xff]  }
 0x243   : > { %4936 = vmatprep.mubr.msk.bf16.mxu1 %vm3254_vm5, %v5124_v28 }
 0x246   : > { %v5125_v21 = vld [vmem:[#allocation2 + $0x80] sm:$0xff]  }
 0x247   : > { %v5127_v11 = vld [vmem:[#allocation2] sm:$0xff]   ;;  %4937 = vmatmul.mubr.msk.bf16.gmra.mxu1 %vm3254_vm5, %v5125_v21 }
 0x248   : > { %4984 = vmatprep.mubr.msk.bf16.mxu1 %vm3254_vm5, %v5126_v36  ;;  %4946 = vmatprep.mubr.msk.bf16.mxu0 %vm3254_vm5, %v5127_v11  ;;  %v5141_v10 = vld [vmem:[#allocation2 + $0x80] sm:$0xff]  }
 0x249   : > { %4947 = vmatmul.mubr.msk.bf16.vlgmr.msra.gmra.mxu0 %vm3254_vm5, %v7112_v16  ;;  %v5132_v16 = vld [vmem:[#allocation2 + $0x38] sm:$0xff]  }
 0x24a   : > { %4950 = vmatprep.mubr.msk.bf16.mxu0 %vm3254_vm5, %v7133_v42  ;;  %v5133_v42 = vld [vmem:[#allocation2 + $0x40] sm:$0xff]  }
 0x24f   : > { %4985 = vmatmul.mubr.msk.bf16.vlgmr.msra.gmra.mxu1 %vm3254_vm5, %v5128_v35 }
 0x250   : > { %4988 = vmatprep.mubr.msk.bf16.mxu1 %vm3254_vm5, %v5129_v4 }
 0x251   : > { %4951 = vmatmul.mubr.msk.bf16.gmra.mxu0 %vm3254_vm5, %v7151_v13  ;;  %v5134_v13 = vld [vmem:[#allocation2 + $0x48] sm:$0xff]  }
 0x252   : > { %4954 = vmatprep.mubr.msk.bf16.mxu0 %vm3254_vm5, %v7161_v7  ;;  %v5135_v7 = vld [vmem:[#allocation2 + $0x50] sm:$0xff]  }
 0x257   : > { %4989 = vmatmul.mubr.msk.bf16.gmra.mxu1 %vm3254_vm5, %v5130_v37 }
 0x258   : > { %4992 = vmatprep.mubr.msk.bf16.mxu1 %vm3254_vm5, %v5131_v44 }
 0x259   : > { %4955 = vmatmul.mubr.msk.bf16.gmra.mxu0 %vm3254_vm5, %v7175_v20  ;;  %v5140_v20 = vld [vmem:[#allocation2 + $0x78] sm:$0xff]  }
 0x25a   : > { %4958 = vmatprep.mubr.msk.bf16.mxu0 %vm3254_vm5, %v7185_v63 }
 0x25f   : > { %4993 = vmatmul.mubr.msk.bf16.gmra.mxu1 %vm3254_vm5, %v5132_v16 }
 0x260   : > { %4996 = vmatprep.mubr.msk.bf16.mxu1 %vm3254_vm5, %v5133_v42 }
 0x261   : > { %4959 = vmatmul.mubr.msk.bf16.gmra.mxu0 %vm3254_vm5, %v7199_v55 }
 0x262   : > { %4962 = vmatprep.mubr.msk.bf16.mxu0 %vm3254_vm5, %v7209_v59 }
 0x267   : > { %4997 = vmatmul.mubr.msk.bf16.gmra.mxu1 %vm3254_vm5, %v5134_v13 }
 0x268   : > { %5000 = vmatprep.mubr.msk.bf16.mxu1 %vm3254_vm5, %v5135_v7 }
 0x269   : > { %4963 = vmatmul.mubr.msk.bf16.gmra.mxu0 %vm3254_vm5, %v7223_v12 }
 0x26a   : > { %4966 = vmatprep.mubr.msk.bf16.mxu0 %vm3254_vm5, %v7233_v53 }
 0x26f   : > { %5001 = vmatmul.mubr.msk.bf16.gmra.mxu1 %vm3254_vm5, %v5136_v60 }
 0x270   : > { %5004 = vmatprep.mubr.msk.bf16.mxu1 %vm3254_vm5, %v5137_v23 }
 0x271   : > { %4967 = vmatmul.mubr.msk.bf16.gmra.mxu0 %vm3254_vm5, %v7247_v32 }
 0x272   : > { %4970 = vmatprep.mubr.msk.bf16.mxu0 %vm3254_vm5, %v7257_v47 }
 0x277   : > { %5005 = vmatmul.mubr.msk.bf16.gmra.mxu1 %vm3254_vm5, %v5138_v49 }
 0x278   : > { %5008 = vmatprep.mubr.msk.bf16.mxu1 %vm3254_vm5, %v5139_v18 }
 0x279   : > { %4971 = vmatmul.mubr.msk.bf16.gmra.mxu0 %vm3254_vm5, %v5122_v3 }
 0x27a   : > { %4974 = vmatprep.mubr.msk.bf16.mxu0 %vm3254_vm5, %v5123_v45 }
 0x27f   : > { %5009 = vmatmul.mubr.msk.bf16.gmra.mxu1 %vm3254_vm5, %v5140_v20 }
 0x280   : > { %5012 = vmatprep.mubr.msk.bf16.mxu1 %vm3254_vm5, %v5141_v10 }
 0x281   : > { %4975 = vmatmul.mubr.msk.bf16.gmra.mxu0 %vm3254_vm5, %v5124_v28 }
 0x287   : > { %5013 = vmatmul.mubr.msk.bf16.gmra.mxu1 %vm3254_vm5, %v5142_v26 }
 0x28f   : > { %v4910_v63 = vpop.f32.mrf.mxu1 }
 0x291   : > { %v3337_v57 = vpop.f32.mrf.mxu1 }
 0x293   : > { %v4911_v54 = vpop.f32.mrf.mxu1 }
 0x295   : > { %v3340_v31 = vpop.f32.mrf.mxu1 }
 0x2a0   : > { %v4914_v2 = vpop.f32.mrf.mxu1 }
 0x2a2   : > { %v3353_v9 = vpop.f32.mrf.mxu1 }
 0x2a4   : > { %v4915_v41 = vpop.f32.mrf.mxu1 }
 0x2a6   : > { %v7322_v55 = vpop.f32.mrf.mxu1 }
 0x2b6   : > { %v7324_v40 = vpop.f32.mrf.mxu1 }
 0x2b8   : > { %v7326_v6 = vpop.f32.mrf.mxu1 }
 0x2ba   : > { %v7328_v59 = vpop.f32.mrf.mxu1 }
 0x2bc   : > { %v7330_v8 = vpop.f32.mrf.mxu1 }
 0x2c6   : > { %v7332_v46 = vpop.f32.mrf.mxu1 }
 0x2c8   : > { %v7334_v34 = vpop.f32.mrf.mxu1 }
 0x2ca   : > { %v7336_v38 = vpop.f32.mrf.mxu1 }
 0x2cc   : > { %v7338_v24 = vpop.f32.mrf.mxu1 }
 0x2d6   : > { %v7340_v43 = vpop.f32.mrf.mxu1 }
 0x2d8   : > { %v7342_v12 = vpop.f32.mrf.mxu1 }
 0x2da   : > { %v7344_v17 = vpop.f32.mrf.mxu1 }
 0x2dc   : > { %v7346_v14 = vpop.f32.mrf.mxu1 }
 0x2eb   : > { %v7348_v53 = vpop.f32.mrf.mxu1 }
 0x2ed   : > { %v7350_v56 = vpop.f32.mrf.mxu1 }
 0x2ef   : > { %v7352_v0 = vpop.f32.mrf.mxu1 }
 0x2f1   : > { %v7354_v15 = vpop.f32.mrf.mxu1 }
 0x2fc   : > { %v7356_v19 = vpop.f32.mrf.mxu1 }
 0x2fe   : > { %v7358_v25 = vpop.f32.mrf.mxu1 }
 0x300   : > { %v7360_v62 = vpop.f32.mrf.mxu1 }
 0x302   : > { %v7362_v32 = vpop.f32.mrf.mxu1 }
 0x307   : > { %v7364_v22 = vpop.f32.mrf.mxu1 }
 0x309   : > { %v7366_v50 = vpop.f32.mrf.mxu1  ;;  %v4948_v47 = vpop.f32.mrf.mxu0 }
 0x30a   : > { %v3533_v30 = vadd.f32 %v4948_v47, %v4910_v63 }
 0x30b   : > { %v7368_v51 = vpop.f32.mrf.mxu1  ;;  %v3524_v33 = vpop.f32.mrf.mxu0 }
 0x30c   : > { %v3525_v5 = vadd.f32 %v3524_v33, %v3337_v57 }
 0x30d   : > { %v7370_v48 = vpop.f32.mrf.mxu1  ;;  %v4949_v61 = vpop.f32.mrf.mxu0 }
 0x30e   : > { %v3536_v29 = vadd.f32 %v4949_v61, %v4911_v54 }
 0x30f   : > { %v4986_v39 = vpop.f32.mrf.mxu1  ;;  %v3527_v3 = vpop.f32.mrf.mxu0 }
 0x310   : > { %v3999_v45 = vadd.f32 %v4986_v39, %v3533_v30  ;;  %v3528_v11 = vadd.f32 %v3527_v3, %v3340_v31 }
 0x311   : > { %v3870_v58 = vpop.f32.mrf.mxu1  ;;  %v4952_v27 = vpop.f32.mrf.mxu0 }
 0x312   : > { %v4038_v52 = vadd.f32 %v7375_v1, %v3999_v45  ;;  %v3997_v28 = vadd.f32 %v3870_v58, %v3525_v5  ;;  %v3549_v37 = vadd.f32 %v4952_v27, %v4914_v2 }
 0x313   : > { %v4987_v21 = vpop.f32.mrf.mxu1  ;;  %v3540_v36 = vpop.f32.mrf.mxu0 }
 0x314   : > { %v4036_v35 = vadd.f32 %v7375_v1, %v3997_v28  ;;  %v4000_v4 = vadd.f32 %v4987_v21, %v3536_v29  ;;  %v4070_v42 = vmax.f32 %v4038_v52, 0.0  ;;  %v3541_v20 = vadd.f32 %v3540_v36, %v3353_v9 }
 0x315   : > { %v3873_v44 = vpop.f32.mrf.mxu1  ;;  %v4953_v16 = vpop.f32.mrf.mxu0 }
 0x316   : > { %v4068_v13 = vmax.f32 %v4036_v35, 0.0  ;;  %v4039_v7 = vadd.f32 %v7375_v1, %v4000_v4  ;;  %v3998_v60 = vadd.f32 %v3873_v44, %v3528_v11  ;;  %v3552_v63 = vadd.f32 %v4953_v16, %v4915_v41 }
 0x317   : > { %v4990_v23 = vpop.f32.mrf.mxu1  ;;  %v3543_v49 = vpop.f32.mrf.mxu0 }
 0x318   : > { %v4100_v18 = vadd.f32 %v4070_v42, %v4068_v13  ;;  %v4037_v10 = vadd.f32 %v7375_v1, %v3998_v60  ;;  %v4003_v26 = vadd.f32 %v4990_v23, %v3549_v37  ;;  %v4071_v31 = vmax.f32 %v4039_v7, 0.0 }
 0x319   : > { %v3886_v57 = vpop.f32.mrf.mxu1  ;;  %v4956_v54 = vpop.f32.mrf.mxu0  ;;  %v3544_v3 = vadd.f32 %v3543_v49, %v7322_v55 }
 0x31a   : > { %4117 = vst.msk [vmem:[#allocation3] sm:$0xff] %vm4116_vm2, %v4100_v18  ;;  %v4069_v2 = vmax.f32 %v4037_v10, 0.0  ;;  %v4042_v47 = vadd.f32 %v7375_v1, %v4003_v26  ;;  %v4001_v33 = vadd.f32 %v3886_v57, %v3541_v20  ;;  %v3565_v45 = vadd.f32 %v4956_v54, %v7324_v40 }
 0x31b   : > { %v4991_v61 = vpop.f32.mrf.mxu1  ;;  %v3556_v30 = vpop.f32.mrf.mxu0 }
 0x31c   : > { %v4101_v39 = vadd.f32 %v4071_v31, %v4069_v2  ;;  %v4040_v9 = vadd.f32 %v7375_v1, %v4001_v33  ;;  %v4004_v5 = vadd.f32 %v4991_v61, %v3552_v63  ;;  %v4074_v27 = vmax.f32 %v4042_v47, 0.0 }
 0x31d   : > { %v3889_v41 = vpop.f32.mrf.mxu1  ;;  %v4957_v58 = vpop.f32.mrf.mxu0  ;;  %v3557_v55 = vadd.f32 %v3556_v30, %v7326_v6 }
 0x31e   : > { %4118 = vst.msk [vmem:[#allocation3 + $0x8] sm:$0xff] %vm4116_vm2, %v4101_v39  ;;  %v4072_v29 = vmax.f32 %v4040_v9, 0.0  ;;  %v4043_v52 = vadd.f32 %v7375_v1, %v4004_v5  ;;  %v4002_v28 = vadd.f32 %v3889_v41, %v3544_v3  ;;  %v3568_v40 = vadd.f32 %v4957_v58, %v7328_v59 }
 0x31f   : > { %v4994_v21 = vpop.f32.mrf.mxu1  ;;  %v3559_v36 = vpop.f32.mrf.mxu0 }
 0x320   : > { %v4102_v11 = vadd.f32 %v4074_v27, %v4072_v29  ;;  %v4041_v35 = vadd.f32 %v7375_v1, %v4002_v28  ;;  %v4007_v4 = vadd.f32 %v4994_v21, %v3565_v45  ;;  %v4075_v16 = vmax.f32 %v4043_v52, 0.0 }
 0x321   : > { %v3902_v37 = vpop.f32.mrf.mxu1  ;;  %v4960_v44 = vpop.f32.mrf.mxu0  ;;  %v3560_v6 = vadd.f32 %v3559_v36, %v7330_v8 }
 0x322   : > { %4119 = vst.msk [vmem:[#allocation3 + $0x10] sm:$0xff] %vm4116_vm2, %v4102_v11  ;;  %v4073_v42 = vmax.f32 %v4041_v35, 0.0  ;;  %v4046_v13 = vadd.f32 %v7375_v1, %v4007_v4  ;;  %v4005_v7 = vadd.f32 %v3902_v37, %v3557_v55  ;;  %v3581_v33 = vadd.f32 %v4960_v44, %v7332_v46 }
 0x323   : > { %v4995_v60 = vpop.f32.mrf.mxu1  ;;  %v3572_v23 = vpop.f32.mrf.mxu0 }
 0x324   : > { %v4103_v49 = vadd.f32 %v4075_v16, %v4073_v42  ;;  %v4044_v18 = vadd.f32 %v7375_v1, %v4005_v7  ;;  %v4008_v20 = vadd.f32 %v4995_v60, %v3568_v40  ;;  %v4078_v26 = vmax.f32 %v4046_v13, 0.0 }
 0x325   : > { %v4133_v59 = vld [vmem:[#allocation3] ss:$2 sm:$0xff]  ;;  %v4149_v10 = vld [vmem:[#allocation3 + $0x1] ss:$2 sm:$0xff]  ;;  %v3905_v63 = vpop.f32.mrf.mxu1  ;;  %v4961_v57 = vpop.f32.mrf.mxu0  ;;  %v3573_v3 = vadd.f32 %v3572_v23, %v7334_v34 }
 0x326   : > { %v4164_v54 = vadd.f32 %v4149_v10, %v4133_v59  ;;  %4120 = vst.msk [vmem:[#allocation3 + $0x18] sm:$0xff] %vm4116_vm2, %v4103_v49  ;;  %v4076_v31 = vmax.f32 %v4044_v18, 0.0  ;;  %v4047_v2 = vadd.f32 %v7375_v1, %v4008_v20  ;;  %v4006_v47 = vadd.f32 %v3905_v63, %v3560_v6 }
 0x327   : > { %v4998_v8 = vpop.f32.mrf.mxu1  ;;  %v3575_v61 = vpop.f32.mrf.mxu0  ;;  %v3584_v29 = vadd.f32 %v4961_v57, %v7336_v38 }
 0x328   : > { %v4172_v30 = vmul.f32 0.25, %v4164_v54  ;;  %v4104_v39 = vadd.f32 %v4078_v26, %v4076_v31  ;;  %v4045_v9 = vadd.f32 %v7375_v1, %v4006_v47  ;;  %v4011_v5 = vadd.f32 %v4998_v8, %v3581_v33 }
 0x329   : > { %v3918_v45 = vpop.f32.mrf.mxu1  ;;  %v4964_v41 = vpop.f32.mrf.mxu0  ;;  %v4079_v58 = vmax.f32 %v4047_v2, 0.0  ;;  %v3576_v36 = vadd.f32 %v3575_v61, %v7338_v24 }
 0x32a   : > { %4121 = vst.msk [vmem:[#allocation3 + $0x20] sm:$0xff] %vm4116_vm2, %v4104_v39  ;;  %v4077_v27 = vmax.f32 %v4045_v9, 0.0  ;;  %v4009_v52 = vadd.f32 %v3918_v45, %v3573_v3  ;;  %4180 = vst.msk [vmem:[%s7405_s10] sm:$0xff] %vm4116_vm2, %v4172_v30  ;;  %v4050_v46 = vadd.f32 %v7375_v1, %v4011_v5  ;;  %v3597_v7 = vadd.f32 %v4964_v41, %v7340_v43 }
 0x32b   : > { %v4999_v34 = vpop.f32.mrf.mxu1  ;;  %v3588_v28 = vpop.f32.mrf.mxu0 }
 0x32c   : > { %v4105_v21 = vadd.f32 %v4079_v58, %v4077_v27  ;;  %v4048_v11 = vadd.f32 %v7375_v1, %v4009_v52  ;;  %v4012_v55 = vadd.f32 %v4999_v34, %v3584_v29  ;;  %v4082_v40 = vmax.f32 %v4050_v46, 0.0 }
 0x32d   : > { %v4135_v35 = vld [vmem:[#allocation3 + $0x10] ss:$2 sm:$0xff]  ;;  %v4151_v4 = vld [vmem:[#allocation3 + $0x11] ss:$2 sm:$0xff]  ;;  %v3921_v38 = vpop.f32.mrf.mxu1  ;;  %v4965_v37 = vpop.f32.mrf.mxu0  ;;  %v3589_v6 = vadd.f32 %v3588_v28, %v7342_v12 }
 0x32e   : > { %v4165_v44 = vadd.f32 %v4151_v4, %v4135_v35  ;;  %4122 = vst.msk [vmem:[#allocation3 + $0x28] sm:$0xff] %vm4116_vm2, %v4105_v21  ;;  %v4080_v16 = vmax.f32 %v4048_v11, 0.0  ;;  %v4051_v42 = vadd.f32 %v7375_v1, %v4012_v55  ;;  %v4010_v13 = vadd.f32 %v3921_v38, %v3576_v36 }
 0x32f   : > { %v5002_v60 = vpop.f32.mrf.mxu1  ;;  %v3591_v24 = vpop.f32.mrf.mxu0  ;;  %v3600_v57 = vadd.f32 %v4965_v37, %v7344_v17 }
 0x330   : > { %v4173_v23 = vmul.f32 0.25, %v4165_v44  ;;  %v4106_v49 = vadd.f32 %v4082_v40, %v4080_v16  ;;  %v4049_v18 = vadd.f32 %v7375_v1, %v4010_v13  ;;  %v4015_v20 = vadd.f32 %v5002_v60, %v3597_v7 }
 0x331   : > { %v3934_v59 = vpop.f32.mrf.mxu1  ;;  %v4968_v10 = vpop.f32.mrf.mxu0  ;;  %v4083_v26 = vmax.f32 %v4051_v42, 0.0  ;;  %v3592_v12 = vadd.f32 %v3591_v24, %v7346_v14 }
 0x332   : > { %4123 = vst.msk [vmem:[#allocation3 + $0x30] sm:$0xff] %vm4116_vm2, %v4106_v49  ;;  %v4081_v63 = vmax.f32 %v4049_v18, 0.0  ;;  %v4013_v54 = vadd.f32 %v3934_v59, %v3589_v6  ;;  %4181 = vst.msk [vmem:[%s7405_s10 + $0x8] sm:$0xff] %vm4116_vm2, %v4173_v23  ;;  %v4054_v43 = vadd.f32 %v7375_v1, %v4015_v20  ;;  %v3613_v58 = vadd.f32 %v4968_v10, %v7348_v53 }
 0x333   : > { %v5003_v31 = vpop.f32.mrf.mxu1  ;;  %v3604_v2 = vpop.f32.mrf.mxu0 }
 0x334   : > { %v4107_v47 = vadd.f32 %v4083_v26, %v4081_v63  ;;  %v4052_v33 = vadd.f32 %v7375_v1, %v4013_v54  ;;  %v4016_v8 = vadd.f32 %v5003_v31, %v3600_v57  ;;  %v4086_v39 = vmax.f32 %v4054_v43, 0.0 }
 0x335   : > { %v4137_v61 = vld [vmem:[#allocation3 + $0x20] ss:$2 sm:$0xff]  ;;  %v4153_v30 = vld [vmem:[#allocation3 + $0x21] ss:$2 sm:$0xff]  ;;  %v3937_v3 = vpop.f32.mrf.mxu1  ;;  %v4969_v9 = vpop.f32.mrf.mxu0  ;;  %v3605_v46 = vadd.f32 %v3604_v2, %v7350_v56 }
 0x336   : > { %v4166_v5 = vadd.f32 %v4153_v30, %v4137_v61  ;;  %4124 = vst.msk [vmem:[#allocation3 + $0x38] sm:$0xff] %vm4116_vm2, %v4107_v47  ;;  %v4084_v17 = vmax.f32 %v4052_v33, 0.0  ;;  %v4055_v45 = vadd.f32 %v7375_v1, %v4016_v8  ;;  %v4014_v41 = vadd.f32 %v3937_v3, %v3592_v12 }
 0x337   : > { %v5006_v27 = vpop.f32.mrf.mxu1  ;;  %v3607_v14 = vpop.f32.mrf.mxu0  ;;  %v3616_v35 = vadd.f32 %v4969_v9, %v7352_v0 }
 0x338   : > { %v4174_v29 = vmul.f32 0.25, %v4166_v5  ;;  %v4108_v52 = vadd.f32 %v4086_v39, %v4084_v17  ;;  %v4053_v34 = vadd.f32 %v7375_v1, %v4014_v41  ;;  %v4019_v28 = vadd.f32 %v5006_v27, %v3613_v58 }
 0x339   : > { %v3950_v21 = vpop.f32.mrf.mxu1  ;;  %v4972_v36 = vpop.f32.mrf.mxu0  ;;  %v4087_v11 = vmax.f32 %v4055_v45, 0.0  ;;  %v3608_v56 = vadd.f32 %v3607_v14, %v7354_v15 }
 0x33a   : > { %4125 = vst.msk [vmem:[#allocation3 + $0x40] sm:$0xff] %vm4116_vm2, %v4108_v52  ;;  %v4085_v55 = vmax.f32 %v4053_v34, 0.0  ;;  %v4017_v4 = vadd.f32 %v3950_v21, %v3605_v46  ;;  %4182 = vst.msk [vmem:[%s7405_s10 + $0x10] sm:$0xff] %vm4116_vm2, %v4174_v29  ;;  %v4058_v53 = vadd.f32 %v7375_v1, %v4019_v28  ;;  %v3629_v18 = vadd.f32 %v4972_v36, %v7356_v19 }
 0x33b   : > { %v5007_v40 = vpop.f32.mrf.mxu1  ;;  %v3620_v38 = vpop.f32.mrf.mxu0 }
 0x33c   : > { %v4109_v37 = vadd.f32 %v4087_v11, %v4085_v55  ;;  %v4056_v44 = vadd.f32 %v7375_v1, %v4017_v4  ;;  %v4020_v16 = vadd.f32 %v5007_v40, %v3616_v35  ;;  %v4090_v7 = vmax.f32 %v4058_v53, 0.0 }
 0x33d   : > { %v4139_v42 = vld [vmem:[#allocation3 + $0x30] ss:$2 sm:$0xff]  ;;  %v4155_v13 = vld [vmem:[#allocation3 + $0x31] ss:$2 sm:$0xff]  ;;  %v3953_v60 = vpop.f32.mrf.mxu1  ;;  %v4973_v24 = vpop.f32.mrf.mxu0  ;;  %v3621_v26 = vadd.f32 %v3620_v38, %v7358_v25 }
 0x33e   : > { %v4167_v23 = vadd.f32 %v4155_v13, %v4139_v42  ;;  %4126 = vst.msk [vmem:[#allocation3 + $0x48] sm:$0xff] %vm4116_vm2, %v4109_v37  ;;  %v4088_v0 = vmax.f32 %v4056_v44, 0.0  ;;  %v4059_v49 = vadd.f32 %v7375_v1, %v4020_v16  ;;  %v4018_v6 = vadd.f32 %v3953_v60, %v3608_v56 }
 0x33f   : > { %v5010_v20 = vpop.f32.mrf.mxu1  ;;  %v3623_v15 = vpop.f32.mrf.mxu0  ;;  %v3632_v47 = vadd.f32 %v4973_v24, %v7360_v62 }
 0x340   : > { %v4175_v59 = vmul.f32 0.25, %v4167_v23  ;;  %v4110_v10 = vadd.f32 %v4090_v7, %v4088_v0  ;;  %v4057_v63 = vadd.f32 %v7375_v1, %v4018_v6  ;;  %v4023_v57 = vadd.f32 %v5010_v20, %v3629_v18 }
 0x341   : > { %v3966_v54 = vpop.f32.mrf.mxu1  ;;  %v4976_v43 = vpop.f32.mrf.mxu0  ;;  %v4091_v31 = vmax.f32 %v4059_v49, 0.0  ;;  %v3624_v25 = vadd.f32 %v3623_v15, %v7362_v32 }
 0x342   : > { %4127 = vst.msk [vmem:[#allocation3 + $0x50] sm:$0xff] %vm4116_vm2, %v4110_v10  ;;  %v4089_v2 = vmax.f32 %v4057_v63, 0.0  ;;  %v4021_v12 = vadd.f32 %v3966_v54, %v3621_v26  ;;  %4183 = vst.msk [vmem:[%s7405_s10 + $0x18] sm:$0xff] %vm4116_vm2, %v4175_v59  ;;  %v4062_v19 = vadd.f32 %v7375_v1, %v4023_v57  ;;  %v3645_v14 = vadd.f32 %v4976_v43, %v7364_v22 }
 0x343   : > { %v5011_v33 = vpop.f32.mrf.mxu1  ;;  %v3636_v8 = vpop.f32.mrf.mxu0 }
 0x344   : > { %v4111_v61 = vadd.f32 %v4091_v31, %v4089_v2  ;;  %v4060_v30 = vadd.f32 %v7375_v1, %v4021_v12  ;;  %v4024_v39 = vadd.f32 %v5011_v33, %v3632_v47  ;;  %v4094_v5 = vmax.f32 %v4062_v19, 0.0 }
 0x345   : > { %v4141_v3 = vld [vmem:[#allocation3 + $0x40] ss:$2 sm:$0xff]  ;;  %v4157_v9 = vld [vmem:[#allocation3 + $0x41] ss:$2 sm:$0xff]  ;;  %v3969_v17 = vpop.f32.mrf.mxu1  ;;  %v4977_v45 = vpop.f32.mrf.mxu0  ;;  %v3637_v46 = vadd.f32 %v3636_v8, %v7366_v50 }
 0x346   : > { %v4168_v41 = vadd.f32 %v4157_v9, %v4141_v3  ;;  %4128 = vst.msk [vmem:[#allocation3 + $0x58] sm:$0xff] %vm4116_vm2, %v4111_v61  ;;  %v4092_v62 = vmax.f32 %v4060_v30, 0.0  ;;  %v4063_v58 = vadd.f32 %v7375_v1, %v4024_v39  ;;  %v4022_v27 = vadd.f32 %v3969_v17, %v3624_v25 }
 0x347   : > { %v5014_v29 = vpop.f32.mrf.mxu1  ;;  %v3639_v21 = vpop.f32.mrf.mxu0  ;;  %v3648_v35 = vadd.f32 %v4977_v45, %v7368_v51 }
 0x348   : > { %v4176_v32 = vmul.f32 0.25, %v4168_v41  ;;  %v4112_v52 = vadd.f32 %v4094_v5, %v4092_v62  ;;  %v4061_v34 = vadd.f32 %v7375_v1, %v4022_v27  ;;  %v4027_v28 = vadd.f32 %v5014_v29, %v3645_v14 }
 0x349   : > { %v3982_v36 = vpop.f32.mrf.mxu1  ;;  %v4095_v11 = vmax.f32 %v4063_v58, 0.0  ;;  %v3640_v50 = vadd.f32 %v3639_v21, %v7370_v48 }
 0x34a   : > { %4129 = vst.msk [vmem:[#allocation3 + $0x60] sm:$0xff] %vm4116_vm2, %v4112_v52  ;;  %v4093_v55 = vmax.f32 %v4061_v34, 0.0  ;;  %v4025_v4 = vadd.f32 %v3982_v36, %v3637_v46  ;;  %4184 = vst.msk [vmem:[%s7405_s10 + $0x20] sm:$0xff] %vm4116_vm2, %v4176_v32  ;;  %v4066_v22 = vadd.f32 %v7375_v1, %v4027_v28 }
 0x34b   : > { %v5015_v53 = vpop.f32.mrf.mxu1 }
 0x34c   : > { %v4113_v40 = vadd.f32 %v4095_v11, %v4093_v55  ;;  %v4064_v38 = vadd.f32 %v7375_v1, %v4025_v4  ;;  %v4028_v37 = vadd.f32 %v5015_v53, %v3648_v35  ;;  %v4098_v16 = vmax.f32 %v4066_v22, 0.0 }
 0x34d   : > { %v4143_v56 = vld [vmem:[#allocation3 + $0x50] ss:$2 sm:$0xff]  ;;  %v4159_v44 = vld [vmem:[#allocation3 + $0x51] ss:$2 sm:$0xff]  ;;  %v3985_v42 = vpop.f32.mrf.mxu1 }
 0x34e   : > { %v4169_v13 = vadd.f32 %v4159_v44, %v4143_v56  ;;  %4130 = vst.msk [vmem:[#allocation3 + $0x68] sm:$0xff] %vm4116_vm2, %v4113_v40  ;;  %v4096_v51 = vmax.f32 %v4064_v38, 0.0  ;;  %v4067_v7 = vadd.f32 %v7375_v1, %v4028_v37  ;;  %v4026_v60 = vadd.f32 %v3985_v42, %v3640_v50 }
 0x350   : > { %v4177_v24 = vmul.f32 0.25, %v4169_v13  ;;  %v4114_v48 = vadd.f32 %v4098_v16, %v4096_v51  ;;  %v4065_v23 = vadd.f32 %v7375_v1, %v4026_v60  ;;  %v4099_v0 = vmax.f32 %v4067_v7, 0.0 }
 0x352   : > { %4131 = vst.msk [vmem:[#allocation3 + $0x70] sm:$0xff] %vm4116_vm2, %v4114_v48  ;;  %v4097_v49 = vmax.f32 %v4065_v23, 0.0  ;;  %4185 = vst.msk [vmem:[%s7405_s10 + $0x28] sm:$0xff] %vm4116_vm2, %v4177_v24 }
 0x354   : > { %v4115_v6 = vadd.f32 %v4099_v0, %v4097_v49 }
 0x355   : > { %v4145_v18 = vld [vmem:[#allocation3 + $0x60] ss:$2 sm:$0xff]  ;;  %v4161_v20 = vld [vmem:[#allocation3 + $0x61] ss:$2 sm:$0xff] }
 0x356   : > { %v4170_v15 = vadd.f32 %v4161_v20, %v4145_v18  ;;  %4132 = vst.msk [vmem:[#allocation3 + $0x78] sm:$0xff] %vm4116_vm2, %v4115_v6 }
 0x358   : > { %v4178_v59 = vmul.f32 0.25, %v4170_v15 }
 0x35a   : > { %4186 = vst.msk [vmem:[%s7405_s10 + $0x30] sm:$0xff] %vm4116_vm2, %v4178_v59 }
 0x35d   : > { %v4147_v1 = vld [vmem:[#allocation3 + $0x70] ss:$2 sm:$0xff]  ;;  %v4163_v10 = vld [vmem:[#allocation3 + $0x71] ss:$2 sm:$0xff] }
 0x35e   : > { %v4171_v26 = vadd.f32 %v4163_v10, %v4147_v1 }
 0x360   : > { %v4179_v63 = vmul.f32 0.25, %v4171_v26 }
 0x362   : > { %4187 = vst.msk [vmem:[%s7405_s10 + $0x38] sm:$0xff] %vm4116_vm2, %v4179_v63 }
 0x363   : > { %5156 = shalt.err (!%p5153_p3)
}
 0x364   : > { %s5157_s25 = scalar_lea.hbm %s7474_s15, 1024  ;;  %s5161_s7 = scalar_lea.hbm %s7527_s5, 2048 }
 0x365   : > { %p5158_p4 = scmp.ne.s32.totalorder %s7474_s15, %s5157_s25  ;;  %p5162_p9 = scmp.lt.s32.totalorder %s7474_s15, %s7527_s5 }
 0x366   : > { %p5163_p10 = scmp.lt.s32.totalorder %s5161_s7, %s5157_s25 }
 0x367   : > { %p5159_p7 = pnand %p5158_p4, %p5280_p5 }
 0x368   : > { %p5164_p11 = por %p5163_p10, %p5162_p9 }
 0x369   : > { %p5160_p8 = pneg %p5159_p7 }
 0x36b   : > { %p5165_p12 = pnand %p5164_p11, %p5160_p8 }
 0x36d   : > { %5168 = shalt.err (!%p5165_p12)
}
 0x36e   : > { %s5210_s10 = smov 128   ;;  %s5211_s11 = smov 8  }
 0x36f   : > { %5020 = dma.vmem_to_hbm [thread:$0]  (%p5280_p5), %s7476_s12, 1024, %s7474_s15, %s7482_s16, %s5210_s10, %s5210_s10, %s5211_s11  }
 0x370 PF: > { %p5026_p13 = scmp.ge.s32.totalorder %s5203_s21, 2  ;;  %s4217_s13 = sand.u32 1, %s5191_s18  }
 0x371   : > { %s4218_s14 = scalar_lea.sflag [#allocation5], %s4217_s13 }
 0x372   : > { %p5023_p0 = pnand %p5026_p13, %p5284_p6 }
 0x374   : > { %p5024_p1 = pneg %p5023_p0 }
 0x376   : > { %5186 = dma.done.wait (%p5024_p1), %s4218_s14, 1024  }
 0x377   : > { %5188 = vsyncadd (%p5024_p1), %s4218_s14, 4294966272  ;;  %p15_p2 = scmp.ge.s32.totalorder %s5267_s24, 4   ;;  %s7854_s18 = smov %s5195_s19 }
 0x378   : > { %s7855_s19 = smov %s5199_s20  ;;  %s7856_s20 = smov %s5278_s27 }
 0x379   : > { %s7857_s21 = smov %s5267_s24  ;;  %17 = sbr.rel (!%p15_p2) target bundleno = 3 (0x3), region = 94 }
 0x37e   :  { %4223 = vsyncpa [#allocation5], 1 }
 0x37f   :  { %4225 = vsyncpa [#allocation5 + $0x1], 1 }

</bundles_post_ra>
